<compile_context>
chip_gen: v5e
topology: v5e:2x2
jax: 0.10.0
libtpu: 0.0.40
codegen_flags: <defaults>
</compile_context>

<pallas_src>
import jax
import jax.numpy as jnp
from jax.experimental import pallas as pl
from jax.experimental.pallas import tpu as pltpu  # noqa: F401  (kept for parity; defaults suffice here)
from collections import namedtuple

TransformersDecoderOutput = namedtuple(
    "TransformersDecoderOutput", ["logits", "past_key_values"]
)

# ------------------------- config (small, synthetic) -------------------------
B, T, S = 2, 8, 16          # batch, decoder seq len, encoder seq len
D, H, F = 32, 4, 64         # hidden, num heads, ffn dim
NL = 2                      # decoder layers
V = 128                     # vocab size (lane-dense LM head)
HD = D // H                 # head dim
LN_EPS = 1e-12
NEG_INF = -1e9
SCALE = 1.0 / float(HD) ** 0.5


# ------------------------------ in-kernel helpers -----------------------------
def _ln(y, g, b):
    # LayerNorm over last dim, f32 math.
    mu = jnp.mean(y, axis=-1, keepdims=True)
    var = jnp.mean((y - mu) * (y - mu), axis=-1, keepdims=True)
    return (y - mu) * jax.lax.rsqrt(var + LN_EPS) * g + b


def _mha(q2d, k2d, v2d, mask, Tq, Sk):
    # q2d: [B*Tq, D] f32, k2d/v2d: [B*Sk, D] f32, mask: [B, Tq, Sk] f32 (shared by heads)
    # Per-head 3-D batched einsums (known-good Mosaic lowering); contexts are
    # assembled fully in vregs via concatenate — no scratch, no partial stores.
    q3 = q2d.reshape(B, Tq, D)
    k3 = k2d.reshape(B, Sk, D)
    v3 = v2d.reshape(B, Sk, D)
    ctx_heads = []
    for h in range(H):                      # static unroll, H=4
        lo, hi = h * HD, (h + 1) * HD
        qh = q3[:, :, lo:hi].astype(jnp.bfloat16)
        kh = k3[:, :, lo:hi].astype(jnp.bfloat16)
        vh = v3[:, :, lo:hi].astype(jnp.bfloat16)
        s = jnp.einsum("btd,bsd->bts", qh, kh,
                       preferred_element_type=jnp.float32)
        s = s * SCALE + mask
        s = s - jnp.max(s, axis=-1, keepdims=True)
        p = jnp.exp(s)
        p = p * pl.reciprocal(jnp.sum(p, axis=-1, keepdims=True), approx=True)
        ctx_heads.append(
            jnp.einsum("bts,bsd->btd", p.astype(jnp.bfloat16), vh,
                       preferred_element_type=jnp.float32)
        )
    return jnp.concatenate(ctx_heads, axis=-1).reshape(B * Tq, D)


# ------------------------------ fused stack kernel -----------------------------
def _decoder_stack_kernel(
    # shared data
    x_emb_ref, enc_ref, dec_pad_ref, enc_pad_ref,
    emb_g_ref, emb_b_ref,
    # per-layer stacked weights (leading NL axis, indexed statically in-kernel)
    qkv_w_ref, qkv_b_ref, ao_w_ref, ao_b_ref, ln1_g_ref, ln1_b_ref,
    cq_w_ref, cq_b_ref, ckv_w_ref, ckv_b_ref, co_w_ref, co_b_ref,
    ln2_g_ref, ln2_b_ref,
    ff1_w_ref, ff1_b_ref, ff2_w_ref, ff2_b_ref, ln3_g_ref, ln3_b_ref,
    # LM head
    head_w_ref, head_b_ref,
    # outputs
    logits_ref, kv_ref,
):
    # ---- additive attention masks built in-kernel (hoisted above the layer loop) ----
    row = jax.lax.broadcasted_iota(jnp.int32, (T, T), 0)
    col = jax.lax.broadcasted_iota(jnp.int32, (T, T), 1)
    causal = (col <= row).astype(jnp.float32)                     # [T, T]
    dec_keep = dec_pad_ref[...]                                   # [B, T] (1 = keep)
    self_keep = causal[None, :, :] * dec_keep[:, None, :]         # [B, T, T]
    self_mask = (1.0 - self_keep) * NEG_INF                       # [B, T, T]
    enc_keep = enc_pad_ref[...]                                   # [B, S]
    cross_mask = jnp.broadcast_to(
        (1.0 - enc_keep[:, None, :]) * NEG_INF, (B, T, S))        # [B, T, S]

    enc2d = enc_ref[...]                                          # [B*S, D] f32

    # ---- embedding LayerNorm ----
    x = _ln(x_emb_ref[...], emb_g_ref[...], emb_b_ref[...])       # [B*T, D] f32

    # ---- decoder layers (static unroll; weights already resident in VMEM) ----
    for l in range(NL):
        # self-attention (fused QKV projection)
        qkv = (jnp.dot(x.astype(jnp.bfloat16), qkv_w_ref[l],
                       preferred_element_type=jnp.float32) + qkv_b_ref[l])
        q2 = qkv[:, 0:D]
        k2 = qkv[:, D:2 * D]
        v2 = qkv[:, 2 * D:3 * D]
        kv_ref[l] = qkv[:, D:3 * D]            # fused K|V present-cache slab
        ctx = _mha(q2, k2, v2, self_mask, T, T)
        ao = (jnp.dot(ctx.astype(jnp.bfloat16), ao_w_ref[l],
                      preferred_element_type=jnp.float32) + ao_b_ref[l])
        x = _ln(ao + x, ln1_g_ref[l], ln1_b_ref[l])

        # cross-attention over encoder hidden states (fused K|V projection)
        cq = (jnp.dot(x.astype(jnp.bfloat16), cq_w_ref[l],
                      preferred_element_type=jnp.float32) + cq_b_ref[l])
        ckv = (jnp.dot(enc2d.astype(jnp.bfloat16), ckv_w_ref[l],
                       preferred_element_type=jnp.float32) + ckv_b_ref[l])
        ck = ckv[:, 0:D]
        cv = ckv[:, D:2 * D]
        cctx = _mha(cq, ck, cv, cross_mask, T, S)
        co = (jnp.dot(cctx.astype(jnp.bfloat16), co_w_ref[l],
                      preferred_element_type=jnp.float32) + co_b_ref[l])
        x = _ln(co + x, ln2_g_ref[l], ln2_b_ref[l])

        # feed-forward
        h1 = (jnp.dot(x.astype(jnp.bfloat16), ff1_w_ref[l],
                      preferred_element_type=jnp.float32) + ff1_b_ref[l])
        h1 = jax.nn.gelu(h1)  # TODO(synk): HF BERT uses exact erf GELU; tanh approx used here.
        ff = (jnp.dot(h1.astype(jnp.bfloat16), ff2_w_ref[l],
                      preferred_element_type=jnp.float32) + ff2_b_ref[l])
        x = _ln(ff + x, ln3_g_ref[l], ln3_b_ref[l])

    # ---- LM head (lane-dense V=128 output) ----
    logits_ref[...] = (
        jnp.dot(x.astype(jnp.bfloat16), head_w_ref[...],
                preferred_element_type=jnp.float32) + head_b_ref[...]
    )


def _decoder_stack_call(params, x_emb, enc2d, dec_pad, enc_pad):
    # No grid: single kernel invocation, full arrays as VMEM blocks (everything is
    # far below the VMEM limit at these shapes).
    out_shape = (
        jax.ShapeDtypeStruct((B * T, V), jnp.float32),          # logits
        jax.ShapeDtypeStruct((NL, B * T, 2 * D), jnp.float32),  # fused K|V cache slab
    )
    return pl.pallas_call(
        _decoder_stack_kernel,
        out_shape=out_shape,
    )(
        x_emb, enc2d, dec_pad, enc_pad,
        params["emb_ln_g"], params["emb_ln_b"],
        params["qkv_w"], params["qkv_b"], params["ao_w"], params["ao_b"],
        params["ln1_g"], params["ln1_b"],
        params["cq_w"], params["cq_b"], params["ckv_w"], params["ckv_b"],
        params["co_w"], params["co_b"], params["ln2_g"], params["ln2_b"],
        params["ff1_w"], params["ff1_b"], params["ff2_w"], params["ff2_b"],
        params["ln3_g"], params["ln3_b"],
        params["head_w"], params["head_b"],
    )


# ---------------------------- parameter creation ------------------------------
def init_params(key):
    def nrm(k, shape):
        return 0.02 * jax.random.normal(k, shape, dtype=jnp.float32)

    ks = jax.random.split(key, 12)
    return {
        # embeddings (f32; gathers done in plain JAX)
        "word_emb": nrm(ks[0], (V, D)),
        "pos_emb": nrm(ks[1], (T, D)),
        "type_emb": nrm(ks[2], (2, D)),
        "emb_ln_g": jnp.ones((1, D), jnp.float32),
        "emb_ln_b": jnp.zeros((1, D), jnp.float32),
        # LM head (bf16 weights, f32 bias)
        "head_w": nrm(ks[3], (D, V)).astype(jnp.bfloat16),
        "head_b": jnp.zeros((1, V), jnp.float32),
        # stacked per-layer weights (bf16 matmul weights, f32 bias/LN params)
        "qkv_w": nrm(ks[4], (NL, D, 3 * D)).astype(jnp.bfloat16),
        "qkv_b": jnp.zeros((NL, 1, 3 * D), jnp.float32),
        "ao_w": nrm(ks[5], (NL, D, D)).astype(jnp.bfloat16),
        "ao_b": jnp.zeros((NL, 1, D), jnp.float32),
        "ln1_g": jnp.ones((NL, 1, D), jnp.float32),
        "ln1_b": jnp.zeros((NL, 1, D), jnp.float32),
        "cq_w": nrm(ks[6], (NL, D, D)).astype(jnp.bfloat16),
        "cq_b": jnp.zeros((NL, 1, D), jnp.float32),
        "ckv_w": nrm(ks[7], (NL, D, 2 * D)).astype(jnp.bfloat16),
        "ckv_b": jnp.zeros((NL, 1, 2 * D), jnp.float32),
        "co_w": nrm(ks[8], (NL, D, D)).astype(jnp.bfloat16),
        "co_b": jnp.zeros((NL, 1, D), jnp.float32),
        "ln2_g": jnp.ones((NL, 1, D), jnp.float32),
        "ln2_b": jnp.zeros((NL, 1, D), jnp.float32),
        "ff1_w": nrm(ks[9], (NL, D, F)).astype(jnp.bfloat16),
        "ff1_b": jnp.zeros((NL, 1, F), jnp.float32),
        "ff2_w": nrm(ks[10], (NL, F, D)).astype(jnp.bfloat16),
        "ff2_b": jnp.zeros((NL, 1, D), jnp.float32),
        "ln3_g": jnp.ones((NL, 1, D), jnp.float32),
        "ln3_b": jnp.zeros((NL, 1, D), jnp.float32),
    }


# -------------------------------- forward pass --------------------------------
def transformers_decoder_forward(
    params,
    input_ids,
    attention_mask,
    encoder_hidden_states,
    encoder_attention_mask,
    token_type_ids,
):
    # ---- embeddings (gathers in plain JAX; LN fused into the stack kernel) ----
    we = params["word_emb"][input_ids]                       # [B, T, D]
    pe = params["pos_emb"][jnp.arange(T)][None, :, :]        # [1, T, D]
    te = params["type_emb"][token_type_ids]                  # [B, T, D]
    x_emb = (we + pe + te).reshape(B * T, D).astype(jnp.float32)

    enc2d = encoder_hidden_states.reshape(B * S, D).astype(jnp.float32)
    dec_pad = attention_mask.astype(jnp.float32)             # [B, T] (1 = keep)
    enc_pad = encoder_attention_mask.astype(jnp.float32)     # [B, S] (1 = keep)

    # ---- single fused pallas_call: emb-LN + NL layers + LM head ----
    logits2d, kv_slab = _decoder_stack_call(params, x_emb, enc2d, dec_pad, enc_pad)

    logits = logits2d.reshape(B, T, V)
    # present key/value cache (use_cache=True semantics): [NL, B, H, T, HD]
    k4 = kv_slab[:, :, :D].reshape(NL, B, T, H, HD).transpose(0, 1, 3, 2, 4)
    v4 = kv_slab[:, :, D:].reshape(NL, B, T, H, HD).transpose(0, 1, 3, 2, 4)
    past_key_values = tuple((k4[l], v4[l]) for l in range(NL))
    # TODO(synk): past_key_values are produced but incremental (cached) decoding with
    # position offsets is not implemented, matching the original translation.
    return TransformersDecoderOutput(logits=logits, past_key_values=past_key_values)


# ------------------------------------ main ------------------------------------
if __name__ == "__main__":
    key = jax.random.PRNGKey(0)
    kp, ki, ke = jax.random.split(key, 3)

    params = init_params(kp)
    input_ids = jax.random.randint(ki, (B, T), 0, V, dtype=jnp.int32)
    token_type_ids = jnp.zeros((B, T), jnp.int32)
    attention_mask = jnp.ones((B, T), jnp.int32)
    encoder_hidden_states = jax.random.normal(ke, (B, S, D), dtype=jnp.float32)
    encoder_attention_mask = jnp.ones((B, S), jnp.int32)

    fwd = jax.jit(transformers_decoder_forward)
    out = fwd(
        params,
        input_ids,
        attention_mask,
        encoder_hidden_states,
        encoder_attention_mask,
        token_type_ids,
    )
    jax.block_until_ready(out.logits)
    assert out.logits.shape == (B, T, V)
    assert len(out.past_key_values) == NL
    assert out.past_key_values[0][0].shape == (B, H, T, HD)
    print("KERNEL_OK")
</pallas_src>

<mosaic_0001>
module attributes {stable_mosaic.version = 11 : i64} {
  func.func @_decoder_stack_kernel(%arg0: memref<16x32xf32, #tpu.memory_space<vmem>>, %arg1: memref<32x32xf32, #tpu.memory_space<vmem>>, %arg2: memref<2x8xf32, #tpu.memory_space<vmem>>, %arg3: memref<2x16xf32, #tpu.memory_space<vmem>>, %arg4: memref<1x32xf32, #tpu.memory_space<vmem>>, %arg5: memref<1x32xf32, #tpu.memory_space<vmem>>, %arg6: memref<2x32x96xbf16, #tpu.memory_space<vmem>>, %arg7: memref<2x1x96xf32, #tpu.memory_space<vmem>>, %arg8: memref<2x32x32xbf16, #tpu.memory_space<vmem>>, %arg9: memref<2x1x32xf32, #tpu.memory_space<vmem>>, %arg10: memref<2x1x32xf32, #tpu.memory_space<vmem>>, %arg11: memref<2x1x32xf32, #tpu.memory_space<vmem>>, %arg12: memref<2x32x32xbf16, #tpu.memory_space<vmem>>, %arg13: memref<2x1x32xf32, #tpu.memory_space<vmem>>, %arg14: memref<2x32x64xbf16, #tpu.memory_space<vmem>>, %arg15: memref<2x1x64xf32, #tpu.memory_space<vmem>>, %arg16: memref<2x32x32xbf16, #tpu.memory_space<vmem>>, %arg17: memref<2x1x32xf32, #tpu.memory_space<vmem>>, %arg18: memref<2x1x32xf32, #tpu.memory_space<vmem>>, %arg19: memref<2x1x32xf32, #tpu.memory_space<vmem>>, %arg20: memref<2x32x64xbf16, #tpu.memory_space<vmem>>, %arg21: memref<2x1x64xf32, #tpu.memory_space<vmem>>, %arg22: memref<2x64x32xbf16, #tpu.memory_space<vmem>>, %arg23: memref<2x1x32xf32, #tpu.memory_space<vmem>>, %arg24: memref<2x1x32xf32, #tpu.memory_space<vmem>>, %arg25: memref<2x1x32xf32, #tpu.memory_space<vmem>>, %arg26: memref<32x128xbf16, #tpu.memory_space<vmem>>, %arg27: memref<1x128xf32, #tpu.memory_space<vmem>>, %arg28: memref<16x128xf32, #tpu.memory_space<vmem>>, %arg29: memref<2x16x64xf32, #tpu.memory_space<vmem>>) attributes {dimension_semantics = [], scalar_prefetch = 0 : i64, scratch_operands = 0 : i64, tpu.core_type = #tpu.core_type<tc>} {
    %0 = tpu.iota {dimensions = array<i32: 0>} : vector<8x8xi32>
    %1 = tpu.iota {dimensions = array<i32: 1>} : vector<8x8xi32>
    %2 = arith.cmpi sle, %1, %0 : vector<8x8xi32>
    %3 = arith.extui %2 : vector<8x8xi1> to vector<8x8xi32>
    %4 = arith.sitofp %3 : vector<8x8xi32> to vector<8x8xf32>
    %c0 = arith.constant 0 : index
    %c0_0 = arith.constant 0 : index
    %5 = vector.load %arg2[%c0, %c0_0] : memref<2x8xf32, #tpu.memory_space<vmem>>, vector<2x8xf32>
    %6 = vector.shape_cast %4 : vector<8x8xf32> to vector<1x8x8xf32>
    %7 = vector.shape_cast %5 : vector<2x8xf32> to vector<2x1x8xf32>
    %8 = vector.broadcast %6 : vector<1x8x8xf32> to vector<2x8x8xf32>
    %9 = vector.broadcast %7 : vector<2x1x8xf32> to vector<2x8x8xf32>
    %10 = arith.mulf %8, %9 : vector<2x8x8xf32>
    %cst = arith.constant 1.000000e+00 : f32
    %11 = vector.broadcast %cst : f32 to vector<2x8x8xf32>
    %12 = arith.subf %11, %10 : vector<2x8x8xf32>
    %cst_1 = arith.constant -1.000000e+09 : f32
    %13 = vector.broadcast %cst_1 : f32 to vector<2x8x8xf32>
    %14 = arith.mulf %12, %13 : vector<2x8x8xf32>
    %c0_2 = arith.constant 0 : index
    %c0_3 = arith.constant 0 : index
    %15 = vector.load %arg3[%c0_2, %c0_3] : memref<2x16xf32, #tpu.memory_space<vmem>>, vector<2x16xf32>
    %16 = vector.shape_cast %15 : vector<2x16xf32> to vector<2x1x16xf32>
    %cst_4 = arith.constant 1.000000e+00 : f32
    %17 = vector.broadcast %cst_4 : f32 to vector<2x1x16xf32>
    %18 = arith.subf %17, %16 : vector<2x1x16xf32>
    %cst_5 = arith.constant -1.000000e+09 : f32
    %19 = vector.broadcast %cst_5 : f32 to vector<2x1x16xf32>
    %20 = arith.mulf %18, %19 : vector<2x1x16xf32>
    %21 = vector.shape_cast %20 : vector<2x1x16xf32> to vector<2x1x16xf32>
    %22 = vector.broadcast %21 : vector<2x1x16xf32> to vector<2x8x16xf32>
    %c0_6 = arith.constant 0 : index
    %c0_7 = arith.constant 0 : index
    %23 = vector.load %arg1[%c0_6, %c0_7] : memref<32x32xf32, #tpu.memory_space<vmem>>, vector<32x32xf32>
    %c0_8 = arith.constant 0 : index
    %c0_9 = arith.constant 0 : index
    %24 = vector.load %arg0[%c0_8, %c0_9] : memref<16x32xf32, #tpu.memory_space<vmem>>, vector<16x32xf32>
    %c0_10 = arith.constant 0 : index
    %c0_11 = arith.constant 0 : index
    %25 = vector.load %arg4[%c0_10, %c0_11] : memref<1x32xf32, #tpu.memory_space<vmem>>, vector<1x32xf32>
    %c0_12 = arith.constant 0 : index
    %c0_13 = arith.constant 0 : index
    %26 = vector.load %arg5[%c0_12, %c0_13] : memref<1x32xf32, #tpu.memory_space<vmem>>, vector<1x32xf32>
    %cst_14 = arith.constant dense<0.000000e+00> : vector<16xf32>
    %27 = vector.multi_reduction <add>, %24, %cst_14 [1] : vector<16x32xf32> to vector<16xf32>
    %28 = vector.shape_cast %27 : vector<16xf32> to vector<16x1xf32>
    %cst_15 = arith.constant 3.200000e+01 : f32
    %29 = vector.broadcast %cst_15 : f32 to vector<16x1xf32>
    %30 = arith.divf %28, %29 : vector<16x1xf32>
    %31 = vector.broadcast %30 : vector<16x1xf32> to vector<16x32xf32>
    %32 = arith.subf %24, %31 : vector<16x32xf32>
    %33 = vector.broadcast %30 : vector<16x1xf32> to vector<16x32xf32>
    %34 = arith.subf %24, %33 : vector<16x32xf32>
    %35 = arith.mulf %32, %34 : vector<16x32xf32>
    %cst_16 = arith.constant dense<0.000000e+00> : vector<16xf32>
    %36 = vector.multi_reduction <add>, %35, %cst_16 [1] : vector<16x32xf32> to vector<16xf32>
    %37 = vector.shape_cast %36 : vector<16xf32> to vector<16x1xf32>
    %cst_17 = arith.constant 3.200000e+01 : f32
    %38 = vector.broadcast %cst_17 : f32 to vector<16x1xf32>
    %39 = arith.divf %37, %38 : vector<16x1xf32>
    %40 = vector.broadcast %30 : vector<16x1xf32> to vector<16x32xf32>
    %41 = arith.subf %24, %40 : vector<16x32xf32>
    %cst_18 = arith.constant 9.99999996E-13 : f32
    %42 = vector.broadcast %cst_18 : f32 to vector<16x1xf32>
    %43 = arith.addf %39, %42 : vector<16x1xf32>
    %44 = math.rsqrt %43 : vector<16x1xf32>
    %45 = vector.broadcast %44 : vector<16x1xf32> to vector<16x32xf32>
    %46 = arith.mulf %41, %45 : vector<16x32xf32>
    %47 = vector.broadcast %25 : vector<1x32xf32> to vector<16x32xf32>
    %48 = arith.mulf %46, %47 : vector<16x32xf32>
    %49 = vector.broadcast %26 : vector<1x32xf32> to vector<16x32xf32>
    %50 = arith.addf %48, %49 : vector<16x32xf32>
    %51 = arith.truncf %50 : vector<16x32xf32> to vector<16x32xbf16>
    %c0_19 = arith.constant 0 : index
    %c0_20 = arith.constant 0 : index
    %c0_21 = arith.constant 0 : index
    %52 = vector.load %arg6[%c0_19, %c0_20, %c0_21] : memref<2x32x96xbf16, #tpu.memory_space<vmem>>, vector<1x32x96xbf16>
    %53 = vector.shape_cast %52 : vector<1x32x96xbf16> to vector<32x96xbf16>
    %cst_22 = arith.constant dense<0.000000e+00> : vector<16x96xf32>
    %54 = tpu.matmul %51, %53, %cst_22 {dimension_numbers = #tpu.dot_dimension_numbers<[1], [0], [0], [1], [0, 0, 1, 1], [], []>} : vector<16x32xbf16>, vector<32x96xbf16>, vector<16x96xf32> -> vector<16x96xf32>
    %c0_23 = arith.constant 0 : index
    %c0_24 = arith.constant 0 : index
    %c0_25 = arith.constant 0 : index
    %55 = vector.load %arg7[%c0_23, %c0_24, %c0_25] : memref<2x1x96xf32, #tpu.memory_space<vmem>>, vector<1x1x96xf32>
    %56 = vector.shape_cast %55 : vector<1x1x96xf32> to vector<1x96xf32>
    %57 = vector.broadcast %56 : vector<1x96xf32> to vector<16x96xf32>
    %58 = arith.addf %54, %57 : vector<16x96xf32>
    %59 = vector.extract_strided_slice %58 {offsets = [0, 0], sizes = [16, 32], strides = [1, 1]} : vector<16x96xf32> to vector<16x32xf32>
    %60 = vector.extract_strided_slice %58 {offsets = [0, 32], sizes = [16, 32], strides = [1, 1]} : vector<16x96xf32> to vector<16x32xf32>
    %61 = vector.extract_strided_slice %58 {offsets = [0, 64], sizes = [16, 32], strides = [1, 1]} : vector<16x96xf32> to vector<16x32xf32>
    %62 = vector.extract_strided_slice %58 {offsets = [0, 32], sizes = [16, 64], strides = [1, 1]} : vector<16x96xf32> to vector<16x64xf32>
    %c0_26 = arith.constant 0 : index
    %c0_27 = arith.constant 0 : index
    %c0_28 = arith.constant 0 : index
    %63 = vector.load %arg29[%c0_26, %c0_27, %c0_28] : memref<2x16x64xf32, #tpu.memory_space<vmem>>, vector<1x16x64xf32>
    %64 = vector.shape_cast %63 : vector<1x16x64xf32> to vector<16x64xf32>
    %65 = vector.shape_cast %62 : vector<16x64xf32> to vector<1x16x64xf32>
    tpu.vector_store %arg29[%c0_26, %c0_27, %c0_28], %65 {strides = array<i32>} : memref<2x16x64xf32, #tpu.memory_space<vmem>>, vector<1x16x64xf32>,
    %66 = vector.shape_cast %59 : vector<16x32xf32> to vector<2x8x32xf32>
    %67 = vector.shape_cast %60 : vector<16x32xf32> to vector<2x8x32xf32>
    %68 = vector.shape_cast %61 : vector<16x32xf32> to vector<2x8x32xf32>
    %69 = vector.extract_strided_slice %66 {offsets = [0, 0, 0], sizes = [2, 8, 8], strides = [1, 1, 1]} : vector<2x8x32xf32> to vector<2x8x8xf32>
    %70 = arith.truncf %69 : vector<2x8x8xf32> to vector<2x8x8xbf16>
    %71 = vector.extract_strided_slice %67 {offsets = [0, 0, 0], sizes = [2, 8, 8], strides = [1, 1, 1]} : vector<2x8x32xf32> to vector<2x8x8xf32>
    %72 = arith.truncf %71 : vector<2x8x8xf32> to vector<2x8x8xbf16>
    %73 = vector.extract_strided_slice %68 {offsets = [0, 0, 0], sizes = [2, 8, 8], strides = [1, 1, 1]} : vector<2x8x32xf32> to vector<2x8x8xf32>
    %74 = arith.truncf %73 : vector<2x8x8xf32> to vector<2x8x8xbf16>
    "tpu.trace_start"() <{level = 10 : i32, message = "btd,bsd->bts"}> : () -> ()
    %cst_29 = arith.constant dense<0.000000e+00> : vector<2x8x8xf32>
    %75 = tpu.matmul %70, %72, %cst_29 {dimension_numbers = #tpu.dot_dimension_numbers<[2], [2], [1], [1], [0, 0, 0, 1, 1, 1], [0], [0]>} : vector<2x8x8xbf16>, vector<2x8x8xbf16>, vector<2x8x8xf32> -> vector<2x8x8xf32>
    "tpu.trace_stop"() : () -> ()
    %cst_30 = arith.constant 0.353553385 : f32
    %76 = vector.broadcast %cst_30 : f32 to vector<2x8x8xf32>
    %77 = arith.mulf %75, %76 : vector<2x8x8xf32>
    %78 = arith.addf %77, %14 : vector<2x8x8xf32>
    %cst_31 = arith.constant dense<0xFF800000> : vector<2x8xf32>
    %79 = vector.multi_reduction <maximumf>, %78, %cst_31 [2] : vector<2x8x8xf32> to vector<2x8xf32>
    %80 = vector.shape_cast %79 : vector<2x8xf32> to vector<2x8x1xf32>
    %81 = vector.broadcast %80 : vector<2x8x1xf32> to vector<2x8x8xf32>
    %82 = arith.subf %78, %81 : vector<2x8x8xf32>
    %83 = math.exp %82 : vector<2x8x8xf32>
    %cst_32 = arith.constant dense<0.000000e+00> : vector<2x8xf32>
    %84 = vector.multi_reduction <add>, %83, %cst_32 [2] : vector<2x8x8xf32> to vector<2x8xf32>
    %85 = vector.shape_cast %84 : vector<2x8xf32> to vector<2x8x1xf32>
    %86 = tpu.reciprocal %85 {approx = true} : vector<2x8x1xf32> -> vector<2x8x1xf32>
    %87 = vector.broadcast %86 : vector<2x8x1xf32> to vector<2x8x8xf32>
    %88 = arith.mulf %83, %87 : vector<2x8x8xf32>
    %89 = arith.truncf %88 : vector<2x8x8xf32> to vector<2x8x8xbf16>
    "tpu.trace_start"() <{level = 10 : i32, message = "bts,bsd->btd"}> : () -> ()
    %cst_33 = arith.constant dense<0.000000e+00> : vector<2x8x8xf32>
    %90 = tpu.matmul %89, %74, %cst_33 {dimension_numbers = #tpu.dot_dimension_numbers<[2], [1], [1], [2], [0, 0, 0, 1, 1, 2], [0], [0]>} : vector<2x8x8xbf16>, vector<2x8x8xbf16>, vector<2x8x8xf32> -> vector<2x8x8xf32>
    "tpu.trace_stop"() : () -> ()
    %91 = vector.extract_strided_slice %66 {offsets = [0, 0, 8], sizes = [2, 8, 8], strides = [1, 1, 1]} : vector<2x8x32xf32> to vector<2x8x8xf32>
    %92 = arith.truncf %91 : vector<2x8x8xf32> to vector<2x8x8xbf16>
    %93 = vector.extract_strided_slice %67 {offsets = [0, 0, 8], sizes = [2, 8, 8], strides = [1, 1, 1]} : vector<2x8x32xf32> to vector<2x8x8xf32>
    %94 = arith.truncf %93 : vector<2x8x8xf32> to vector<2x8x8xbf16>
    %95 = vector.extract_strided_slice %68 {offsets = [0, 0, 8], sizes = [2, 8, 8], strides = [1, 1, 1]} : vector<2x8x32xf32> to vector<2x8x8xf32>
    %96 = arith.truncf %95 : vector<2x8x8xf32> to vector<2x8x8xbf16>
    "tpu.trace_start"() <{level = 10 : i32, message = "btd,bsd->bts"}> : () -> ()
    %cst_34 = arith.constant dense<0.000000e+00> : vector<2x8x8xf32>
    %97 = tpu.matmul %92, %94, %cst_34 {dimension_numbers = #tpu.dot_dimension_numbers<[2], [2], [1], [1], [0, 0, 0, 1, 1, 1], [0], [0]>} : vector<2x8x8xbf16>, vector<2x8x8xbf16>, vector<2x8x8xf32> -> vector<2x8x8xf32>
    "tpu.trace_stop"() : () -> ()
    %cst_35 = arith.constant 0.353553385 : f32
    %98 = vector.broadcast %cst_35 : f32 to vector<2x8x8xf32>
    %99 = arith.mulf %97, %98 : vector<2x8x8xf32>
    %100 = arith.addf %99, %14 : vector<2x8x8xf32>
    %cst_36 = arith.constant dense<0xFF800000> : vector<2x8xf32>
    %101 = vector.multi_reduction <maximumf>, %100, %cst_36 [2] : vector<2x8x8xf32> to vector<2x8xf32>
    %102 = vector.shape_cast %101 : vector<2x8xf32> to vector<2x8x1xf32>
    %103 = vector.broadcast %102 : vector<2x8x1xf32> to vector<2x8x8xf32>
    %104 = arith.subf %100, %103 : vector<2x8x8xf32>
    %105 = math.exp %104 : vector<2x8x8xf32>
    %cst_37 = arith.constant dense<0.000000e+00> : vector<2x8xf32>
    %106 = vector.multi_reduction <add>, %105, %cst_37 [2] : vector<2x8x8xf32> to vector<2x8xf32>
    %107 = vector.shape_cast %106 : vector<2x8xf32> to vector<2x8x1xf32>
    %108 = tpu.reciprocal %107 {approx = true} : vector<2x8x1xf32> -> vector<2x8x1xf32>
    %109 = vector.broadcast %108 : vector<2x8x1xf32> to vector<2x8x8xf32>
    %110 = arith.mulf %105, %109 : vector<2x8x8xf32>
    %111 = arith.truncf %110 : vector<2x8x8xf32> to vector<2x8x8xbf16>
    "tpu.trace_start"() <{level = 10 : i32, message = "bts,bsd->btd"}> : () -> ()
    %cst_38 = arith.constant dense<0.000000e+00> : vector<2x8x8xf32>
    %112 = tpu.matmul %111, %96, %cst_38 {dimension_numbers = #tpu.dot_dimension_numbers<[2], [1], [1], [2], [0, 0, 0, 1, 1, 2], [0], [0]>} : vector<2x8x8xbf16>, vector<2x8x8xbf16>, vector<2x8x8xf32> -> vector<2x8x8xf32>
    "tpu.trace_stop"() : () -> ()
    %113 = vector.extract_strided_slice %66 {offsets = [0, 0, 16], sizes = [2, 8, 8], strides = [1, 1, 1]} : vector<2x8x32xf32> to vector<2x8x8xf32>
    %114 = arith.truncf %113 : vector<2x8x8xf32> to vector<2x8x8xbf16>
    %115 = vector.extract_strided_slice %67 {offsets = [0, 0, 16], sizes = [2, 8, 8], strides = [1, 1, 1]} : vector<2x8x32xf32> to vector<2x8x8xf32>
    %116 = arith.truncf %115 : vector<2x8x8xf32> to vector<2x8x8xbf16>
    %117 = vector.extract_strided_slice %68 {offsets = [0, 0, 16], sizes = [2, 8, 8], strides = [1, 1, 1]} : vector<2x8x32xf32> to vector<2x8x8xf32>
    %118 = arith.truncf %117 : vector<2x8x8xf32> to vector<2x8x8xbf16>
    "tpu.trace_start"() <{level = 10 : i32, message = "btd,bsd->bts"}> : () -> ()
    %cst_39 = arith.constant dense<0.000000e+00> : vector<2x8x8xf32>
    %119 = tpu.matmul %114, %116, %cst_39 {dimension_numbers = #tpu.dot_dimension_numbers<[2], [2], [1], [1], [0, 0, 0, 1, 1, 1], [0], [0]>} : vector<2x8x8xbf16>, vector<2x8x8xbf16>, vector<2x8x8xf32> -> vector<2x8x8xf32>
    "tpu.trace_stop"() : () -> ()
    %cst_40 = arith.constant 0.353553385 : f32
    %120 = vector.broadcast %cst_40 : f32 to vector<2x8x8xf32>
    %121 = arith.mulf %119, %120 : vector<2x8x8xf32>
    %122 = arith.addf %121, %14 : vector<2x8x8xf32>
    %cst_41 = arith.constant dense<0xFF800000> : vector<2x8xf32>
    %123 = vector.multi_reduction <maximumf>, %122, %cst_41 [2] : vector<2x8x8xf32> to vector<2x8xf32>
    %124 = vector.shape_cast %123 : vector<2x8xf32> to vector<2x8x1xf32>
    %125 = vector.broadcast %124 : vector<2x8x1xf32> to vector<2x8x8xf32>
    %126 = arith.subf %122, %125 : vector<2x8x8xf32>
    %127 = math.exp %126 : vector<2x8x8xf32>
    %cst_42 = arith.constant dense<0.000000e+00> : vector<2x8xf32>
    %128 = vector.multi_reduction <add>, %127, %cst_42 [2] : vector<2x8x8xf32> to vector<2x8xf32>
    %129 = vector.shape_cast %128 : vector<2x8xf32> to vector<2x8x1xf32>
    %130 = tpu.reciprocal %129 {approx = true} : vector<2x8x1xf32> -> vector<2x8x1xf32>
    %131 = vector.broadcast %130 : vector<2x8x1xf32> to vector<2x8x8xf32>
    %132 = arith.mulf %127, %131 : vector<2x8x8xf32>
    %133 = arith.truncf %132 : vector<2x8x8xf32> to vector<2x8x8xbf16>
    "tpu.trace_start"() <{level = 10 : i32, message = "bts,bsd->btd"}> : () -> ()
    %cst_43 = arith.constant dense<0.000000e+00> : vector<2x8x8xf32>
    %134 = tpu.matmul %133, %118, %cst_43 {dimension_numbers = #tpu.dot_dimension_numbers<[2], [1], [1], [2], [0, 0, 0, 1, 1, 2], [0], [0]>} : vector<2x8x8xbf16>, vector<2x8x8xbf16>, vector<2x8x8xf32> -> vector<2x8x8xf32>
    "tpu.trace_stop"() : () -> ()
    %135 = vector.extract_strided_slice %66 {offsets = [0, 0, 24], sizes = [2, 8, 8], strides = [1, 1, 1]} : vector<2x8x32xf32> to vector<2x8x8xf32>
    %136 = arith.truncf %135 : vector<2x8x8xf32> to vector<2x8x8xbf16>
    %137 = vector.extract_strided_slice %67 {offsets = [0, 0, 24], sizes = [2, 8, 8], strides = [1, 1, 1]} : vector<2x8x32xf32> to vector<2x8x8xf32>
    %138 = arith.truncf %137 : vector<2x8x8xf32> to vector<2x8x8xbf16>
    %139 = vector.extract_strided_slice %68 {offsets = [0, 0, 24], sizes = [2, 8, 8], strides = [1, 1, 1]} : vector<2x8x32xf32> to vector<2x8x8xf32>
    %140 = arith.truncf %139 : vector<2x8x8xf32> to vector<2x8x8xbf16>
    "tpu.trace_start"() <{level = 10 : i32, message = "btd,bsd->bts"}> : () -> ()
    %cst_44 = arith.constant dense<0.000000e+00> : vector<2x8x8xf32>
    %141 = tpu.matmul %136, %138, %cst_44 {dimension_numbers = #tpu.dot_dimension_numbers<[2], [2], [1], [1], [0, 0, 0, 1, 1, 1], [0], [0]>} : vector<2x8x8xbf16>, vector<2x8x8xbf16>, vector<2x8x8xf32> -> vector<2x8x8xf32>
    "tpu.trace_stop"() : () -> ()
    %cst_45 = arith.constant 0.353553385 : f32
    %142 = vector.broadcast %cst_45 : f32 to vector<2x8x8xf32>
    %143 = arith.mulf %141, %142 : vector<2x8x8xf32>
    %144 = arith.addf %143, %14 : vector<2x8x8xf32>
    %cst_46 = arith.constant dense<0xFF800000> : vector<2x8xf32>
    %145 = vector.multi_reduction <maximumf>, %144, %cst_46 [2] : vector<2x8x8xf32> to vector<2x8xf32>
    %146 = vector.shape_cast %145 : vector<2x8xf32> to vector<2x8x1xf32>
    %147 = vector.broadcast %146 : vector<2x8x1xf32> to vector<2x8x8xf32>
    %148 = arith.subf %144, %147 : vector<2x8x8xf32>
    %149 = math.exp %148 : vector<2x8x8xf32>
    %cst_47 = arith.constant dense<0.000000e+00> : vector<2x8xf32>
    %150 = vector.multi_reduction <add>, %149, %cst_47 [2] : vector<2x8x8xf32> to vector<2x8xf32>
    %151 = vector.shape_cast %150 : vector<2x8xf32> to vector<2x8x1xf32>
    %152 = tpu.reciprocal %151 {approx = true} : vector<2x8x1xf32> -> vector<2x8x1xf32>
    %153 = vector.broadcast %152 : vector<2x8x1xf32> to vector<2x8x8xf32>
    %154 = arith.mulf %149, %153 : vector<2x8x8xf32>
    %155 = arith.truncf %154 : vector<2x8x8xf32> to vector<2x8x8xbf16>
    "tpu.trace_start"() <{level = 10 : i32, message = "bts,bsd->btd"}> : () -> ()
    %cst_48 = arith.constant dense<0.000000e+00> : vector<2x8x8xf32>
    %156 = tpu.matmul %155, %140, %cst_48 {dimension_numbers = #tpu.dot_dimension_numbers<[2], [1], [1], [2], [0, 0, 0, 1, 1, 2], [0], [0]>} : vector<2x8x8xbf16>, vector<2x8x8xbf16>, vector<2x8x8xf32> -> vector<2x8x8xf32>
    "tpu.trace_stop"() : () -> ()
    %157 = tpu.concatenate %90, %112, %134, %156 in 2 : vector<2x8x8xf32>, vector<2x8x8xf32>, vector<2x8x8xf32>, vector<2x8x8xf32> -> vector<2x8x32xf32>
    %158 = vector.shape_cast %157 : vector<2x8x32xf32> to vector<16x32xf32>
    %159 = arith.truncf %158 : vector<16x32xf32> to vector<16x32xbf16>
    %c0_49 = arith.constant 0 : index
    %c0_50 = arith.constant 0 : index
    %c0_51 = arith.constant 0 : index
    %160 = vector.load %arg8[%c0_49, %c0_50, %c0_51] : memref<2x32x32xbf16, #tpu.memory_space<vmem>>, vector<1x32x32xbf16>
    %161 = vector.shape_cast %160 : vector<1x32x32xbf16> to vector<32x32xbf16>
    %cst_52 = arith.constant dense<0.000000e+00> : vector<16x32xf32>
    %162 = tpu.matmul %159, %161, %cst_52 {dimension_numbers = #tpu.dot_dimension_numbers<[1], [0], [0], [1], [0, 0, 1, 1], [], []>} : vector<16x32xbf16>, vector<32x32xbf16>, vector<16x32xf32> -> vector<16x32xf32>
    %c0_53 = arith.constant 0 : index
    %c0_54 = arith.constant 0 : index
    %c0_55 = arith.constant 0 : index
    %163 = vector.load %arg9[%c0_53, %c0_54, %c0_55] : memref<2x1x32xf32, #tpu.memory_space<vmem>>, vector<1x1x32xf32>
    %164 = vector.shape_cast %163 : vector<1x1x32xf32> to vector<1x32xf32>
    %165 = vector.broadcast %164 : vector<1x32xf32> to vector<16x32xf32>
    %166 = arith.addf %162, %165 : vector<16x32xf32>
    %167 = arith.addf %166, %50 : vector<16x32xf32>
    %c0_56 = arith.constant 0 : index
    %c0_57 = arith.constant 0 : index
    %c0_58 = arith.constant 0 : index
    %168 = vector.load %arg10[%c0_56, %c0_57, %c0_58] : memref<2x1x32xf32, #tpu.memory_space<vmem>>, vector<1x1x32xf32>
    %169 = vector.shape_cast %168 : vector<1x1x32xf32> to vector<1x32xf32>
    %c0_59 = arith.constant 0 : index
    %c0_60 = arith.constant 0 : index
    %c0_61 = arith.constant 0 : index
    %170 = vector.load %arg11[%c0_59, %c0_60, %c0_61] : memref<2x1x32xf32, #tpu.memory_space<vmem>>, vector<1x1x32xf32>
    %171 = vector.shape_cast %170 : vector<1x1x32xf32> to vector<1x32xf32>
    %cst_62 = arith.constant dense<0.000000e+00> : vector<16xf32>
    %172 = vector.multi_reduction <add>, %167, %cst_62 [1] : vector<16x32xf32> to vector<16xf32>
    %173 = vector.shape_cast %172 : vector<16xf32> to vector<16x1xf32>
    %cst_63 = arith.constant 3.200000e+01 : f32
    %174 = vector.broadcast %cst_63 : f32 to vector<16x1xf32>
    %175 = arith.divf %173, %174 : vector<16x1xf32>
    %176 = vector.broadcast %175 : vector<16x1xf32> to vector<16x32xf32>
    %177 = arith.subf %167, %176 : vector<16x32xf32>
    %178 = vector.broadcast %175 : vector<16x1xf32> to vector<16x32xf32>
    %179 = arith.subf %167, %178 : vector<16x32xf32>
    %180 = arith.mulf %177, %179 : vector<16x32xf32>
    %cst_64 = arith.constant dense<0.000000e+00> : vector<16xf32>
    %181 = vector.multi_reduction <add>, %180, %cst_64 [1] : vector<16x32xf32> to vector<16xf32>
    %182 = vector.shape_cast %181 : vector<16xf32> to vector<16x1xf32>
    %cst_65 = arith.constant 3.200000e+01 : f32
    %183 = vector.broadcast %cst_65 : f32 to vector<16x1xf32>
    %184 = arith.divf %182, %183 : vector<16x1xf32>
    %185 = vector.broadcast %175 : vector<16x1xf32> to vector<16x32xf32>
    %186 = arith.subf %167, %185 : vector<16x32xf32>
    %cst_66 = arith.constant 9.99999996E-13 : f32
    %187 = vector.broadcast %cst_66 : f32 to vector<16x1xf32>
    %188 = arith.addf %184, %187 : vector<16x1xf32>
    %189 = math.rsqrt %188 : vector<16x1xf32>
    %190 = vector.broadcast %189 : vector<16x1xf32> to vector<16x32xf32>
    %191 = arith.mulf %186, %190 : vector<16x32xf32>
    %192 = vector.broadcast %169 : vector<1x32xf32> to vector<16x32xf32>
    %193 = arith.mulf %191, %192 : vector<16x32xf32>
    %194 = vector.broadcast %171 : vector<1x32xf32> to vector<16x32xf32>
    %195 = arith.addf %193, %194 : vector<16x32xf32>
    %196 = arith.truncf %195 : vector<16x32xf32> to vector<16x32xbf16>
    %c0_67 = arith.constant 0 : index
    %c0_68 = arith.constant 0 : index
    %c0_69 = arith.constant 0 : index
    %197 = vector.load %arg12[%c0_67, %c0_68, %c0_69] : memref<2x32x32xbf16, #tpu.memory_space<vmem>>, vector<1x32x32xbf16>
    %198 = vector.shape_cast %197 : vector<1x32x32xbf16> to vector<32x32xbf16>
    %cst_70 = arith.constant dense<0.000000e+00> : vector<16x32xf32>
    %199 = tpu.matmul %196, %198, %cst_70 {dimension_numbers = #tpu.dot_dimension_numbers<[1], [0], [0], [1], [0, 0, 1, 1], [], []>} : vector<16x32xbf16>, vector<32x32xbf16>, vector<16x32xf32> -> vector<16x32xf32>
    %c0_71 = arith.constant 0 : index
    %c0_72 = arith.constant 0 : index
    %c0_73 = arith.constant 0 : index
    %200 = vector.load %arg13[%c0_71, %c0_72, %c0_73] : memref<2x1x32xf32, #tpu.memory_space<vmem>>, vector<1x1x32xf32>
    %201 = vector.shape_cast %200 : vector<1x1x32xf32> to vector<1x32xf32>
    %202 = vector.broadcast %201 : vector<1x32xf32> to vector<16x32xf32>
    %203 = arith.addf %199, %202 : vector<16x32xf32>
    %204 = arith.truncf %23 : vector<32x32xf32> to vector<32x32xbf16>
    %c0_74 = arith.constant 0 : index
    %c0_75 = arith.constant 0 : index
    %c0_76 = arith.constant 0 : index
    %205 = vector.load %arg14[%c0_74, %c0_75, %c0_76] : memref<2x32x64xbf16, #tpu.memory_space<vmem>>, vector<1x32x64xbf16>
    %206 = vector.shape_cast %205 : vector<1x32x64xbf16> to vector<32x64xbf16>
    %cst_77 = arith.constant dense<0.000000e+00> : vector<32x64xf32>
    %207 = tpu.matmul %204, %206, %cst_77 {dimension_numbers = #tpu.dot_dimension_numbers<[1], [0], [0], [1], [0, 0, 1, 1], [], []>} : vector<32x32xbf16>, vector<32x64xbf16>, vector<32x64xf32> -> vector<32x64xf32>
    %c0_78 = arith.constant 0 : index
    %c0_79 = arith.constant 0 : index
    %c0_80 = arith.constant 0 : index
    %208 = vector.load %arg15[%c0_78, %c0_79, %c0_80] : memref<2x1x64xf32, #tpu.memory_space<vmem>>, vector<1x1x64xf32>
    %209 = vector.shape_cast %208 : vector<1x1x64xf32> to vector<1x64xf32>
    %210 = vector.broadcast %209 : vector<1x64xf32> to vector<32x64xf32>
    %211 = arith.addf %207, %210 : vector<32x64xf32>
    %212 = vector.extract_strided_slice %211 {offsets = [0, 0], sizes = [32, 32], strides = [1, 1]} : vector<32x64xf32> to vector<32x32xf32>
    %213 = vector.extract_strided_slice %211 {offsets = [0, 32], sizes = [32, 32], strides = [1, 1]} : vector<32x64xf32> to vector<32x32xf32>
    %214 = vector.shape_cast %203 : vector<16x32xf32> to vector<2x8x32xf32>
    %215 = vector.shape_cast %212 : vector<32x32xf32> to vector<2x16x32xf32>
    %216 = vector.shape_cast %213 : vector<32x32xf32> to vector<2x16x32xf32>
    %217 = vector.extract_strided_slice %214 {offsets = [0, 0, 0], sizes = [2, 8, 8], strides = [1, 1, 1]} : vector<2x8x32xf32> to vector<2x8x8xf32>
    %218 = arith.truncf %217 : vector<2x8x8xf32> to vector<2x8x8xbf16>
    %219 = vector.extract_strided_slice %215 {offsets = [0, 0, 0], sizes = [2, 16, 8], strides = [1, 1, 1]} : vector<2x16x32xf32> to vector<2x16x8xf32>
    %220 = arith.truncf %219 : vector<2x16x8xf32> to vector<2x16x8xbf16>
    %221 = vector.extract_strided_slice %216 {offsets = [0, 0, 0], sizes = [2, 16, 8], strides = [1, 1, 1]} : vector<2x16x32xf32> to vector<2x16x8xf32>
    %222 = arith.truncf %221 : vector<2x16x8xf32> to vector<2x16x8xbf16>
    "tpu.trace_start"() <{level = 10 : i32, message = "btd,bsd->bts"}> : () -> ()
    %cst_81 = arith.constant dense<0.000000e+00> : vector<2x8x16xf32>
    %223 = tpu.matmul %218, %220, %cst_81 {dimension_numbers = #tpu.dot_dimension_numbers<[2], [2], [1], [1], [0, 0, 0, 1, 1, 1], [0], [0]>} : vector<2x8x8xbf16>, vector<2x16x8xbf16>, vector<2x8x16xf32> -> vector<2x8x16xf32>
    "tpu.trace_stop"() : () -> ()
    %cst_82 = arith.constant 0.353553385 : f32
    %224 = vector.broadcast %cst_82 : f32 to vector<2x8x16xf32>
    %225 = arith.mulf %223, %224 : vector<2x8x16xf32>
    %226 = arith.addf %225, %22 : vector<2x8x16xf32>
    %cst_83 = arith.constant dense<0xFF800000> : vector<2x8xf32>
    %227 = vector.multi_reduction <maximumf>, %226, %cst_83 [2] : vector<2x8x16xf32> to vector<2x8xf32>
    %228 = vector.shape_cast %227 : vector<2x8xf32> to vector<2x8x1xf32>
    %229 = vector.broadcast %228 : vector<2x8x1xf32> to vector<2x8x16xf32>
    %230 = arith.subf %226, %229 : vector<2x8x16xf32>
    %231 = math.exp %230 : vector<2x8x16xf32>
    %cst_84 = arith.constant dense<0.000000e+00> : vector<2x8xf32>
    %232 = vector.multi_reduction <add>, %231, %cst_84 [2] : vector<2x8x16xf32> to vector<2x8xf32>
    %233 = vector.shape_cast %232 : vector<2x8xf32> to vector<2x8x1xf32>
    %234 = tpu.reciprocal %233 {approx = true} : vector<2x8x1xf32> -> vector<2x8x1xf32>
    %235 = vector.broadcast %234 : vector<2x8x1xf32> to vector<2x8x16xf32>
    %236 = arith.mulf %231, %235 : vector<2x8x16xf32>
    %237 = arith.truncf %236 : vector<2x8x16xf32> to vector<2x8x16xbf16>
    "tpu.trace_start"() <{level = 10 : i32, message = "bts,bsd->btd"}> : () -> ()
    %cst_85 = arith.constant dense<0.000000e+00> : vector<2x8x8xf32>
    %238 = tpu.matmul %237, %222, %cst_85 {dimension_numbers = #tpu.dot_dimension_numbers<[2], [1], [1], [2], [0, 0, 0, 1, 1, 2], [0], [0]>} : vector<2x8x16xbf16>, vector<2x16x8xbf16>, vector<2x8x8xf32> -> vector<2x8x8xf32>
    "tpu.trace_stop"() : () -> ()
    %239 = vector.extract_strided_slice %214 {offsets = [0, 0, 8], sizes = [2, 8, 8], strides = [1, 1, 1]} : vector<2x8x32xf32> to vector<2x8x8xf32>
    %240 = arith.truncf %239 : vector<2x8x8xf32> to vector<2x8x8xbf16>
    %241 = vector.extract_strided_slice %215 {offsets = [0, 0, 8], sizes = [2, 16, 8], strides = [1, 1, 1]} : vector<2x16x32xf32> to vector<2x16x8xf32>
    %242 = arith.truncf %241 : vector<2x16x8xf32> to vector<2x16x8xbf16>
    %243 = vector.extract_strided_slice %216 {offsets = [0, 0, 8], sizes = [2, 16, 8], strides = [1, 1, 1]} : vector<2x16x32xf32> to vector<2x16x8xf32>
    %244 = arith.truncf %243 : vector<2x16x8xf32> to vector<2x16x8xbf16>
    "tpu.trace_start"() <{level = 10 : i32, message = "btd,bsd->bts"}> : () -> ()
    %cst_86 = arith.constant dense<0.000000e+00> : vector<2x8x16xf32>
    %245 = tpu.matmul %240, %242, %cst_86 {dimension_numbers = #tpu.dot_dimension_numbers<[2], [2], [1], [1], [0, 0, 0, 1, 1, 1], [0], [0]>} : vector<2x8x8xbf16>, vector<2x16x8xbf16>, vector<2x8x16xf32> -> vector<2x8x16xf32>
    "tpu.trace_stop"() : () -> ()
    %cst_87 = arith.constant 0.353553385 : f32
    %246 = vector.broadcast %cst_87 : f32 to vector<2x8x16xf32>
    %247 = arith.mulf %245, %246 : vector<2x8x16xf32>
    %248 = arith.addf %247, %22 : vector<2x8x16xf32>
    %cst_88 = arith.constant dense<0xFF800000> : vector<2x8xf32>
    %249 = vector.multi_reduction <maximumf>, %248, %cst_88 [2] : vector<2x8x16xf32> to vector<2x8xf32>
    %250 = vector.shape_cast %249 : vector<2x8xf32> to vector<2x8x1xf32>
    %251 = vector.broadcast %250 : vector<2x8x1xf32> to vector<2x8x16xf32>
    %252 = arith.subf %248, %251 : vector<2x8x16xf32>
    %253 = math.exp %252 : vector<2x8x16xf32>
    %cst_89 = arith.constant dense<0.000000e+00> : vector<2x8xf32>
    %254 = vector.multi_reduction <add>, %253, %cst_89 [2] : vector<2x8x16xf32> to vector<2x8xf32>
    %255 = vector.shape_cast %254 : vector<2x8xf32> to vector<2x8x1xf32>
    %256 = tpu.reciprocal %255 {approx = true} : vector<2x8x1xf32> -> vector<2x8x1xf32>
    %257 = vector.broadcast %256 : vector<2x8x1xf32> to vector<2x8x16xf32>
    %258 = arith.mulf %253, %257 : vector<2x8x16xf32>
    %259 = arith.truncf %258 : vector<2x8x16xf32> to vector<2x8x16xbf16>
    "tpu.trace_start"() <{level = 10 : i32, message = "bts,bsd->btd"}> : () -> ()
    %cst_90 = arith.constant dense<0.000000e+00> : vector<2x8x8xf32>
    %260 = tpu.matmul %259, %244, %cst_90 {dimension_numbers = #tpu.dot_dimension_numbers<[2], [1], [1], [2], [0, 0, 0, 1, 1, 2], [0], [0]>} : vector<2x8x16xbf16>, vector<2x16x8xbf16>, vector<2x8x8xf32> -> vector<2x8x8xf32>
    "tpu.trace_stop"() : () -> ()
    %261 = vector.extract_strided_slice %214 {offsets = [0, 0, 16], sizes = [2, 8, 8], strides = [1, 1, 1]} : vector<2x8x32xf32> to vector<2x8x8xf32>
    %262 = arith.truncf %261 : vector<2x8x8xf32> to vector<2x8x8xbf16>
    %263 = vector.extract_strided_slice %215 {offsets = [0, 0, 16], sizes = [2, 16, 8], strides = [1, 1, 1]} : vector<2x16x32xf32> to vector<2x16x8xf32>
    %264 = arith.truncf %263 : vector<2x16x8xf32> to vector<2x16x8xbf16>
    %265 = vector.extract_strided_slice %216 {offsets = [0, 0, 16], sizes = [2, 16, 8], strides = [1, 1, 1]} : vector<2x16x32xf32> to vector<2x16x8xf32>
    %266 = arith.truncf %265 : vector<2x16x8xf32> to vector<2x16x8xbf16>
    "tpu.trace_start"() <{level = 10 : i32, message = "btd,bsd->bts"}> : () -> ()
    %cst_91 = arith.constant dense<0.000000e+00> : vector<2x8x16xf32>
    %267 = tpu.matmul %262, %264, %cst_91 {dimension_numbers = #tpu.dot_dimension_numbers<[2], [2], [1], [1], [0, 0, 0, 1, 1, 1], [0], [0]>} : vector<2x8x8xbf16>, vector<2x16x8xbf16>, vector<2x8x16xf32> -> vector<2x8x16xf32>
    "tpu.trace_stop"() : () -> ()
    %cst_92 = arith.constant 0.353553385 : f32
    %268 = vector.broadcast %cst_92 : f32 to vector<2x8x16xf32>
    %269 = arith.mulf %267, %268 : vector<2x8x16xf32>
    %270 = arith.addf %269, %22 : vector<2x8x16xf32>
    %cst_93 = arith.constant dense<0xFF800000> : vector<2x8xf32>
    %271 = vector.multi_reduction <maximumf>, %270, %cst_93 [2] : vector<2x8x16xf32> to vector<2x8xf32>
    %272 = vector.shape_cast %271 : vector<2x8xf32> to vector<2x8x1xf32>
    %273 = vector.broadcast %272 : vector<2x8x1xf32> to vector<2x8x16xf32>
    %274 = arith.subf %270, %273 : vector<2x8x16xf32>
    %275 = math.exp %274 : vector<2x8x16xf32>
    %cst_94 = arith.constant dense<0.000000e+00> : vector<2x8xf32>
    %276 = vector.multi_reduction <add>, %275, %cst_94 [2] : vector<2x8x16xf32> to vector<2x8xf32>
    %277 = vector.shape_cast %276 : vector<2x8xf32> to vector<2x8x1xf32>
    %278 = tpu.reciprocal %277 {approx = true} : vector<2x8x1xf32> -> vector<2x8x1xf32>
    %279 = vector.broadcast %278 : vector<2x8x1xf32> to vector<2x8x16xf32>
    %280 = arith.mulf %275, %279 : vector<2x8x16xf32>
    %281 = arith.truncf %280 : vector<2x8x16xf32> to vector<2x8x16xbf16>
    "tpu.trace_start"() <{level = 10 : i32, message = "bts,bsd->btd"}> : () -> ()
    %cst_95 = arith.constant dense<0.000000e+00> : vector<2x8x8xf32>
    %282 = tpu.matmul %281, %266, %cst_95 {dimension_numbers = #tpu.dot_dimension_numbers<[2], [1], [1], [2], [0, 0, 0, 1, 1, 2], [0], [0]>} : vector<2x8x16xbf16>, vector<2x16x8xbf16>, vector<2x8x8xf32> -> vector<2x8x8xf32>
    "tpu.trace_stop"() : () -> ()
    %283 = vector.extract_strided_slice %214 {offsets = [0, 0, 24], sizes = [2, 8, 8], strides = [1, 1, 1]} : vector<2x8x32xf32> to vector<2x8x8xf32>
    %284 = arith.truncf %283 : vector<2x8x8xf32> to vector<2x8x8xbf16>
    %285 = vector.extract_strided_slice %215 {offsets = [0, 0, 24], sizes = [2, 16, 8], strides = [1, 1, 1]} : vector<2x16x32xf32> to vector<2x16x8xf32>
    %286 = arith.truncf %285 : vector<2x16x8xf32> to vector<2x16x8xbf16>
    %287 = vector.extract_strided_slice %216 {offsets = [0, 0, 24], sizes = [2, 16, 8], strides = [1, 1, 1]} : vector<2x16x32xf32> to vector<2x16x8xf32>
    %288 = arith.truncf %287 : vector<2x16x8xf32> to vector<2x16x8xbf16>
    "tpu.trace_start"() <{level = 10 : i32, message = "btd,bsd->bts"}> : () -> ()
    %cst_96 = arith.constant dense<0.000000e+00> : vector<2x8x16xf32>
    %289 = tpu.matmul %284, %286, %cst_96 {dimension_numbers = #tpu.dot_dimension_numbers<[2], [2], [1], [1], [0, 0, 0, 1, 1, 1], [0], [0]>} : vector<2x8x8xbf16>, vector<2x16x8xbf16>, vector<2x8x16xf32> -> vector<2x8x16xf32>
    "tpu.trace_stop"() : () -> ()
    %cst_97 = arith.constant 0.353553385 : f32
    %290 = vector.broadcast %cst_97 : f32 to vector<2x8x16xf32>
    %291 = arith.mulf %289, %290 : vector<2x8x16xf32>
    %292 = arith.addf %291, %22 : vector<2x8x16xf32>
    %cst_98 = arith.constant dense<0xFF800000> : vector<2x8xf32>
    %293 = vector.multi_reduction <maximumf>, %292, %cst_98 [2] : vector<2x8x16xf32> to vector<2x8xf32>
    %294 = vector.shape_cast %293 : vector<2x8xf32> to vector<2x8x1xf32>
    %295 = vector.broadcast %294 : vector<2x8x1xf32> to vector<2x8x16xf32>
    %296 = arith.subf %292, %295 : vector<2x8x16xf32>
    %297 = math.exp %296 : vector<2x8x16xf32>
    %cst_99 = arith.constant dense<0.000000e+00> : vector<2x8xf32>
    %298 = vector.multi_reduction <add>, %297, %cst_99 [2] : vector<2x8x16xf32> to vector<2x8xf32>
    %299 = vector.shape_cast %298 : vector<2x8xf32> to vector<2x8x1xf32>
    %300 = tpu.reciprocal %299 {approx = true} : vector<2x8x1xf32> -> vector<2x8x1xf32>
    %301 = vector.broadcast %300 : vector<2x8x1xf32> to vector<2x8x16xf32>
    %302 = arith.mulf %297, %301 : vector<2x8x16xf32>
    %303 = arith.truncf %302 : vector<2x8x16xf32> to vector<2x8x16xbf16>
    "tpu.trace_start"() <{level = 10 : i32, message = "bts,bsd->btd"}> : () -> ()
    %cst_100 = arith.constant dense<0.000000e+00> : vector<2x8x8xf32>
    %304 = tpu.matmul %303, %288, %cst_100 {dimension_numbers = #tpu.dot_dimension_numbers<[2], [1], [1], [2], [0, 0, 0, 1, 1, 2], [0], [0]>} : vector<2x8x16xbf16>, vector<2x16x8xbf16>, vector<2x8x8xf32> -> vector<2x8x8xf32>
    "tpu.trace_stop"() : () -> ()
    %305 = tpu.concatenate %238, %260, %282, %304 in 2 : vector<2x8x8xf32>, vector<2x8x8xf32>, vector<2x8x8xf32>, vector<2x8x8xf32> -> vector<2x8x32xf32>
    %306 = vector.shape_cast %305 : vector<2x8x32xf32> to vector<16x32xf32>
    %307 = arith.truncf %306 : vector<16x32xf32> to vector<16x32xbf16>
    %c0_101 = arith.constant 0 : index
    %c0_102 = arith.constant 0 : index
    %c0_103 = arith.constant 0 : index
    %308 = vector.load %arg16[%c0_101, %c0_102, %c0_103] : memref<2x32x32xbf16, #tpu.memory_space<vmem>>, vector<1x32x32xbf16>
    %309 = vector.shape_cast %308 : vector<1x32x32xbf16> to vector<32x32xbf16>
    %cst_104 = arith.constant dense<0.000000e+00> : vector<16x32xf32>
    %310 = tpu.matmul %307, %309, %cst_104 {dimension_numbers = #tpu.dot_dimension_numbers<[1], [0], [0], [1], [0, 0, 1, 1], [], []>} : vector<16x32xbf16>, vector<32x32xbf16>, vector<16x32xf32> -> vector<16x32xf32>
    %c0_105 = arith.constant 0 : index
    %c0_106 = arith.constant 0 : index
    %c0_107 = arith.constant 0 : index
    %311 = vector.load %arg17[%c0_105, %c0_106, %c0_107] : memref<2x1x32xf32, #tpu.memory_space<vmem>>, vector<1x1x32xf32>
    %312 = vector.shape_cast %311 : vector<1x1x32xf32> to vector<1x32xf32>
    %313 = vector.broadcast %312 : vector<1x32xf32> to vector<16x32xf32>
    %314 = arith.addf %310, %313 : vector<16x32xf32>
    %315 = arith.addf %314, %195 : vector<16x32xf32>
    %c0_108 = arith.constant 0 : index
    %c0_109 = arith.constant 0 : index
    %c0_110 = arith.constant 0 : index
    %316 = vector.load %arg18[%c0_108, %c0_109, %c0_110] : memref<2x1x32xf32, #tpu.memory_space<vmem>>, vector<1x1x32xf32>
    %317 = vector.shape_cast %316 : vector<1x1x32xf32> to vector<1x32xf32>
    %c0_111 = arith.constant 0 : index
    %c0_112 = arith.constant 0 : index
    %c0_113 = arith.constant 0 : index
    %318 = vector.load %arg19[%c0_111, %c0_112, %c0_113] : memref<2x1x32xf32, #tpu.memory_space<vmem>>, vector<1x1x32xf32>
    %319 = vector.shape_cast %318 : vector<1x1x32xf32> to vector<1x32xf32>
    %cst_114 = arith.constant dense<0.000000e+00> : vector<16xf32>
    %320 = vector.multi_reduction <add>, %315, %cst_114 [1] : vector<16x32xf32> to vector<16xf32>
    %321 = vector.shape_cast %320 : vector<16xf32> to vector<16x1xf32>
    %cst_115 = arith.constant 3.200000e+01 : f32
    %322 = vector.broadcast %cst_115 : f32 to vector<16x1xf32>
    %323 = arith.divf %321, %322 : vector<16x1xf32>
    %324 = vector.broadcast %323 : vector<16x1xf32> to vector<16x32xf32>
    %325 = arith.subf %315, %324 : vector<16x32xf32>
    %326 = vector.broadcast %323 : vector<16x1xf32> to vector<16x32xf32>
    %327 = arith.subf %315, %326 : vector<16x32xf32>
    %328 = arith.mulf %325, %327 : vector<16x32xf32>
    %cst_116 = arith.constant dense<0.000000e+00> : vector<16xf32>
    %329 = vector.multi_reduction <add>, %328, %cst_116 [1] : vector<16x32xf32> to vector<16xf32>
    %330 = vector.shape_cast %329 : vector<16xf32> to vector<16x1xf32>
    %cst_117 = arith.constant 3.200000e+01 : f32
    %331 = vector.broadcast %cst_117 : f32 to vector<16x1xf32>
    %332 = arith.divf %330, %331 : vector<16x1xf32>
    %333 = vector.broadcast %323 : vector<16x1xf32> to vector<16x32xf32>
    %334 = arith.subf %315, %333 : vector<16x32xf32>
    %cst_118 = arith.constant 9.99999996E-13 : f32
    %335 = vector.broadcast %cst_118 : f32 to vector<16x1xf32>
    %336 = arith.addf %332, %335 : vector<16x1xf32>
    %337 = math.rsqrt %336 : vector<16x1xf32>
    %338 = vector.broadcast %337 : vector<16x1xf32> to vector<16x32xf32>
    %339 = arith.mulf %334, %338 : vector<16x32xf32>
    %340 = vector.broadcast %317 : vector<1x32xf32> to vector<16x32xf32>
    %341 = arith.mulf %339, %340 : vector<16x32xf32>
    %342 = vector.broadcast %319 : vector<1x32xf32> to vector<16x32xf32>
    %343 = arith.addf %341, %342 : vector<16x32xf32>
    %344 = arith.truncf %343 : vector<16x32xf32> to vector<16x32xbf16>
    %c0_119 = arith.constant 0 : index
    %c0_120 = arith.constant 0 : index
    %c0_121 = arith.constant 0 : index
    %345 = vector.load %arg20[%c0_119, %c0_120, %c0_121] : memref<2x32x64xbf16, #tpu.memory_space<vmem>>, vector<1x32x64xbf16>
    %346 = vector.shape_cast %345 : vector<1x32x64xbf16> to vector<32x64xbf16>
    %cst_122 = arith.constant dense<0.000000e+00> : vector<16x64xf32>
    %347 = tpu.matmul %344, %346, %cst_122 {dimension_numbers = #tpu.dot_dimension_numbers<[1], [0], [0], [1], [0, 0, 1, 1], [], []>} : vector<16x32xbf16>, vector<32x64xbf16>, vector<16x64xf32> -> vector<16x64xf32>
    %c0_123 = arith.constant 0 : index
    %c0_124 = arith.constant 0 : index
    %c0_125 = arith.constant 0 : index
    %348 = vector.load %arg21[%c0_123, %c0_124, %c0_125] : memref<2x1x64xf32, #tpu.memory_space<vmem>>, vector<1x1x64xf32>
    %349 = vector.shape_cast %348 : vector<1x1x64xf32> to vector<1x64xf32>
    %350 = vector.broadcast %349 : vector<1x64xf32> to vector<16x64xf32>
    %351 = arith.addf %347, %350 : vector<16x64xf32>
    %352 = arith.mulf %351, %351 : vector<16x64xf32>
    %353 = arith.mulf %351, %352 : vector<16x64xf32>
    %cst_126 = arith.constant 4.471500e-02 : f32
    %354 = vector.broadcast %cst_126 : f32 to vector<16x64xf32>
    %355 = arith.mulf %354, %353 : vector<16x64xf32>
    %356 = arith.addf %351, %355 : vector<16x64xf32>
    %cst_127 = arith.constant 0.797884583 : f32
    %357 = vector.broadcast %cst_127 : f32 to vector<16x64xf32>
    %358 = arith.mulf %357, %356 : vector<16x64xf32>
    %359 = math.tanh %358 : vector<16x64xf32>
    %cst_128 = arith.constant 1.000000e+00 : f32
    %360 = vector.broadcast %cst_128 : f32 to vector<16x64xf32>
    %361 = arith.addf %360, %359 : vector<16x64xf32>
    %cst_129 = arith.constant 5.000000e-01 : f32
    %362 = vector.broadcast %cst_129 : f32 to vector<16x64xf32>
    %363 = arith.mulf %362, %361 : vector<16x64xf32>
    %364 = arith.mulf %351, %363 : vector<16x64xf32>
    %365 = arith.truncf %364 : vector<16x64xf32> to vector<16x64xbf16>
    %c0_130 = arith.constant 0 : index
    %c0_131 = arith.constant 0 : index
    %c0_132 = arith.constant 0 : index
    %366 = vector.load %arg22[%c0_130, %c0_131, %c0_132] : memref<2x64x32xbf16, #tpu.memory_space<vmem>>, vector<1x64x32xbf16>
    %367 = vector.shape_cast %366 : vector<1x64x32xbf16> to vector<64x32xbf16>
    %cst_133 = arith.constant dense<0.000000e+00> : vector<16x32xf32>
    %368 = tpu.matmul %365, %367, %cst_133 {dimension_numbers = #tpu.dot_dimension_numbers<[1], [0], [0], [1], [0, 0, 1, 1], [], []>} : vector<16x64xbf16>, vector<64x32xbf16>, vector<16x32xf32> -> vector<16x32xf32>
    %c0_134 = arith.constant 0 : index
    %c0_135 = arith.constant 0 : index
    %c0_136 = arith.constant 0 : index
    %369 = vector.load %arg23[%c0_134, %c0_135, %c0_136] : memref<2x1x32xf32, #tpu.memory_space<vmem>>, vector<1x1x32xf32>
    %370 = vector.shape_cast %369 : vector<1x1x32xf32> to vector<1x32xf32>
    %371 = vector.broadcast %370 : vector<1x32xf32> to vector<16x32xf32>
    %372 = arith.addf %368, %371 : vector<16x32xf32>
    %373 = arith.addf %372, %343 : vector<16x32xf32>
    %c0_137 = arith.constant 0 : index
    %c0_138 = arith.constant 0 : index
    %c0_139 = arith.constant 0 : index
    %374 = vector.load %arg24[%c0_137, %c0_138, %c0_139] : memref<2x1x32xf32, #tpu.memory_space<vmem>>, vector<1x1x32xf32>
    %375 = vector.shape_cast %374 : vector<1x1x32xf32> to vector<1x32xf32>
    %c0_140 = arith.constant 0 : index
    %c0_141 = arith.constant 0 : index
    %c0_142 = arith.constant 0 : index
    %376 = vector.load %arg25[%c0_140, %c0_141, %c0_142] : memref<2x1x32xf32, #tpu.memory_space<vmem>>, vector<1x1x32xf32>
    %377 = vector.shape_cast %376 : vector<1x1x32xf32> to vector<1x32xf32>
    %cst_143 = arith.constant dense<0.000000e+00> : vector<16xf32>
    %378 = vector.multi_reduction <add>, %373, %cst_143 [1] : vector<16x32xf32> to vector<16xf32>
    %379 = vector.shape_cast %378 : vector<16xf32> to vector<16x1xf32>
    %cst_144 = arith.constant 3.200000e+01 : f32
    %380 = vector.broadcast %cst_144 : f32 to vector<16x1xf32>
    %381 = arith.divf %379, %380 : vector<16x1xf32>
    %382 = vector.broadcast %381 : vector<16x1xf32> to vector<16x32xf32>
    %383 = arith.subf %373, %382 : vector<16x32xf32>
    %384 = vector.broadcast %381 : vector<16x1xf32> to vector<16x32xf32>
    %385 = arith.subf %373, %384 : vector<16x32xf32>
    %386 = arith.mulf %383, %385 : vector<16x32xf32>
    %cst_145 = arith.constant dense<0.000000e+00> : vector<16xf32>
    %387 = vector.multi_reduction <add>, %386, %cst_145 [1] : vector<16x32xf32> to vector<16xf32>
    %388 = vector.shape_cast %387 : vector<16xf32> to vector<16x1xf32>
    %cst_146 = arith.constant 3.200000e+01 : f32
    %389 = vector.broadcast %cst_146 : f32 to vector<16x1xf32>
    %390 = arith.divf %388, %389 : vector<16x1xf32>
    %391 = vector.broadcast %381 : vector<16x1xf32> to vector<16x32xf32>
    %392 = arith.subf %373, %391 : vector<16x32xf32>
    %cst_147 = arith.constant 9.99999996E-13 : f32
    %393 = vector.broadcast %cst_147 : f32 to vector<16x1xf32>
    %394 = arith.addf %390, %393 : vector<16x1xf32>
    %395 = math.rsqrt %394 : vector<16x1xf32>
    %396 = vector.broadcast %395 : vector<16x1xf32> to vector<16x32xf32>
    %397 = arith.mulf %392, %396 : vector<16x32xf32>
    %398 = vector.broadcast %375 : vector<1x32xf32> to vector<16x32xf32>
    %399 = arith.mulf %397, %398 : vector<16x32xf32>
    %400 = vector.broadcast %377 : vector<1x32xf32> to vector<16x32xf32>
    %401 = arith.addf %399, %400 : vector<16x32xf32>
    %402 = arith.truncf %401 : vector<16x32xf32> to vector<16x32xbf16>
    %c1 = arith.constant 1 : index
    %c0_148 = arith.constant 0 : index
    %c0_149 = arith.constant 0 : index
    %403 = vector.load %arg6[%c1, %c0_148, %c0_149] : memref<2x32x96xbf16, #tpu.memory_space<vmem>>, vector<1x32x96xbf16>
    %404 = vector.shape_cast %403 : vector<1x32x96xbf16> to vector<32x96xbf16>
    %cst_150 = arith.constant dense<0.000000e+00> : vector<16x96xf32>
    %405 = tpu.matmul %402, %404, %cst_150 {dimension_numbers = #tpu.dot_dimension_numbers<[1], [0], [0], [1], [0, 0, 1, 1], [], []>} : vector<16x32xbf16>, vector<32x96xbf16>, vector<16x96xf32> -> vector<16x96xf32>
    %c1_151 = arith.constant 1 : index
    %c0_152 = arith.constant 0 : index
    %c0_153 = arith.constant 0 : index
    %406 = vector.load %arg7[%c1_151, %c0_152, %c0_153] : memref<2x1x96xf32, #tpu.memory_space<vmem>>, vector<1x1x96xf32>
    %407 = vector.shape_cast %406 : vector<1x1x96xf32> to vector<1x96xf32>
    %408 = vector.broadcast %407 : vector<1x96xf32> to vector<16x96xf32>
    %409 = arith.addf %405, %408 : vector<16x96xf32>
    %410 = vector.extract_strided_slice %409 {offsets = [0, 0], sizes = [16, 32], strides = [1, 1]} : vector<16x96xf32> to vector<16x32xf32>
    %411 = vector.extract_strided_slice %409 {offsets = [0, 32], sizes = [16, 32], strides = [1, 1]} : vector<16x96xf32> to vector<16x32xf32>
    %412 = vector.extract_strided_slice %409 {offsets = [0, 64], sizes = [16, 32], strides = [1, 1]} : vector<16x96xf32> to vector<16x32xf32>
    %413 = vector.extract_strided_slice %409 {offsets = [0, 32], sizes = [16, 64], strides = [1, 1]} : vector<16x96xf32> to vector<16x64xf32>
    %c1_154 = arith.constant 1 : index
    %c0_155 = arith.constant 0 : index
    %c0_156 = arith.constant 0 : index
    %414 = vector.load %arg29[%c1_154, %c0_155, %c0_156] : memref<2x16x64xf32, #tpu.memory_space<vmem>>, vector<1x16x64xf32>
    %415 = vector.shape_cast %414 : vector<1x16x64xf32> to vector<16x64xf32>
    %416 = vector.shape_cast %413 : vector<16x64xf32> to vector<1x16x64xf32>
    tpu.vector_store %arg29[%c1_154, %c0_155, %c0_156], %416 {strides = array<i32>} : memref<2x16x64xf32, #tpu.memory_space<vmem>>, vector<1x16x64xf32>,
    %417 = vector.shape_cast %410 : vector<16x32xf32> to vector<2x8x32xf32>
    %418 = vector.shape_cast %411 : vector<16x32xf32> to vector<2x8x32xf32>
    %419 = vector.shape_cast %412 : vector<16x32xf32> to vector<2x8x32xf32>
    %420 = vector.extract_strided_slice %417 {offsets = [0, 0, 0], sizes = [2, 8, 8], strides = [1, 1, 1]} : vector<2x8x32xf32> to vector<2x8x8xf32>
    %421 = arith.truncf %420 : vector<2x8x8xf32> to vector<2x8x8xbf16>
    %422 = vector.extract_strided_slice %418 {offsets = [0, 0, 0], sizes = [2, 8, 8], strides = [1, 1, 1]} : vector<2x8x32xf32> to vector<2x8x8xf32>
    %423 = arith.truncf %422 : vector<2x8x8xf32> to vector<2x8x8xbf16>
    %424 = vector.extract_strided_slice %419 {offsets = [0, 0, 0], sizes = [2, 8, 8], strides = [1, 1, 1]} : vector<2x8x32xf32> to vector<2x8x8xf32>
    %425 = arith.truncf %424 : vector<2x8x8xf32> to vector<2x8x8xbf16>
    "tpu.trace_start"() <{level = 10 : i32, message = "btd,bsd->bts"}> : () -> ()
    %cst_157 = arith.constant dense<0.000000e+00> : vector<2x8x8xf32>
    %426 = tpu.matmul %421, %423, %cst_157 {dimension_numbers = #tpu.dot_dimension_numbers<[2], [2], [1], [1], [0, 0, 0, 1, 1, 1], [0], [0]>} : vector<2x8x8xbf16>, vector<2x8x8xbf16>, vector<2x8x8xf32> -> vector<2x8x8xf32>
    "tpu.trace_stop"() : () -> ()
    %cst_158 = arith.constant 0.353553385 : f32
    %427 = vector.broadcast %cst_158 : f32 to vector<2x8x8xf32>
    %428 = arith.mulf %426, %427 : vector<2x8x8xf32>
    %429 = arith.addf %428, %14 : vector<2x8x8xf32>
    %cst_159 = arith.constant dense<0xFF800000> : vector<2x8xf32>
    %430 = vector.multi_reduction <maximumf>, %429, %cst_159 [2] : vector<2x8x8xf32> to vector<2x8xf32>
    %431 = vector.shape_cast %430 : vector<2x8xf32> to vector<2x8x1xf32>
    %432 = vector.broadcast %431 : vector<2x8x1xf32> to vector<2x8x8xf32>
    %433 = arith.subf %429, %432 : vector<2x8x8xf32>
    %434 = math.exp %433 : vector<2x8x8xf32>
    %cst_160 = arith.constant dense<0.000000e+00> : vector<2x8xf32>
    %435 = vector.multi_reduction <add>, %434, %cst_160 [2] : vector<2x8x8xf32> to vector<2x8xf32>
    %436 = vector.shape_cast %435 : vector<2x8xf32> to vector<2x8x1xf32>
    %437 = tpu.reciprocal %436 {approx = true} : vector<2x8x1xf32> -> vector<2x8x1xf32>
    %438 = vector.broadcast %437 : vector<2x8x1xf32> to vector<2x8x8xf32>
    %439 = arith.mulf %434, %438 : vector<2x8x8xf32>
    %440 = arith.truncf %439 : vector<2x8x8xf32> to vector<2x8x8xbf16>
    "tpu.trace_start"() <{level = 10 : i32, message = "bts,bsd->btd"}> : () -> ()
    %cst_161 = arith.constant dense<0.000000e+00> : vector<2x8x8xf32>
    %441 = tpu.matmul %440, %425, %cst_161 {dimension_numbers = #tpu.dot_dimension_numbers<[2], [1], [1], [2], [0, 0, 0, 1, 1, 2], [0], [0]>} : vector<2x8x8xbf16>, vector<2x8x8xbf16>, vector<2x8x8xf32> -> vector<2x8x8xf32>
    "tpu.trace_stop"() : () -> ()
    %442 = vector.extract_strided_slice %417 {offsets = [0, 0, 8], sizes = [2, 8, 8], strides = [1, 1, 1]} : vector<2x8x32xf32> to vector<2x8x8xf32>
    %443 = arith.truncf %442 : vector<2x8x8xf32> to vector<2x8x8xbf16>
    %444 = vector.extract_strided_slice %418 {offsets = [0, 0, 8], sizes = [2, 8, 8], strides = [1, 1, 1]} : vector<2x8x32xf32> to vector<2x8x8xf32>
    %445 = arith.truncf %444 : vector<2x8x8xf32> to vector<2x8x8xbf16>
    %446 = vector.extract_strided_slice %419 {offsets = [0, 0, 8], sizes = [2, 8, 8], strides = [1, 1, 1]} : vector<2x8x32xf32> to vector<2x8x8xf32>
    %447 = arith.truncf %446 : vector<2x8x8xf32> to vector<2x8x8xbf16>
    "tpu.trace_start"() <{level = 10 : i32, message = "btd,bsd->bts"}> : () -> ()
    %cst_162 = arith.constant dense<0.000000e+00> : vector<2x8x8xf32>
    %448 = tpu.matmul %443, %445, %cst_162 {dimension_numbers = #tpu.dot_dimension_numbers<[2], [2], [1], [1], [0, 0, 0, 1, 1, 1], [0], [0]>} : vector<2x8x8xbf16>, vector<2x8x8xbf16>, vector<2x8x8xf32> -> vector<2x8x8xf32>
    "tpu.trace_stop"() : () -> ()
    %cst_163 = arith.constant 0.353553385 : f32
    %449 = vector.broadcast %cst_163 : f32 to vector<2x8x8xf32>
    %450 = arith.mulf %448, %449 : vector<2x8x8xf32>
    %451 = arith.addf %450, %14 : vector<2x8x8xf32>
    %cst_164 = arith.constant dense<0xFF800000> : vector<2x8xf32>
    %452 = vector.multi_reduction <maximumf>, %451, %cst_164 [2] : vector<2x8x8xf32> to vector<2x8xf32>
    %453 = vector.shape_cast %452 : vector<2x8xf32> to vector<2x8x1xf32>
    %454 = vector.broadcast %453 : vector<2x8x1xf32> to vector<2x8x8xf32>
    %455 = arith.subf %451, %454 : vector<2x8x8xf32>
    %456 = math.exp %455 : vector<2x8x8xf32>
    %cst_165 = arith.constant dense<0.000000e+00> : vector<2x8xf32>
    %457 = vector.multi_reduction <add>, %456, %cst_165 [2] : vector<2x8x8xf32> to vector<2x8xf32>
    %458 = vector.shape_cast %457 : vector<2x8xf32> to vector<2x8x1xf32>
    %459 = tpu.reciprocal %458 {approx = true} : vector<2x8x1xf32> -> vector<2x8x1xf32>
    %460 = vector.broadcast %459 : vector<2x8x1xf32> to vector<2x8x8xf32>
    %461 = arith.mulf %456, %460 : vector<2x8x8xf32>
    %462 = arith.truncf %461 : vector<2x8x8xf32> to vector<2x8x8xbf16>
    "tpu.trace_start"() <{level = 10 : i32, message = "bts,bsd->btd"}> : () -> ()
    %cst_166 = arith.constant dense<0.000000e+00> : vector<2x8x8xf32>
    %463 = tpu.matmul %462, %447, %cst_166 {dimension_numbers = #tpu.dot_dimension_numbers<[2], [1], [1], [2], [0, 0, 0, 1, 1, 2], [0], [0]>} : vector<2x8x8xbf16>, vector<2x8x8xbf16>, vector<2x8x8xf32> -> vector<2x8x8xf32>
    "tpu.trace_stop"() : () -> ()
    %464 = vector.extract_strided_slice %417 {offsets = [0, 0, 16], sizes = [2, 8, 8], strides = [1, 1, 1]} : vector<2x8x32xf32> to vector<2x8x8xf32>
    %465 = arith.truncf %464 : vector<2x8x8xf32> to vector<2x8x8xbf16>
    %466 = vector.extract_strided_slice %418 {offsets = [0, 0, 16], sizes = [2, 8, 8], strides = [1, 1, 1]} : vector<2x8x32xf32> to vector<2x8x8xf32>
    %467 = arith.truncf %466 : vector<2x8x8xf32> to vector<2x8x8xbf16>
    %468 = vector.extract_strided_slice %419 {offsets = [0, 0, 16], sizes = [2, 8, 8], strides = [1, 1, 1]} : vector<2x8x32xf32> to vector<2x8x8xf32>
    %469 = arith.truncf %468 : vector<2x8x8xf32> to vector<2x8x8xbf16>
    "tpu.trace_start"() <{level = 10 : i32, message = "btd,bsd->bts"}> : () -> ()
    %cst_167 = arith.constant dense<0.000000e+00> : vector<2x8x8xf32>
    %470 = tpu.matmul %465, %467, %cst_167 {dimension_numbers = #tpu.dot_dimension_numbers<[2], [2], [1], [1], [0, 0, 0, 1, 1, 1], [0], [0]>} : vector<2x8x8xbf16>, vector<2x8x8xbf16>, vector<2x8x8xf32> -> vector<2x8x8xf32>
    "tpu.trace_stop"() : () -> ()
    %cst_168 = arith.constant 0.353553385 : f32
    %471 = vector.broadcast %cst_168 : f32 to vector<2x8x8xf32>
    %472 = arith.mulf %470, %471 : vector<2x8x8xf32>
    %473 = arith.addf %472, %14 : vector<2x8x8xf32>
    %cst_169 = arith.constant dense<0xFF800000> : vector<2x8xf32>
    %474 = vector.multi_reduction <maximumf>, %473, %cst_169 [2] : vector<2x8x8xf32> to vector<2x8xf32>
    %475 = vector.shape_cast %474 : vector<2x8xf32> to vector<2x8x1xf32>
    %476 = vector.broadcast %475 : vector<2x8x1xf32> to vector<2x8x8xf32>
    %477 = arith.subf %473, %476 : vector<2x8x8xf32>
    %478 = math.exp %477 : vector<2x8x8xf32>
    %cst_170 = arith.constant dense<0.000000e+00> : vector<2x8xf32>
    %479 = vector.multi_reduction <add>, %478, %cst_170 [2] : vector<2x8x8xf32> to vector<2x8xf32>
    %480 = vector.shape_cast %479 : vector<2x8xf32> to vector<2x8x1xf32>
    %481 = tpu.reciprocal %480 {approx = true} : vector<2x8x1xf32> -> vector<2x8x1xf32>
    %482 = vector.broadcast %481 : vector<2x8x1xf32> to vector<2x8x8xf32>
    %483 = arith.mulf %478, %482 : vector<2x8x8xf32>
    %484 = arith.truncf %483 : vector<2x8x8xf32> to vector<2x8x8xbf16>
    "tpu.trace_start"() <{level = 10 : i32, message = "bts,bsd->btd"}> : () -> ()
    %cst_171 = arith.constant dense<0.000000e+00> : vector<2x8x8xf32>
    %485 = tpu.matmul %484, %469, %cst_171 {dimension_numbers = #tpu.dot_dimension_numbers<[2], [1], [1], [2], [0, 0, 0, 1, 1, 2], [0], [0]>} : vector<2x8x8xbf16>, vector<2x8x8xbf16>, vector<2x8x8xf32> -> vector<2x8x8xf32>
    "tpu.trace_stop"() : () -> ()
    %486 = vector.extract_strided_slice %417 {offsets = [0, 0, 24], sizes = [2, 8, 8], strides = [1, 1, 1]} : vector<2x8x32xf32> to vector<2x8x8xf32>
    %487 = arith.truncf %486 : vector<2x8x8xf32> to vector<2x8x8xbf16>
    %488 = vector.extract_strided_slice %418 {offsets = [0, 0, 24], sizes = [2, 8, 8], strides = [1, 1, 1]} : vector<2x8x32xf32> to vector<2x8x8xf32>
    %489 = arith.truncf %488 : vector<2x8x8xf32> to vector<2x8x8xbf16>
    %490 = vector.extract_strided_slice %419 {offsets = [0, 0, 24], sizes = [2, 8, 8], strides = [1, 1, 1]} : vector<2x8x32xf32> to vector<2x8x8xf32>
    %491 = arith.truncf %490 : vector<2x8x8xf32> to vector<2x8x8xbf16>
    "tpu.trace_start"() <{level = 10 : i32, message = "btd,bsd->bts"}> : () -> ()
    %cst_172 = arith.constant dense<0.000000e+00> : vector<2x8x8xf32>
    %492 = tpu.matmul %487, %489, %cst_172 {dimension_numbers = #tpu.dot_dimension_numbers<[2], [2], [1], [1], [0, 0, 0, 1, 1, 1], [0], [0]>} : vector<2x8x8xbf16>, vector<2x8x8xbf16>, vector<2x8x8xf32> -> vector<2x8x8xf32>
    "tpu.trace_stop"() : () -> ()
    %cst_173 = arith.constant 0.353553385 : f32
    %493 = vector.broadcast %cst_173 : f32 to vector<2x8x8xf32>
    %494 = arith.mulf %492, %493 : vector<2x8x8xf32>
    %495 = arith.addf %494, %14 : vector<2x8x8xf32>
    %cst_174 = arith.constant dense<0xFF800000> : vector<2x8xf32>
    %496 = vector.multi_reduction <maximumf>, %495, %cst_174 [2] : vector<2x8x8xf32> to vector<2x8xf32>
    %497 = vector.shape_cast %496 : vector<2x8xf32> to vector<2x8x1xf32>
    %498 = vector.broadcast %497 : vector<2x8x1xf32> to vector<2x8x8xf32>
    %499 = arith.subf %495, %498 : vector<2x8x8xf32>
    %500 = math.exp %499 : vector<2x8x8xf32>
    %cst_175 = arith.constant dense<0.000000e+00> : vector<2x8xf32>
    %501 = vector.multi_reduction <add>, %500, %cst_175 [2] : vector<2x8x8xf32> to vector<2x8xf32>
    %502 = vector.shape_cast %501 : vector<2x8xf32> to vector<2x8x1xf32>
    %503 = tpu.reciprocal %502 {approx = true} : vector<2x8x1xf32> -> vector<2x8x1xf32>
    %504 = vector.broadcast %503 : vector<2x8x1xf32> to vector<2x8x8xf32>
    %505 = arith.mulf %500, %504 : vector<2x8x8xf32>
    %506 = arith.truncf %505 : vector<2x8x8xf32> to vector<2x8x8xbf16>
    "tpu.trace_start"() <{level = 10 : i32, message = "bts,bsd->btd"}> : () -> ()
    %cst_176 = arith.constant dense<0.000000e+00> : vector<2x8x8xf32>
    %507 = tpu.matmul %506, %491, %cst_176 {dimension_numbers = #tpu.dot_dimension_numbers<[2], [1], [1], [2], [0, 0, 0, 1, 1, 2], [0], [0]>} : vector<2x8x8xbf16>, vector<2x8x8xbf16>, vector<2x8x8xf32> -> vector<2x8x8xf32>
    "tpu.trace_stop"() : () -> ()
    %508 = tpu.concatenate %441, %463, %485, %507 in 2 : vector<2x8x8xf32>, vector<2x8x8xf32>, vector<2x8x8xf32>, vector<2x8x8xf32> -> vector<2x8x32xf32>
    %509 = vector.shape_cast %508 : vector<2x8x32xf32> to vector<16x32xf32>
    %510 = arith.truncf %509 : vector<16x32xf32> to vector<16x32xbf16>
    %c1_177 = arith.constant 1 : index
    %c0_178 = arith.constant 0 : index
    %c0_179 = arith.constant 0 : index
    %511 = vector.load %arg8[%c1_177, %c0_178, %c0_179] : memref<2x32x32xbf16, #tpu.memory_space<vmem>>, vector<1x32x32xbf16>
    %512 = vector.shape_cast %511 : vector<1x32x32xbf16> to vector<32x32xbf16>
    %cst_180 = arith.constant dense<0.000000e+00> : vector<16x32xf32>
    %513 = tpu.matmul %510, %512, %cst_180 {dimension_numbers = #tpu.dot_dimension_numbers<[1], [0], [0], [1], [0, 0, 1, 1], [], []>} : vector<16x32xbf16>, vector<32x32xbf16>, vector<16x32xf32> -> vector<16x32xf32>
    %c1_181 = arith.constant 1 : index
    %c0_182 = arith.constant 0 : index
    %c0_183 = arith.constant 0 : index
    %514 = vector.load %arg9[%c1_181, %c0_182, %c0_183] : memref<2x1x32xf32, #tpu.memory_space<vmem>>, vector<1x1x32xf32>
    %515 = vector.shape_cast %514 : vector<1x1x32xf32> to vector<1x32xf32>
    %516 = vector.broadcast %515 : vector<1x32xf32> to vector<16x32xf32>
    %517 = arith.addf %513, %516 : vector<16x32xf32>
    %518 = arith.addf %517, %401 : vector<16x32xf32>
    %c1_184 = arith.constant 1 : index
    %c0_185 = arith.constant 0 : index
    %c0_186 = arith.constant 0 : index
    %519 = vector.load %arg10[%c1_184, %c0_185, %c0_186] : memref<2x1x32xf32, #tpu.memory_space<vmem>>, vector<1x1x32xf32>
    %520 = vector.shape_cast %519 : vector<1x1x32xf32> to vector<1x32xf32>
    %c1_187 = arith.constant 1 : index
    %c0_188 = arith.constant 0 : index
    %c0_189 = arith.constant 0 : index
    %521 = vector.load %arg11[%c1_187, %c0_188, %c0_189] : memref<2x1x32xf32, #tpu.memory_space<vmem>>, vector<1x1x32xf32>
    %522 = vector.shape_cast %521 : vector<1x1x32xf32> to vector<1x32xf32>
    %cst_190 = arith.constant dense<0.000000e+00> : vector<16xf32>
    %523 = vector.multi_reduction <add>, %518, %cst_190 [1] : vector<16x32xf32> to vector<16xf32>
    %524 = vector.shape_cast %523 : vector<16xf32> to vector<16x1xf32>
    %cst_191 = arith.constant 3.200000e+01 : f32
    %525 = vector.broadcast %cst_191 : f32 to vector<16x1xf32>
    %526 = arith.divf %524, %525 : vector<16x1xf32>
    %527 = vector.broadcast %526 : vector<16x1xf32> to vector<16x32xf32>
    %528 = arith.subf %518, %527 : vector<16x32xf32>
    %529 = vector.broadcast %526 : vector<16x1xf32> to vector<16x32xf32>
    %530 = arith.subf %518, %529 : vector<16x32xf32>
    %531 = arith.mulf %528, %530 : vector<16x32xf32>
    %cst_192 = arith.constant dense<0.000000e+00> : vector<16xf32>
    %532 = vector.multi_reduction <add>, %531, %cst_192 [1] : vector<16x32xf32> to vector<16xf32>
    %533 = vector.shape_cast %532 : vector<16xf32> to vector<16x1xf32>
    %cst_193 = arith.constant 3.200000e+01 : f32
    %534 = vector.broadcast %cst_193 : f32 to vector<16x1xf32>
    %535 = arith.divf %533, %534 : vector<16x1xf32>
    %536 = vector.broadcast %526 : vector<16x1xf32> to vector<16x32xf32>
    %537 = arith.subf %518, %536 : vector<16x32xf32>
    %cst_194 = arith.constant 9.99999996E-13 : f32
    %538 = vector.broadcast %cst_194 : f32 to vector<16x1xf32>
    %539 = arith.addf %535, %538 : vector<16x1xf32>
    %540 = math.rsqrt %539 : vector<16x1xf32>
    %541 = vector.broadcast %540 : vector<16x1xf32> to vector<16x32xf32>
    %542 = arith.mulf %537, %541 : vector<16x32xf32>
    %543 = vector.broadcast %520 : vector<1x32xf32> to vector<16x32xf32>
    %544 = arith.mulf %542, %543 : vector<16x32xf32>
    %545 = vector.broadcast %522 : vector<1x32xf32> to vector<16x32xf32>
    %546 = arith.addf %544, %545 : vector<16x32xf32>
    %547 = arith.truncf %546 : vector<16x32xf32> to vector<16x32xbf16>
    %c1_195 = arith.constant 1 : index
    %c0_196 = arith.constant 0 : index
    %c0_197 = arith.constant 0 : index
    %548 = vector.load %arg12[%c1_195, %c0_196, %c0_197] : memref<2x32x32xbf16, #tpu.memory_space<vmem>>, vector<1x32x32xbf16>
    %549 = vector.shape_cast %548 : vector<1x32x32xbf16> to vector<32x32xbf16>
    %cst_198 = arith.constant dense<0.000000e+00> : vector<16x32xf32>
    %550 = tpu.matmul %547, %549, %cst_198 {dimension_numbers = #tpu.dot_dimension_numbers<[1], [0], [0], [1], [0, 0, 1, 1], [], []>} : vector<16x32xbf16>, vector<32x32xbf16>, vector<16x32xf32> -> vector<16x32xf32>
    %c1_199 = arith.constant 1 : index
    %c0_200 = arith.constant 0 : index
    %c0_201 = arith.constant 0 : index
    %551 = vector.load %arg13[%c1_199, %c0_200, %c0_201] : memref<2x1x32xf32, #tpu.memory_space<vmem>>, vector<1x1x32xf32>
    %552 = vector.shape_cast %551 : vector<1x1x32xf32> to vector<1x32xf32>
    %553 = vector.broadcast %552 : vector<1x32xf32> to vector<16x32xf32>
    %554 = arith.addf %550, %553 : vector<16x32xf32>
    %555 = arith.truncf %23 : vector<32x32xf32> to vector<32x32xbf16>
    %c1_202 = arith.constant 1 : index
    %c0_203 = arith.constant 0 : index
    %c0_204 = arith.constant 0 : index
    %556 = vector.load %arg14[%c1_202, %c0_203, %c0_204] : memref<2x32x64xbf16, #tpu.memory_space<vmem>>, vector<1x32x64xbf16>
    %557 = vector.shape_cast %556 : vector<1x32x64xbf16> to vector<32x64xbf16>
    %cst_205 = arith.constant dense<0.000000e+00> : vector<32x64xf32>
    %558 = tpu.matmul %555, %557, %cst_205 {dimension_numbers = #tpu.dot_dimension_numbers<[1], [0], [0], [1], [0, 0, 1, 1], [], []>} : vector<32x32xbf16>, vector<32x64xbf16>, vector<32x64xf32> -> vector<32x64xf32>
    %c1_206 = arith.constant 1 : index
    %c0_207 = arith.constant 0 : index
    %c0_208 = arith.constant 0 : index
    %559 = vector.load %arg15[%c1_206, %c0_207, %c0_208] : memref<2x1x64xf32, #tpu.memory_space<vmem>>, vector<1x1x64xf32>
    %560 = vector.shape_cast %559 : vector<1x1x64xf32> to vector<1x64xf32>
    %561 = vector.broadcast %560 : vector<1x64xf32> to vector<32x64xf32>
    %562 = arith.addf %558, %561 : vector<32x64xf32>
    %563 = vector.extract_strided_slice %562 {offsets = [0, 0], sizes = [32, 32], strides = [1, 1]} : vector<32x64xf32> to vector<32x32xf32>
    %564 = vector.extract_strided_slice %562 {offsets = [0, 32], sizes = [32, 32], strides = [1, 1]} : vector<32x64xf32> to vector<32x32xf32>
    %565 = vector.shape_cast %554 : vector<16x32xf32> to vector<2x8x32xf32>
    %566 = vector.shape_cast %563 : vector<32x32xf32> to vector<2x16x32xf32>
    %567 = vector.shape_cast %564 : vector<32x32xf32> to vector<2x16x32xf32>
    %568 = vector.extract_strided_slice %565 {offsets = [0, 0, 0], sizes = [2, 8, 8], strides = [1, 1, 1]} : vector<2x8x32xf32> to vector<2x8x8xf32>
    %569 = arith.truncf %568 : vector<2x8x8xf32> to vector<2x8x8xbf16>
    %570 = vector.extract_strided_slice %566 {offsets = [0, 0, 0], sizes = [2, 16, 8], strides = [1, 1, 1]} : vector<2x16x32xf32> to vector<2x16x8xf32>
    %571 = arith.truncf %570 : vector<2x16x8xf32> to vector<2x16x8xbf16>
    %572 = vector.extract_strided_slice %567 {offsets = [0, 0, 0], sizes = [2, 16, 8], strides = [1, 1, 1]} : vector<2x16x32xf32> to vector<2x16x8xf32>
    %573 = arith.truncf %572 : vector<2x16x8xf32> to vector<2x16x8xbf16>
    "tpu.trace_start"() <{level = 10 : i32, message = "btd,bsd->bts"}> : () -> ()
    %cst_209 = arith.constant dense<0.000000e+00> : vector<2x8x16xf32>
    %574 = tpu.matmul %569, %571, %cst_209 {dimension_numbers = #tpu.dot_dimension_numbers<[2], [2], [1], [1], [0, 0, 0, 1, 1, 1], [0], [0]>} : vector<2x8x8xbf16>, vector<2x16x8xbf16>, vector<2x8x16xf32> -> vector<2x8x16xf32>
    "tpu.trace_stop"() : () -> ()
    %cst_210 = arith.constant 0.353553385 : f32
    %575 = vector.broadcast %cst_210 : f32 to vector<2x8x16xf32>
    %576 = arith.mulf %574, %575 : vector<2x8x16xf32>
    %577 = arith.addf %576, %22 : vector<2x8x16xf32>
    %cst_211 = arith.constant dense<0xFF800000> : vector<2x8xf32>
    %578 = vector.multi_reduction <maximumf>, %577, %cst_211 [2] : vector<2x8x16xf32> to vector<2x8xf32>
    %579 = vector.shape_cast %578 : vector<2x8xf32> to vector<2x8x1xf32>
    %580 = vector.broadcast %579 : vector<2x8x1xf32> to vector<2x8x16xf32>
    %581 = arith.subf %577, %580 : vector<2x8x16xf32>
    %582 = math.exp %581 : vector<2x8x16xf32>
    %cst_212 = arith.constant dense<0.000000e+00> : vector<2x8xf32>
    %583 = vector.multi_reduction <add>, %582, %cst_212 [2] : vector<2x8x16xf32> to vector<2x8xf32>
    %584 = vector.shape_cast %583 : vector<2x8xf32> to vector<2x8x1xf32>
    %585 = tpu.reciprocal %584 {approx = true} : vector<2x8x1xf32> -> vector<2x8x1xf32>
    %586 = vector.broadcast %585 : vector<2x8x1xf32> to vector<2x8x16xf32>
    %587 = arith.mulf %582, %586 : vector<2x8x16xf32>
    %588 = arith.truncf %587 : vector<2x8x16xf32> to vector<2x8x16xbf16>
    "tpu.trace_start"() <{level = 10 : i32, message = "bts,bsd->btd"}> : () -> ()
    %cst_213 = arith.constant dense<0.000000e+00> : vector<2x8x8xf32>
    %589 = tpu.matmul %588, %573, %cst_213 {dimension_numbers = #tpu.dot_dimension_numbers<[2], [1], [1], [2], [0, 0, 0, 1, 1, 2], [0], [0]>} : vector<2x8x16xbf16>, vector<2x16x8xbf16>, vector<2x8x8xf32> -> vector<2x8x8xf32>
    "tpu.trace_stop"() : () -> ()
    %590 = vector.extract_strided_slice %565 {offsets = [0, 0, 8], sizes = [2, 8, 8], strides = [1, 1, 1]} : vector<2x8x32xf32> to vector<2x8x8xf32>
    %591 = arith.truncf %590 : vector<2x8x8xf32> to vector<2x8x8xbf16>
    %592 = vector.extract_strided_slice %566 {offsets = [0, 0, 8], sizes = [2, 16, 8], strides = [1, 1, 1]} : vector<2x16x32xf32> to vector<2x16x8xf32>
    %593 = arith.truncf %592 : vector<2x16x8xf32> to vector<2x16x8xbf16>
    %594 = vector.extract_strided_slice %567 {offsets = [0, 0, 8], sizes = [2, 16, 8], strides = [1, 1, 1]} : vector<2x16x32xf32> to vector<2x16x8xf32>
    %595 = arith.truncf %594 : vector<2x16x8xf32> to vector<2x16x8xbf16>
    "tpu.trace_start"() <{level = 10 : i32, message = "btd,bsd->bts"}> : () -> ()
    %cst_214 = arith.constant dense<0.000000e+00> : vector<2x8x16xf32>
    %596 = tpu.matmul %591, %593, %cst_214 {dimension_numbers = #tpu.dot_dimension_numbers<[2], [2], [1], [1], [0, 0, 0, 1, 1, 1], [0], [0]>} : vector<2x8x8xbf16>, vector<2x16x8xbf16>, vector<2x8x16xf32> -> vector<2x8x16xf32>
    "tpu.trace_stop"() : () -> ()
    %cst_215 = arith.constant 0.353553385 : f32
    %597 = vector.broadcast %cst_215 : f32 to vector<2x8x16xf32>
    %598 = arith.mulf %596, %597 : vector<2x8x16xf32>
    %599 = arith.addf %598, %22 : vector<2x8x16xf32>
    %cst_216 = arith.constant dense<0xFF800000> : vector<2x8xf32>
    %600 = vector.multi_reduction <maximumf>, %599, %cst_216 [2] : vector<2x8x16xf32> to vector<2x8xf32>
    %601 = vector.shape_cast %600 : vector<2x8xf32> to vector<2x8x1xf32>
    %602 = vector.broadcast %601 : vector<2x8x1xf32> to vector<2x8x16xf32>
    %603 = arith.subf %599, %602 : vector<2x8x16xf32>
    %604 = math.exp %603 : vector<2x8x16xf32>
    %cst_217 = arith.constant dense<0.000000e+00> : vector<2x8xf32>
    %605 = vector.multi_reduction <add>, %604, %cst_217 [2] : vector<2x8x16xf32> to vector<2x8xf32>
    %606 = vector.shape_cast %605 : vector<2x8xf32> to vector<2x8x1xf32>
    %607 = tpu.reciprocal %606 {approx = true} : vector<2x8x1xf32> -> vector<2x8x1xf32>
    %608 = vector.broadcast %607 : vector<2x8x1xf32> to vector<2x8x16xf32>
    %609 = arith.mulf %604, %608 : vector<2x8x16xf32>
    %610 = arith.truncf %609 : vector<2x8x16xf32> to vector<2x8x16xbf16>
    "tpu.trace_start"() <{level = 10 : i32, message = "bts,bsd->btd"}> : () -> ()
    %cst_218 = arith.constant dense<0.000000e+00> : vector<2x8x8xf32>
    %611 = tpu.matmul %610, %595, %cst_218 {dimension_numbers = #tpu.dot_dimension_numbers<[2], [1], [1], [2], [0, 0, 0, 1, 1, 2], [0], [0]>} : vector<2x8x16xbf16>, vector<2x16x8xbf16>, vector<2x8x8xf32> -> vector<2x8x8xf32>
    "tpu.trace_stop"() : () -> ()
    %612 = vector.extract_strided_slice %565 {offsets = [0, 0, 16], sizes = [2, 8, 8], strides = [1, 1, 1]} : vector<2x8x32xf32> to vector<2x8x8xf32>
    %613 = arith.truncf %612 : vector<2x8x8xf32> to vector<2x8x8xbf16>
    %614 = vector.extract_strided_slice %566 {offsets = [0, 0, 16], sizes = [2, 16, 8], strides = [1, 1, 1]} : vector<2x16x32xf32> to vector<2x16x8xf32>
    %615 = arith.truncf %614 : vector<2x16x8xf32> to vector<2x16x8xbf16>
    %616 = vector.extract_strided_slice %567 {offsets = [0, 0, 16], sizes = [2, 16, 8], strides = [1, 1, 1]} : vector<2x16x32xf32> to vector<2x16x8xf32>
    %617 = arith.truncf %616 : vector<2x16x8xf32> to vector<2x16x8xbf16>
    "tpu.trace_start"() <{level = 10 : i32, message = "btd,bsd->bts"}> : () -> ()
    %cst_219 = arith.constant dense<0.000000e+00> : vector<2x8x16xf32>
    %618 = tpu.matmul %613, %615, %cst_219 {dimension_numbers = #tpu.dot_dimension_numbers<[2], [2], [1], [1], [0, 0, 0, 1, 1, 1], [0], [0]>} : vector<2x8x8xbf16>, vector<2x16x8xbf16>, vector<2x8x16xf32> -> vector<2x8x16xf32>
    "tpu.trace_stop"() : () -> ()
    %cst_220 = arith.constant 0.353553385 : f32
    %619 = vector.broadcast %cst_220 : f32 to vector<2x8x16xf32>
    %620 = arith.mulf %618, %619 : vector<2x8x16xf32>
    %621 = arith.addf %620, %22 : vector<2x8x16xf32>
    %cst_221 = arith.constant dense<0xFF800000> : vector<2x8xf32>
    %622 = vector.multi_reduction <maximumf>, %621, %cst_221 [2] : vector<2x8x16xf32> to vector<2x8xf32>
    %623 = vector.shape_cast %622 : vector<2x8xf32> to vector<2x8x1xf32>
    %624 = vector.broadcast %623 : vector<2x8x1xf32> to vector<2x8x16xf32>
    %625 = arith.subf %621, %624 : vector<2x8x16xf32>
    %626 = math.exp %625 : vector<2x8x16xf32>
    %cst_222 = arith.constant dense<0.000000e+00> : vector<2x8xf32>
    %627 = vector.multi_reduction <add>, %626, %cst_222 [2] : vector<2x8x16xf32> to vector<2x8xf32>
    %628 = vector.shape_cast %627 : vector<2x8xf32> to vector<2x8x1xf32>
    %629 = tpu.reciprocal %628 {approx = true} : vector<2x8x1xf32> -> vector<2x8x1xf32>
    %630 = vector.broadcast %629 : vector<2x8x1xf32> to vector<2x8x16xf32>
    %631 = arith.mulf %626, %630 : vector<2x8x16xf32>
    %632 = arith.truncf %631 : vector<2x8x16xf32> to vector<2x8x16xbf16>
    "tpu.trace_start"() <{level = 10 : i32, message = "bts,bsd->btd"}> : () -> ()
    %cst_223 = arith.constant dense<0.000000e+00> : vector<2x8x8xf32>
    %633 = tpu.matmul %632, %617, %cst_223 {dimension_numbers = #tpu.dot_dimension_numbers<[2], [1], [1], [2], [0, 0, 0, 1, 1, 2], [0], [0]>} : vector<2x8x16xbf16>, vector<2x16x8xbf16>, vector<2x8x8xf32> -> vector<2x8x8xf32>
    "tpu.trace_stop"() : () -> ()
    %634 = vector.extract_strided_slice %565 {offsets = [0, 0, 24], sizes = [2, 8, 8], strides = [1, 1, 1]} : vector<2x8x32xf32> to vector<2x8x8xf32>
    %635 = arith.truncf %634 : vector<2x8x8xf32> to vector<2x8x8xbf16>
    %636 = vector.extract_strided_slice %566 {offsets = [0, 0, 24], sizes = [2, 16, 8], strides = [1, 1, 1]} : vector<2x16x32xf32> to vector<2x16x8xf32>
    %637 = arith.truncf %636 : vector<2x16x8xf32> to vector<2x16x8xbf16>
    %638 = vector.extract_strided_slice %567 {offsets = [0, 0, 24], sizes = [2, 16, 8], strides = [1, 1, 1]} : vector<2x16x32xf32> to vector<2x16x8xf32>
    %639 = arith.truncf %638 : vector<2x16x8xf32> to vector<2x16x8xbf16>
    "tpu.trace_start"() <{level = 10 : i32, message = "btd,bsd->bts"}> : () -> ()
    %cst_224 = arith.constant dense<0.000000e+00> : vector<2x8x16xf32>
    %640 = tpu.matmul %635, %637, %cst_224 {dimension_numbers = #tpu.dot_dimension_numbers<[2], [2], [1], [1], [0, 0, 0, 1, 1, 1], [0], [0]>} : vector<2x8x8xbf16>, vector<2x16x8xbf16>, vector<2x8x16xf32> -> vector<2x8x16xf32>
    "tpu.trace_stop"() : () -> ()
    %cst_225 = arith.constant 0.353553385 : f32
    %641 = vector.broadcast %cst_225 : f32 to vector<2x8x16xf32>
    %642 = arith.mulf %640, %641 : vector<2x8x16xf32>
    %643 = arith.addf %642, %22 : vector<2x8x16xf32>
    %cst_226 = arith.constant dense<0xFF800000> : vector<2x8xf32>
    %644 = vector.multi_reduction <maximumf>, %643, %cst_226 [2] : vector<2x8x16xf32> to vector<2x8xf32>
    %645 = vector.shape_cast %644 : vector<2x8xf32> to vector<2x8x1xf32>
    %646 = vector.broadcast %645 : vector<2x8x1xf32> to vector<2x8x16xf32>
    %647 = arith.subf %643, %646 : vector<2x8x16xf32>
    %648 = math.exp %647 : vector<2x8x16xf32>
    %cst_227 = arith.constant dense<0.000000e+00> : vector<2x8xf32>
    %649 = vector.multi_reduction <add>, %648, %cst_227 [2] : vector<2x8x16xf32> to vector<2x8xf32>
    %650 = vector.shape_cast %649 : vector<2x8xf32> to vector<2x8x1xf32>
    %651 = tpu.reciprocal %650 {approx = true} : vector<2x8x1xf32> -> vector<2x8x1xf32>
    %652 = vector.broadcast %651 : vector<2x8x1xf32> to vector<2x8x16xf32>
    %653 = arith.mulf %648, %652 : vector<2x8x16xf32>
    %654 = arith.truncf %653 : vector<2x8x16xf32> to vector<2x8x16xbf16>
    "tpu.trace_start"() <{level = 10 : i32, message = "bts,bsd->btd"}> : () -> ()
    %cst_228 = arith.constant dense<0.000000e+00> : vector<2x8x8xf32>
    %655 = tpu.matmul %654, %639, %cst_228 {dimension_numbers = #tpu.dot_dimension_numbers<[2], [1], [1], [2], [0, 0, 0, 1, 1, 2], [0], [0]>} : vector<2x8x16xbf16>, vector<2x16x8xbf16>, vector<2x8x8xf32> -> vector<2x8x8xf32>
    "tpu.trace_stop"() : () -> ()
    %656 = tpu.concatenate %589, %611, %633, %655 in 2 : vector<2x8x8xf32>, vector<2x8x8xf32>, vector<2x8x8xf32>, vector<2x8x8xf32> -> vector<2x8x32xf32>
    %657 = vector.shape_cast %656 : vector<2x8x32xf32> to vector<16x32xf32>
    %658 = arith.truncf %657 : vector<16x32xf32> to vector<16x32xbf16>
    %c1_229 = arith.constant 1 : index
    %c0_230 = arith.constant 0 : index
    %c0_231 = arith.constant 0 : index
    %659 = vector.load %arg16[%c1_229, %c0_230, %c0_231] : memref<2x32x32xbf16, #tpu.memory_space<vmem>>, vector<1x32x32xbf16>
    %660 = vector.shape_cast %659 : vector<1x32x32xbf16> to vector<32x32xbf16>
    %cst_232 = arith.constant dense<0.000000e+00> : vector<16x32xf32>
    %661 = tpu.matmul %658, %660, %cst_232 {dimension_numbers = #tpu.dot_dimension_numbers<[1], [0], [0], [1], [0, 0, 1, 1], [], []>} : vector<16x32xbf16>, vector<32x32xbf16>, vector<16x32xf32> -> vector<16x32xf32>
    %c1_233 = arith.constant 1 : index
    %c0_234 = arith.constant 0 : index
    %c0_235 = arith.constant 0 : index
    %662 = vector.load %arg17[%c1_233, %c0_234, %c0_235] : memref<2x1x32xf32, #tpu.memory_space<vmem>>, vector<1x1x32xf32>
    %663 = vector.shape_cast %662 : vector<1x1x32xf32> to vector<1x32xf32>
    %664 = vector.broadcast %663 : vector<1x32xf32> to vector<16x32xf32>
    %665 = arith.addf %661, %664 : vector<16x32xf32>
    %666 = arith.addf %665, %546 : vector<16x32xf32>
    %c1_236 = arith.constant 1 : index
    %c0_237 = arith.constant 0 : index
    %c0_238 = arith.constant 0 : index
    %667 = vector.load %arg18[%c1_236, %c0_237, %c0_238] : memref<2x1x32xf32, #tpu.memory_space<vmem>>, vector<1x1x32xf32>
    %668 = vector.shape_cast %667 : vector<1x1x32xf32> to vector<1x32xf32>
    %c1_239 = arith.constant 1 : index
    %c0_240 = arith.constant 0 : index
    %c0_241 = arith.constant 0 : index
    %669 = vector.load %arg19[%c1_239, %c0_240, %c0_241] : memref<2x1x32xf32, #tpu.memory_space<vmem>>, vector<1x1x32xf32>
    %670 = vector.shape_cast %669 : vector<1x1x32xf32> to vector<1x32xf32>
    %cst_242 = arith.constant dense<0.000000e+00> : vector<16xf32>
    %671 = vector.multi_reduction <add>, %666, %cst_242 [1] : vector<16x32xf32> to vector<16xf32>
    %672 = vector.shape_cast %671 : vector<16xf32> to vector<16x1xf32>
    %cst_243 = arith.constant 3.200000e+01 : f32
    %673 = vector.broadcast %cst_243 : f32 to vector<16x1xf32>
    %674 = arith.divf %672, %673 : vector<16x1xf32>
    %675 = vector.broadcast %674 : vector<16x1xf32> to vector<16x32xf32>
    %676 = arith.subf %666, %675 : vector<16x32xf32>
    %677 = vector.broadcast %674 : vector<16x1xf32> to vector<16x32xf32>
    %678 = arith.subf %666, %677 : vector<16x32xf32>
    %679 = arith.mulf %676, %678 : vector<16x32xf32>
    %cst_244 = arith.constant dense<0.000000e+00> : vector<16xf32>
    %680 = vector.multi_reduction <add>, %679, %cst_244 [1] : vector<16x32xf32> to vector<16xf32>
    %681 = vector.shape_cast %680 : vector<16xf32> to vector<16x1xf32>
    %cst_245 = arith.constant 3.200000e+01 : f32
    %682 = vector.broadcast %cst_245 : f32 to vector<16x1xf32>
    %683 = arith.divf %681, %682 : vector<16x1xf32>
    %684 = vector.broadcast %674 : vector<16x1xf32> to vector<16x32xf32>
    %685 = arith.subf %666, %684 : vector<16x32xf32>
    %cst_246 = arith.constant 9.99999996E-13 : f32
    %686 = vector.broadcast %cst_246 : f32 to vector<16x1xf32>
    %687 = arith.addf %683, %686 : vector<16x1xf32>
    %688 = math.rsqrt %687 : vector<16x1xf32>
    %689 = vector.broadcast %688 : vector<16x1xf32> to vector<16x32xf32>
    %690 = arith.mulf %685, %689 : vector<16x32xf32>
    %691 = vector.broadcast %668 : vector<1x32xf32> to vector<16x32xf32>
    %692 = arith.mulf %690, %691 : vector<16x32xf32>
    %693 = vector.broadcast %670 : vector<1x32xf32> to vector<16x32xf32>
    %694 = arith.addf %692, %693 : vector<16x32xf32>
    %695 = arith.truncf %694 : vector<16x32xf32> to vector<16x32xbf16>
    %c1_247 = arith.constant 1 : index
    %c0_248 = arith.constant 0 : index
    %c0_249 = arith.constant 0 : index
    %696 = vector.load %arg20[%c1_247, %c0_248, %c0_249] : memref<2x32x64xbf16, #tpu.memory_space<vmem>>, vector<1x32x64xbf16>
    %697 = vector.shape_cast %696 : vector<1x32x64xbf16> to vector<32x64xbf16>
    %cst_250 = arith.constant dense<0.000000e+00> : vector<16x64xf32>
    %698 = tpu.matmul %695, %697, %cst_250 {dimension_numbers = #tpu.dot_dimension_numbers<[1], [0], [0], [1], [0, 0, 1, 1], [], []>} : vector<16x32xbf16>, vector<32x64xbf16>, vector<16x64xf32> -> vector<16x64xf32>
    %c1_251 = arith.constant 1 : index
    %c0_252 = arith.constant 0 : index
    %c0_253 = arith.constant 0 : index
    %699 = vector.load %arg21[%c1_251, %c0_252, %c0_253] : memref<2x1x64xf32, #tpu.memory_space<vmem>>, vector<1x1x64xf32>
    %700 = vector.shape_cast %699 : vector<1x1x64xf32> to vector<1x64xf32>
    %701 = vector.broadcast %700 : vector<1x64xf32> to vector<16x64xf32>
    %702 = arith.addf %698, %701 : vector<16x64xf32>
    %703 = arith.mulf %702, %702 : vector<16x64xf32>
    %704 = arith.mulf %702, %703 : vector<16x64xf32>
    %cst_254 = arith.constant 4.471500e-02 : f32
    %705 = vector.broadcast %cst_254 : f32 to vector<16x64xf32>
    %706 = arith.mulf %705, %704 : vector<16x64xf32>
    %707 = arith.addf %702, %706 : vector<16x64xf32>
    %cst_255 = arith.constant 0.797884583 : f32
    %708 = vector.broadcast %cst_255 : f32 to vector<16x64xf32>
    %709 = arith.mulf %708, %707 : vector<16x64xf32>
    %710 = math.tanh %709 : vector<16x64xf32>
    %cst_256 = arith.constant 1.000000e+00 : f32
    %711 = vector.broadcast %cst_256 : f32 to vector<16x64xf32>
    %712 = arith.addf %711, %710 : vector<16x64xf32>
    %cst_257 = arith.constant 5.000000e-01 : f32
    %713 = vector.broadcast %cst_257 : f32 to vector<16x64xf32>
    %714 = arith.mulf %713, %712 : vector<16x64xf32>
    %715 = arith.mulf %702, %714 : vector<16x64xf32>
    %716 = arith.truncf %715 : vector<16x64xf32> to vector<16x64xbf16>
    %c1_258 = arith.constant 1 : index
    %c0_259 = arith.constant 0 : index
    %c0_260 = arith.constant 0 : index
    %717 = vector.load %arg22[%c1_258, %c0_259, %c0_260] : memref<2x64x32xbf16, #tpu.memory_space<vmem>>, vector<1x64x32xbf16>
    %718 = vector.shape_cast %717 : vector<1x64x32xbf16> to vector<64x32xbf16>
    %cst_261 = arith.constant dense<0.000000e+00> : vector<16x32xf32>
    %719 = tpu.matmul %716, %718, %cst_261 {dimension_numbers = #tpu.dot_dimension_numbers<[1], [0], [0], [1], [0, 0, 1, 1], [], []>} : vector<16x64xbf16>, vector<64x32xbf16>, vector<16x32xf32> -> vector<16x32xf32>
    %c1_262 = arith.constant 1 : index
    %c0_263 = arith.constant 0 : index
    %c0_264 = arith.constant 0 : index
    %720 = vector.load %arg23[%c1_262, %c0_263, %c0_264] : memref<2x1x32xf32, #tpu.memory_space<vmem>>, vector<1x1x32xf32>
    %721 = vector.shape_cast %720 : vector<1x1x32xf32> to vector<1x32xf32>
    %722 = vector.broadcast %721 : vector<1x32xf32> to vector<16x32xf32>
    %723 = arith.addf %719, %722 : vector<16x32xf32>
    %724 = arith.addf %723, %694 : vector<16x32xf32>
    %c1_265 = arith.constant 1 : index
    %c0_266 = arith.constant 0 : index
    %c0_267 = arith.constant 0 : index
    %725 = vector.load %arg24[%c1_265, %c0_266, %c0_267] : memref<2x1x32xf32, #tpu.memory_space<vmem>>, vector<1x1x32xf32>
    %726 = vector.shape_cast %725 : vector<1x1x32xf32> to vector<1x32xf32>
    %c1_268 = arith.constant 1 : index
    %c0_269 = arith.constant 0 : index
    %c0_270 = arith.constant 0 : index
    %727 = vector.load %arg25[%c1_268, %c0_269, %c0_270] : memref<2x1x32xf32, #tpu.memory_space<vmem>>, vector<1x1x32xf32>
    %728 = vector.shape_cast %727 : vector<1x1x32xf32> to vector<1x32xf32>
    %cst_271 = arith.constant dense<0.000000e+00> : vector<16xf32>
    %729 = vector.multi_reduction <add>, %724, %cst_271 [1] : vector<16x32xf32> to vector<16xf32>
    %730 = vector.shape_cast %729 : vector<16xf32> to vector<16x1xf32>
    %cst_272 = arith.constant 3.200000e+01 : f32
    %731 = vector.broadcast %cst_272 : f32 to vector<16x1xf32>
    %732 = arith.divf %730, %731 : vector<16x1xf32>
    %733 = vector.broadcast %732 : vector<16x1xf32> to vector<16x32xf32>
    %734 = arith.subf %724, %733 : vector<16x32xf32>
    %735 = vector.broadcast %732 : vector<16x1xf32> to vector<16x32xf32>
    %736 = arith.subf %724, %735 : vector<16x32xf32>
    %737 = arith.mulf %734, %736 : vector<16x32xf32>
    %cst_273 = arith.constant dense<0.000000e+00> : vector<16xf32>
    %738 = vector.multi_reduction <add>, %737, %cst_273 [1] : vector<16x32xf32> to vector<16xf32>
    %739 = vector.shape_cast %738 : vector<16xf32> to vector<16x1xf32>
    %cst_274 = arith.constant 3.200000e+01 : f32
    %740 = vector.broadcast %cst_274 : f32 to vector<16x1xf32>
    %741 = arith.divf %739, %740 : vector<16x1xf32>
    %742 = vector.broadcast %732 : vector<16x1xf32> to vector<16x32xf32>
    %743 = arith.subf %724, %742 : vector<16x32xf32>
    %cst_275 = arith.constant 9.99999996E-13 : f32
    %744 = vector.broadcast %cst_275 : f32 to vector<16x1xf32>
    %745 = arith.addf %741, %744 : vector<16x1xf32>
    %746 = math.rsqrt %745 : vector<16x1xf32>
    %747 = vector.broadcast %746 : vector<16x1xf32> to vector<16x32xf32>
    %748 = arith.mulf %743, %747 : vector<16x32xf32>
    %749 = vector.broadcast %726 : vector<1x32xf32> to vector<16x32xf32>
    %750 = arith.mulf %748, %749 : vector<16x32xf32>
    %751 = vector.broadcast %728 : vector<1x32xf32> to vector<16x32xf32>
    %752 = arith.addf %750, %751 : vector<16x32xf32>
    %753 = arith.truncf %752 : vector<16x32xf32> to vector<16x32xbf16>
    %c0_276 = arith.constant 0 : index
    %c0_277 = arith.constant 0 : index
    %754 = vector.load %arg26[%c0_276, %c0_277] : memref<32x128xbf16, #tpu.memory_space<vmem>>, vector<32x128xbf16>
    %cst_278 = arith.constant dense<0.000000e+00> : vector<16x128xf32>
    %755 = tpu.matmul %753, %754, %cst_278 {dimension_numbers = #tpu.dot_dimension_numbers<[1], [0], [0], [1], [0, 0, 1, 1], [], []>} : vector<16x32xbf16>, vector<32x128xbf16>, vector<16x128xf32> -> vector<16x128xf32>
    %c0_279 = arith.constant 0 : index
    %c0_280 = arith.constant 0 : index
    %756 = vector.load %arg27[%c0_279, %c0_280] : memref<1x128xf32, #tpu.memory_space<vmem>>, vector<1x128xf32>
    %757 = vector.broadcast %756 : vector<1x128xf32> to vector<16x128xf32>
    %758 = arith.addf %755, %757 : vector<16x128xf32>
    %c0_281 = arith.constant 0 : index
    %c0_282 = arith.constant 0 : index
    %759 = vector.load %arg28[%c0_281, %c0_282] : memref<16x128xf32, #tpu.memory_space<vmem>>, vector<16x128xf32>
    tpu.vector_store %arg28[%c0_281, %c0_282], %758 {strides = array<i32>} : memref<16x128xf32, #tpu.memory_space<vmem>>, vector<16x128xf32>,
    return
  }
}

</mosaic_0001>

<bundles_post_ra>
// kernel: transformers_decoder_forward.1
= control target key start
LH: loop header
LB: loop body
LE: loop exit
PB: predicated region body
PF: predicated region fallthrough
CT: control target
= control target key end

     0   :  { %s3929_s6 = smov 1   ;;  %s3930_s10 = smov 2   ;;  %s4851_s0 = inlined_call_operand.smem [shape: u32[30], index: -1, kind: input, shape index: {}] }
   0x1   :  { %s3984_s5 = sld [smem:[%s4851_s0]]   ;;  %s3931_s14 = smov 3  }
   0x2   :  { %s3989_s9 = sld [smem:[%s4851_s0 + %s3929_s6]]   ;;  %s3932_s18 = smov 4  }
   0x3   :  { %s3994_s13 = sld [smem:[%s4851_s0 + %s3930_s10]]   ;;  %s3933_s22 = smov 5  }
   0x4   :  { %s3999_s17 = sld [smem:[%s4851_s0 + %s3931_s14]]   ;;  %s3934_s26 = smov 6  }
   0x5   :  { %s4004_s21 = sld [smem:[%s4851_s0 + %s3932_s18]]   ;;  %s3935_s30 = smov 7  }
   0x6   :  { %s4009_s25 = sld [smem:[%s4851_s0 + %s3933_s22]]   ;;  %s3936_s4 = smov 8  }
   0x7   :  { %s4014_s29 = sld [smem:[%s4851_s0 + %s3934_s26]]   ;;  %s3937_s10 = smov 9  }
   0x8   :  { %s4019_s3 = sld [smem:[%s4851_s0 + %s3935_s30]]   ;;  %s3938_s15 = smov 10  }
   0x9   :  { %s4024_s8 = sld [smem:[%s4851_s0 + %s3936_s4]]   ;;  %s3939_s20 = smov 11  }
   0xa   :  { %4879 = sst [smem:[#allocation5_spill]] %s3999_s17  ;;  %s3940_s26 = smov 12  }
   0xb   :  { %s4029_s14 = sld [smem:[%s4851_s0 + %s3937_s10]]   ;;  %s3941_s1 = smov 13  }
   0xc   :  { %s4034_s19 = sld [smem:[%s4851_s0 + %s3938_s15]]   ;;  %s3942_s7 = smov 14  }
   0xd   :  { %s4039_s24 = sld [smem:[%s4851_s0 + %s3939_s20]]   ;;  %s3943_s15 = smov 15  }
   0xe   :  { %s4044_s30 = sld [smem:[%s4851_s0 + %s3940_s26]]   ;;  %s3944_s22 = smov 16  }
   0xf   :  { %s4049_s6 = sld [smem:[%s4851_s0 + %s3941_s1]]   ;;  %s3945_s28 = smov 17  }
  0x10   :  { %s4054_s12 = sld [smem:[%s4851_s0 + %s3942_s7]]   ;;  %s3946_s7 = smov 18  }
  0x11   :  { %s4059_s20 = sld [smem:[%s4851_s0 + %s3943_s15]]   ;;  %s3947_s15 = smov 19  }
  0x12   :  { %s4064_s27 = sld [smem:[%s4851_s0 + %s3944_s22]]   ;;  %s3948_s22 = smov 20  }
  0x13   :  { %s4069_s4 = sld [smem:[%s4851_s0 + %s3945_s28]]   ;;  %s3949_s28 = smov 21  }
  0x14   :  { %s4074_s17 = sld [smem:[%s4851_s0 + %s3946_s7]]   ;;  %s3950_s7 = smov 22  }
  0x15   :  { %4880 = sst [smem:[#allocation6_spill]] %s4049_s6 }
  0x16   :  { %s4079_s6 = sld [smem:[%s4851_s0 + %s3947_s15]]   ;;  %s3951_s15 = smov 23  }
  0x18   :  { %4881 = sst [smem:[#allocation7_spill]] %s4064_s27 }
  0x19   :  { %4882 = sst [smem:[#allocation8_spill]] %s4069_s4 }
  0x1a   :  { %4883 = sst [smem:[#allocation9_spill]] %s4074_s17 }
  0x1b   :  { %s4084_s27 = sld [smem:[%s4851_s0 + %s3948_s22]]   ;;  %s3952_s22 = smov 24  }
  0x1c   :  { %4884 = sst [smem:[#allocation10_spill]] %s4079_s6 }
  0x1d   :  { %s4089_s4 = sld [smem:[%s4851_s0 + %s3949_s28]]   ;;  %s3953_s28 = smov 25  }
  0x1e   :  { %s4094_s17 = sld [smem:[%s4851_s0 + %s3950_s7]]   ;;  %s3954_s7 = smov 26  }
  0x1f   :  { %s4099_s6 = sld [smem:[%s4851_s0 + %s3951_s15]]   ;;  %s3955_s15 = smov 27  }
  0x21   :  { %4885 = sst [smem:[#allocation11_spill]] %s4084_s27 }
  0x22   :  { %s4104_s27 = sld [smem:[%s4851_s0 + %s3952_s22]]   ;;  %s3956_s22 = smov 28  }
  0x23   :  { %4886 = sst [smem:[#allocation12_spill]] %s4089_s4 }
  0x24   :  { %4887 = sst [smem:[#allocation13_spill]] %s4094_s17 }
  0x25   :  { %4888 = sst [smem:[#allocation14_spill]] %s4099_s6 }
  0x26   :  { %s4109_s4 = sld [smem:[%s4851_s0 + %s3953_s28]]   ;;  %s3957_s28 = smov 29  }
  0x27   :  { %s4114_s17 = sld [smem:[%s4851_s0 + %s3954_s7]]  }
  0x28   :  { %4889 = sst [smem:[#allocation15_spill]] %s4104_s27 }
  0x29   :  { %s4119_s6 = sld [smem:[%s4851_s0 + %s3955_s15]]  }
  0x2a   :  { %s4124_s27 = sld [smem:[%s4851_s0 + %s3956_s22]]  }
  0x2c   :  { %4890 = sst [smem:[#allocation16_spill]] %s4109_s4 }
  0x2d   :  { %s4129_s4 = sld [smem:[%s4851_s0 + %s3957_s28]]  }
  0x2e   :  { %v161_v0 = vld [vmem:[%s3984_s5] sm:$0xff]  ;;  %vm165_vm0 = vcmask 261120   ;;  %v162_v1 = vld [vmem:[%s3984_s5 + $0x8] sm:$0xff] }
  0x2f   :  { %v166_v2 = vsel %vm165_vm0, %v161_v0, 0.0  ;;  %v169_v3 = vsel %vm165_vm0, %v162_v1, 0.0 }
  0x30   :  { %167 = vadd.xlane.f32.xlu0 %v166_v2 }
  0x38   :  { %170 = vadd.xlane.f32.xlu0 %v169_v3 }
  0x39   :  { %65 = vsyncpa [#allocation3], 0  ;;  %v3958_v4 = vmov 32.0   ;;  %v3568_v21 = vld [vmem:[%s4014_s29 + $0x8] sm:$0xff]  ;;  %v3567_v23 = vld [vmem:[%s4014_s29] sm:$0xff]  ;;  %s3959_s0 = smov 88  }
  0x3a   :  { %3737 = vrcp.f32 %v3958_v4  ;;  %257 = vmatpush.bf16.msra.mxu0 %v3568_v21  ;;  %v3708_v42 = vld [vmem:[%s4004_s21] ss:$0 sm:$0xff]  ;;  %s3960_s5 = smov 96   ;;  %s3961_s21 = smov 80   ;;  %vm283_vm8 = vcmask 64512   ;;  %vm360_vm10 = vcmask 1043456  }
  0x3b   :  { %v3709_v47 = vld [vmem:[%s4009_s25] ss:$0 sm:$0xff]  ;;  %s3962_s25 = smov 112   ;;  %s4877_s7 = smov 72   ;;  %vm772_vm11 = vcmask 130048   ;;  %vm775_vm12 = vcmask 195584  }
  0x3c   :  { %v3710_v52 = vld [vmem:[%s4019_s3] ss:$0 sm:$0xff]  ;;  %s3964_s10 = smov 120   ;;  %s3965_s11 = smov 104  }
  0x3d   :  { %s4873_s15 = smov 56   ;;  %s4871_s16 = smov 48  }
  0x3e   :  { %258 = vmatpush.bf16.msra.mxu0 %v3567_v23  ;;  %s4869_s18 = smov 40   ;;  %s4867_s22 = smov 8  }
  0x3f   :  { %s4865_s23 = smov 16   ;;  %s4863_s26 = smov 24  }
  0x40   :  { %v3738_v5 = vpop.eup %3737  ;;  %s4892_s28 = sld [smem:[#allocation5_spill]] }
  0x41   :  { %v173_v6 = vmul.f32 32.0, %v3738_v5  ;;  %vm177_vm1 = vweird.f32 %v3738_v5  ;;  %s4893_s1 = sld [smem:[#allocation7_spill]] }
  0x42   :  { %s4894_s2 = sld [smem:[#allocation8_spill]] }
  0x43   :  { %v174_v7 = vsub.f32 1.0, %v173_v6 }
  0x45   :  { %v175_v8 = vmul.f32 %v3738_v5, %v174_v7 }
  0x47   :  { %v176_v9 = vadd.f32 %v3738_v5, %v175_v8 }
  0x49   :  { %v4135_v10 = vsel %vm177_vm1, %v3738_v5, %v176_v9 }
  0xa3   :  { %v168_v11 = vpop.xlane.xlu0 %167 }
  0xa4   :  { %v179_v12 = vmul.f32 %v4135_v10, %v168_v11 }
  0xa6   :  { %v181_v13 = vsub.f32 %v161_v0, %v179_v12 }
  0xa8   :  { %v183_v14 = vmul.f32 %v181_v13, %v181_v13 }
  0xaa   :  { %v185_v15 = vsel %vm165_vm0, %v183_v14, 0.0 }
  0xab   :  { %186 = vadd.xlane.f32.xlu1 %v185_v15  ;;  %v171_v16 = vpop.xlane.xlu0 %170 }
  0xac   :  { %v180_v17 = vmul.f32 %v4135_v10, %v171_v16 }
  0xae   :  { %v182_v18 = vsub.f32 %v162_v1, %v180_v17 }
  0xb0   :  { %v184_v19 = vmul.f32 %v182_v18, %v182_v18 }
  0xb2   :  { %v188_v20 = vsel %vm165_vm0, %v184_v19, 0.0 }
  0xb3   :  { %189 = vadd.xlane.f32.xlu1 %v188_v20 }
 0x11e   :  { %v187_v22 = vpop.xlane.xlu1 %186 }
 0x11f   :  { %v191_v24 = vmul.f32 %v187_v22, %v4135_v10  ;;  %v123_v22 = vlaneseq }
 0x121   :  { %v193_v25 = vadd.f32 1e-12, %v191_v24  ;;  %v124_v23 = vshrl.u32 %v123_v22, 7  ;;  %v126_v24 = vand.u32 127, %v123_v22 }
 0x123   :  { %3739 = vrsqrt.f32 %v193_v25  ;;  %vm201_vm3 = vweird.f32 %v193_v25  ;;  %vm127_vm9 = vcmp.le.s32.totalorder %v126_v24, %v124_v23 }
 0x126   :  { %v190_v26 = vpop.xlane.xlu1 %189 }
 0x127   :  { %v192_v27 = vmul.f32 %v190_v26, %v4135_v10 }
 0x129   :  { %v3740_v28 = vpop.eup %3739  ;;  %v194_v29 = vadd.f32 1e-12, %v192_v27  ;;  %v3966_v27 = vmov 0.0  }
 0x12a   :  { %v196_v30 = vmul.f32 %v3740_v28, %v193_v25  ;;  %vm202_vm2 = vweird.f32 %v3740_v28  ;;  %v130_v25 = vld [vmem:[%s3994_s13] sm:$0x3]  ;;  %s4875_s13 = smov 64  }
 0x12b   :  { %3741 = vrsqrt.f32 %v194_v29  ;;  %vm203_vm4 = vmor %vm201_vm3, %vm202_vm2  ;;  %vm211_vm6 = vweird.f32 %v194_v29  ;;  %v133_v26 = vperm.slane %v130_v25, 0 }
 0x12c   :  { %v197_v31 = vmul.f32 %v3740_v28, %v196_v30 }
 0x12e   :  { %v198_v32 = vmul.f32 0.5, %v197_v31  ;;  %v132_v31 = vrot.slane %v130_v25, 1 }
 0x130   :  { %v199_v33 = vsub.f32 1.5, %v198_v32 }
 0x131   :  { %v3742_v34 = vpop.eup %3741 }
 0x132   :  { %v200_v35 = vmul.f32 %v3740_v28, %v199_v33  ;;  %v206_v36 = vmul.f32 %v3742_v34, %v194_v29  ;;  %vm212_vm5 = vweird.f32 %v3742_v34 }
 0x133   :  { %vm213_vm7 = vmor %vm211_vm6, %vm212_vm5 }
 0x134   :  { %v207_v37 = vmul.f32 %v3742_v34, %v206_v36  ;;  %v204_v38 = vsel %vm203_vm4, %v3740_v28, %v200_v35  ;;  %v3302_v28 = vsel %vm127_vm9, 1.0, %v3966_v27  ;;  %v134_v35 = vperm.slane %v132_v31, 0 }
 0x135   :  { %v215_v41 = vmul.f32 %v204_v38, %v181_v13  ;;  %v137_v29 = vmul.f32 %v3302_v28, %v133_v26 }
 0x136   :  { %v208_v39 = vmul.f32 0.5, %v207_v37  ;;  %v138_v38 = vmul.f32 %v3302_v28, %v134_v35 }
 0x137   :  { %v220_v46 = vmul.f32 %v3708_v42, %v215_v41  ;;  %v139_v30 = vsub.f32 1.0, %v137_v29 }
 0x138   :  { %v209_v40 = vsub.f32 1.5, %v208_v39 }
 0x139   :  { %v4147_v49 = vadd.f32 %v3709_v47, %v220_v46  ;;  %v4212_v32 = vmul.f32 -1e+09, %v139_v30 }
 0x13a   :  { %v210_v43 = vmul.f32 %v3742_v34, %v209_v40  ;;  %v140_v40 = vsub.f32 1.0, %v138_v38 }
 0x13c   :  { %v214_v44 = vsel %vm213_vm7, %v3742_v34, %v210_v43  ;;  %v4216_v41 = vmul.f32 -1e+09, %v140_v40 }
 0x13d   :  { %v216_v45 = vmul.f32 %v214_v44, %v182_v18 }
 0x13f   :  { %v221_v48 = vmul.f32 %v3708_v42, %v216_v45 }
 0x141   :  { %v4149_v50 = vadd.f32 %v3709_v47, %v221_v48 }
 0x143   :  { %v227_v51 = vpack.c.bf16 %v4149_v50, %v4147_v49 }
 0x145   :  { %3311 = vmatmul.msk.bf16.vlgmr.msra.gmra.mxu0 %vm165_vm0, %v227_v51 }
 0x1c2   :  { %v260_v53 = vpop.f32.mrf.mxu0 }
 0x1c3   :  { %v4155_v54 = vadd.f32 %v3710_v52, %v260_v53 }
 0x1c5   :  { %v276_v55 = vpack.c.bf16 %v4155_v54, %v4155_v54 }
 0x1c7   :  { %v279_v56 = vunpack.c.l.b16 %v276_v55 }
 0x1c9   :  { %v4159_v57 = vpack.c.b16 %v279_v56, %v279_v56 }
 0x1ca   :  { %v262_v58 = vpop.f32.mrf.mxu0 }
 0x1cb   :  { %v4161_v59 = vadd.f32 %v3710_v52, %v262_v58  ;;  %400 = vrot.lane.b32.xlu0 %v4159_v57, %s3959_s0  ;;  %281 = vrot.lane.b32.xlu2 %v4159_v57, %s3960_s5 }
 0x1cd   :  { %v277_v60 = vpack.c.bf16 %v4161_v59, %v4161_v59 }
 0x1cf   :  { %v304_v61 = vunpack.c.l.b16 %v277_v60 }
 0x1d1   :  { %v4169_v62 = vpack.c.b16 %v304_v61, %v304_v61 }
 0x1d3   :  { %423 = vrot.lane.b32.xlu1 %v4169_v62, %s3959_s0  ;;  %539 = vrot.lane.b32.xlu0 %v4169_v62, %s3961_s21 }
 0x1d4   :  { %306 = vrot.lane.b32.xlu2 %v4169_v62, %s3960_s5 }
 0x1db   :  { %537 = vrot.lane.b32.xlu1 %v4169_v62, %s3962_s25  ;;  %632 = vrot.lane.b32.xlu0 %v4159_v57, %s4877_s7 }
 0x1dc   :  { %398 = vrot.lane.b32.xlu2 %v4159_v57, %s3964_s10 }
 0x1e3   :  { %630 = vrot.lane.b32.xlu1 %v4159_v57, %s3965_s11  ;;  %653 = vrot.lane.b32.xlu0 %v4169_v62, %s3965_s11 }
 0x1e4   :  { %421 = vrot.lane.b32.xlu2 %v4169_v62, %s3964_s10 }
 0x1ec   :  { %516 = vrot.lane.b32.xlu2 %v4159_v57, %s3961_s21 }
 0x1f4   :  { %514 = vrot.lane.b32.xlu2 %v4159_v57, %s3962_s25 }
 0x1fc   :  { %655 = vrot.lane.b32.xlu2 %v4169_v62, %s4877_s7 }
 0x225   :  { %v282_v63 = vpop.permute.xlu2 %281 }
 0x226   :  { %v288_v0 = vsel %vm283_vm8, %v282_v63, 0 }
 0x227   :  { %297 = vmatpush.bf16.xpose.msra.mxu1 %v288_v0 }
 0x22e   :  { %v307_v1 = vpop.permute.xlu2 %306  ;;  %3312 = vmatmul.msk.bf16.vlgmr.msra.gmra.mxu1 %vm283_vm8, %v276_v55 }
 0x22f   :  { %v312_v2 = vsel %vm283_vm8, %v307_v1, 0 }
 0x230   :  { %321 = vmatpush.bf16.xpose.msra.mxu2 %v312_v2 }
 0x236   :  { %v399_v3 = vpop.permute.xlu2 %398 }
 0x237   :  { %3313 = vmatmul.msk.bf16.vlgmr.msra.gmra.mxu2 %vm283_vm8, %v277_v60 }
 0x23d   :  { %v401_v4 = vpop.permute.xlu0 %400 }
 0x23e   :  { %v422_v5 = vpop.permute.xlu2 %421  ;;  %v406_v6 = vsel %vm283_vm8, %v401_v4, 0 }
 0x23f   :  { %415 = vmatpush.bf16.xpose.msrb.mxu0 %v406_v6 }
 0x245   :  { %v424_v7 = vpop.permute.xlu1 %423  ;;  %v540_v8 = vpop.permute.xlu0 %539 }
 0x246   :  { %v545_v9 = vsel %vm283_vm8, %v540_v8, 0  ;;  %v517_v11 = vpop.permute.xlu2 %516  ;;  %3316 = vmatmul.msk.bf16.vlgmr.msrb.gmra.mxu0 %vm283_vm8, %v399_v3  ;;  %v429_v12 = vsel %vm283_vm8, %v424_v7, 0 }
 0x247   :  { %v522_v13 = vsel %vm283_vm8, %v517_v11, 0  ;;  %438 = vmatpush.bf16.xpose.msrb.mxu1 %v429_v12 }
 0x248   :  { %531 = vmatpush.bf16.xpose.msra.mxu0 %v522_v13 }
 0x24d   :  { %v633_v14 = vpop.permute.xlu0 %632  ;;  %v538_v19 = vpop.permute.xlu1 %537 }
 0x24e   :  { %v638_v15 = vsel %vm283_vm8, %v633_v14, 0  ;;  %v515_v16 = vpop.permute.xlu2 %514  ;;  %3317 = vmatmul.msk.bf16.vlgmr.msrb.gmra.mxu1 %vm283_vm8, %v422_v5 }
 0x24f   :  { %554 = vmatpush.bf16.xpose.msra.mxu1 %v545_v9 }
 0x250   :  { %647 = vmatpush.bf16.xpose.msrb.mxu0 %v638_v15 }
 0x255   :  { %v631_v20 = vpop.permute.xlu1 %630  ;;  %v654_v21 = vpop.permute.xlu0 %653 }
 0x256   :  { %v656_v17 = vpop.permute.xlu2 %655  ;;  %3320 = vmatmul.msk.bf16.vlgmr.msra.gmra.mxu0 %vm283_vm8, %v515_v16 }
 0x257   :  { %v661_v18 = vsel %vm283_vm8, %v656_v17, 0 }
 0x258   :  { %670 = vmatpush.bf16.xpose.msrb.mxu1 %v661_v18 }
 0x25e   :  { %3321 = vmatmul.msk.bf16.vlgmr.msra.gmra.mxu1 %vm283_vm8, %v538_v19 }
 0x266   :  { %3324 = vmatmul.msk.bf16.vlgmr.msrb.gmra.mxu0 %vm283_vm8, %v631_v20 }
 0x26e   :  { %3325 = vmatmul.msk.bf16.vlgmr.msrb.gmra.mxu1 %vm283_vm8, %v654_v21 }
 0x2ab   :  { %v299_v33 = vpop.f32.mrf.mxu1 }
 0x2ac   :  { %v327_v34 = vmul.f32 0.35355338, %v299_v33 }
 0x2ae   :  { %v329_v36 = vadd.f32 %v327_v34, %v4212_v32 }
 0x2b0   :  { %v331_v37 = vsel %vm283_vm8, %v329_v36, -inf }
 0x2b1   :  { %332 = vmax.xlane.f32.xlu2 %v331_v37 }
 0x2b3   :  { %v301_v39 = vpop.f32.mrf.mxu1 }
 0x2ba   :  { %v323_v42 = vpop.f32.mrf.mxu2 }
 0x2bb   :  { %v328_v43 = vmul.f32 0.35355338, %v323_v42 }
 0x2bd   :  { %v330_v44 = vadd.f32 %v328_v43, %v4216_v41 }
 0x2bf   :  { %v334_v45 = vsel %vm283_vm8, %v330_v44, -inf }
 0x2c0   :  { %335 = vmax.xlane.f32.xlu1 %v334_v45 }
 0x2c2   :  { %v325_v46 = vpop.f32.mrf.mxu2 }
 0x2c3   :  { %v417_v47 = vpop.f32.mrf.mxu0 }
 0x2c4   :  { %v444_v48 = vmul.f32 0.35355338, %v417_v47 }
 0x2c6   :  { %v446_v51 = vadd.f32 %v444_v48, %v4212_v32 }
 0x2c8   :  { %v448_v52 = vsel %vm283_vm8, %v446_v51, -inf }
 0x2c9   :  { %449 = vmax.xlane.f32.xlu0 %v448_v52  ;;  %377 = vrot.lane.b32.xlu2 %v4169_v62, %s4875_s13 }
 0x2cb   :  { %v419_v53 = vpop.f32.mrf.mxu0  ;;  %v440_v55 = vpop.f32.mrf.mxu1 }
 0x2cc   :  { %v445_v3 = vmul.f32 0.35355338, %v440_v55 }
 0x2ce   :  { %v447_v5 = vadd.f32 %v445_v3, %v4216_v41 }
 0x2d0   :  { %v451_v7 = vsel %vm283_vm8, %v447_v5, -inf }
 0x2d1   :  { %493 = vrot.lane.b32.xlu2 %v4169_v62, %s4873_s15 }
 0x2d3   :  { %v442_v56 = vpop.f32.mrf.mxu1  ;;  %v533_v58 = vpop.f32.mrf.mxu0 }
 0x2d4   :  { %v560_v8 = vmul.f32 0.35355338, %v533_v58 }
 0x2d6   :  { %v562_v12 = vadd.f32 %v560_v8, %v4212_v32 }
 0x2d8   :  { %v564_v14 = vsel %vm283_vm8, %v562_v12, -inf }
 0x2d9   :  { %355 = vrot.lane.b32.xlu1 %v4159_v57, %s4875_s13  ;;  %s4902_s13 = sld [smem:[#allocation16_spill]] }
 0x2db   :  { %v535_v60 = vpop.f32.mrf.mxu0  ;;  %v556_v61 = vpop.f32.mrf.mxu1 }
 0x2dc   :  { %v561_v11 = vmul.f32 0.35355338, %v556_v61 }
 0x2dd   :  { %472 = vrot.lane.b32.xlu0 %v4159_v57, %s4873_s15  ;;  %s4901_s15 = sld [smem:[#allocation15_spill]] }
 0x2de   :  { %v563_v15 = vadd.f32 %v561_v11, %v4216_v41 }
 0x2e0   :  { %v567_v17 = vsel %vm283_vm8, %v563_v15, -inf }
 0x2e3   :  { %v558_v63 = vpop.f32.mrf.mxu1  ;;  %v649_v0 = vpop.f32.mrf.mxu0 }
 0x2e4   :  { %v676_v16 = vmul.f32 0.35355338, %v649_v0 }
 0x2e6   :  { %v678_v18 = vadd.f32 %v676_v16, %v4212_v32 }
 0x2e8   :  { %v680_v19 = vsel %vm283_vm8, %v678_v18, -inf }
 0x2eb   :  { %v651_v1 = vpop.f32.mrf.mxu0  ;;  %v672_v2 = vpop.f32.mrf.mxu1 }
 0x2ec   :  { %v677_v6 = vmul.f32 0.35355338, %v672_v2 }
 0x2ee   :  { %v4233_v9 = vadd.f32 %v677_v6, %v4216_v41 }
 0x2f0   :  { %v683_v13 = vsel %vm283_vm8, %v4233_v9, -inf }
 0x2f3   :  { %v674_v4 = vpop.f32.mrf.mxu1 }
 0x2fa   :  { %452 = vmax.xlane.f32.xlu2 %v451_v7 }
 0x302   :  { %684 = vmax.xlane.f32.xlu2 %v683_v13 }
 0x303   :  { %565 = vmax.xlane.f32.xlu1 %v564_v14 }
 0x307   :  { %568 = vmax.xlane.f32.xlu0 %v567_v17 }
 0x30f   :  { %681 = vmax.xlane.f32.xlu0 %v680_v19 }
 0x324   :  { %v333_v20 = vpop.xlane.xlu2 %332 }
 0x325   :  { %v337_v21 = vsub.f32 %v329_v36, %v333_v20 }
 0x327   :  { %v339_v22 = vmul.f32 1.442695, %v337_v21 }
 0x329   :  { %3743 = vpow2.f32 %v339_v22 }
 0x32c   :  { %v378_v34 = vpop.permute.xlu2 %377 }
 0x32d   :  { %v383_v38 = vsel %vm360_vm10, %v378_v34, 0 }
 0x32f   :  { %v4243_v23 = vpop.eup %3743 }
 0x330   :  { %v343_v24 = vsel %vm283_vm8, %v4243_v23, 0.0 }
 0x331   :  { %344 = vadd.xlane.f32.xlu2 %v343_v24 }
 0x333   :  { %v336_v25 = vpop.xlane.xlu1 %335 }
 0x334   :  { %v338_v28 = vsub.f32 %v330_v44, %v336_v25  ;;  %v494_v43 = vpop.permute.xlu2 %493 }
 0x336   :  { %v341_v30 = vmul.f32 1.442695, %v338_v28 }
 0x33c   :  { %v450_v26 = vpop.xlane.xlu0 %449 }
 0x33d   :  { %v454_v27 = vsub.f32 %v446_v51, %v450_v26 }
 0x33f   :  { %v456_v29 = vmul.f32 1.442695, %v454_v27 }
 0x341   :  { %3745 = vpow2.f32 %v456_v29 }
 0x342   :  { %3747 = vpow2.f32 %v341_v30 }
 0x347   :  { %v4247_v31 = vpop.eup %3745 }
 0x348   :  { %v460_v33 = vsel %vm283_vm8, %v4247_v31, 0.0  ;;  %v4254_v37 = vpop.eup %3747 }
 0x349   :  { %461 = vadd.xlane.f32.xlu0 %v460_v33  ;;  %609 = vrot.lane.b32.xlu2 %v4169_v62, %s4871_s16  ;;  %v346_v40 = vsel %vm283_vm8, %v4254_v37, 0.0 }
 0x34b   :  { %v356_v35 = vpop.permute.xlu1 %355 }
 0x34c   :  { %v362_v36 = vsel %vm360_vm10, %v356_v35, 0 }
 0x34d   :  { %371 = vmatpush.bf16.msra.mxu3 %v362_v36 }
 0x34f   :  { %v473_v39 = vpop.permute.xlu0 %472 }
 0x350   :  { %v478_v42 = vsel %vm360_vm10, %v473_v39, 0 }
 0x351   :  { %392 = vmatpush.bf16.msrb.mxu3 %v383_v38  ;;  %347 = vadd.xlane.f32.xlu0 %v346_v40 }
 0x352   :  { %487 = vmatpush.bf16.msrb.mxu2 %v478_v42 }
 0x36d   :  { %v453_v44 = vpop.xlane.xlu2 %452 }
 0x36e   :  { %v455_v45 = vsub.f32 %v447_v5, %v453_v44 }
 0x370   :  { %v458_v46 = vmul.f32 1.442695, %v455_v45 }
 0x372   :  { %3749 = vpow2.f32 %v458_v46 }
 0x375   :  { %v685_v6 = vpop.xlane.xlu2 %684 }
 0x376   :  { %v566_v47 = vpop.xlane.xlu1 %565  ;;  %v687_v11 = vsub.f32 %v4233_v9, %v685_v6 }
 0x377   :  { %v570_v48 = vsub.f32 %v562_v12, %v566_v47 }
 0x378   :  { %v3750_v51 = vpop.eup %3749  ;;  %v690_v14 = vmul.f32 1.442695, %v687_v11 }
 0x379   :  { %v572_v52 = vmul.f32 1.442695, %v570_v48  ;;  %v463_v53 = vsel %vm283_vm8, %v3750_v51, 0.0 }
 0x37a   :  { %v569_v55 = vpop.xlane.xlu0 %568  ;;  %464 = vadd.xlane.f32.xlu1 %v463_v53 }
 0x37b   :  { %3751 = vpow2.f32 %v572_v52  ;;  %v571_v56 = vsub.f32 %v563_v15, %v569_v55  ;;  %v499_v15 = vsel %vm360_vm10, %v494_v43, 0 }
 0x37d   :  { %v574_v58 = vmul.f32 1.442695, %v571_v56 }
 0x37f   :  { %3753 = vpow2.f32 %v574_v58 }
 0x381   :  { %v4261_v60 = vpop.eup %3751 }
 0x382   :  { %v682_v61 = vpop.xlane.xlu0 %681  ;;  %v576_v63 = vsel %vm283_vm8, %v4261_v60, 0.0 }
 0x383   :  { %v686_v0 = vsub.f32 %v678_v18, %v682_v61  ;;  %577 = vadd.xlane.f32.xlu2 %v576_v63 }
 0x385   :  { %v3754_v1 = vpop.eup %3753  ;;  %v688_v2 = vmul.f32 1.442695, %v686_v0 }
 0x386   :  { %v579_v3 = vsel %vm283_vm8, %v3754_v1, 0.0 }
 0x387   :  { %3755 = vpow2.f32 %v688_v2  ;;  %580 = vadd.xlane.f32.xlu0 %v579_v3 }
 0x38d   :  { %v4266_v4 = vpop.eup %3755 }
 0x38e   :  { %v692_v5 = vsel %vm283_vm8, %v4266_v4, 0.0 }
 0x38f   :  { %693 = vadd.xlane.f32.xlu0 %v692_v5 }
 0x393   :  { %588 = vrot.lane.b32.xlu1 %v4159_v57, %s4871_s16  ;;  %s4900_s16 = sld [smem:[#allocation14_spill]] }
 0x39b   :  { %725 = vrot.lane.b32.xlu2 %v4169_v62, %s4869_s18 }
 0x3a3   :  { %704 = vrot.lane.b32.xlu0 %v4159_v57, %s4869_s18  ;;  %s4899_s18 = sld [smem:[#allocation12_spill]] }
 0x3a4   :  { %v345_v7 = vpop.xlane.xlu2 %344 }
 0x3a5   :  { %3757 = vrcp.f32 %v345_v7 }
 0x3a6   :  { %3759 = vpow2.f32 %v690_v14 }
 0x3ab   :  { %v3758_v8 = vpop.eup %3757 }
 0x3ac   :  { %v351_v12 = vmul.f32 %v3758_v8, %v4243_v23  ;;  %v3760_v62 = vpop.eup %3759  ;;  %v610_v22 = vpop.permute.xlu2 %609 }
 0x3ad   :  { %v695_v17 = vsel %vm283_vm8, %v3760_v62, 0.0  ;;  %v615_v24 = vsel %vm360_vm10, %v610_v22, 0 }
 0x3ae   :  { %v353_v13 = vpack.c.bf16 %v351_v12, %v351_v12 }
 0x3b0   :  { %3314 = vmatmul.msk.bf16.vlgmr.msra.gmra.mxu3 %vm283_vm8, %v353_v13 }
 0x3b1   :  { %508 = vmatpush.bf16.msra.mxu3 %v499_v15 }
 0x3bc   :  { %v462_v16 = vpop.xlane.xlu0 %461 }
 0x3bd   :  { %3761 = vrcp.f32 %v462_v16  ;;  %696 = vadd.xlane.f32.xlu1 %v695_v17  ;;  %v3569_v16 = vld [vmem:[%s4024_s8] sm:$0xff] }
 0x3c3   :  { %v3762_v57 = vpop.eup %3761 }
 0x3c4   :  { %v348_v18 = vpop.xlane.xlu0 %347  ;;  %v468_v9 = vmul.f32 %v3762_v57, %v4247_v31 }
 0x3c5   :  { %3763 = vrcp.f32 %v348_v18 }
 0x3c6   :  { %v470_v19 = vpack.c.bf16 %v468_v9, %v468_v9 }
 0x3c8   :  { %3318 = vmatmul.msk.bf16.vlgmr.msrb.gmra.mxu2 %vm283_vm8, %v470_v19 }
 0x3cb   :  { %v3764_v20 = vpop.eup %3763 }
 0x3cc   :  { %v352_v21 = vmul.f32 %v3764_v20, %v4254_v37 }
 0x3ce   :  { %v354_v23 = vpack.c.bf16 %v352_v21, %v352_v21 }
 0x3d0   :  { %3315 = vmatmul.msk.bf16.vlgmr.msrb.gmra.mxu3 %vm283_vm8, %v354_v23 }
 0x3d1   :  { %624 = vmatpush.bf16.msrb.mxu3 %v615_v24 }
 0x3ed   :  { %v465_v25 = vpop.xlane.xlu1 %464 }
 0x3ee   :  { %3765 = vrcp.f32 %v465_v25 }
 0x3f4   :  { %v3766_v26 = vpop.eup %3765 }
 0x3f5   :  { %v469_v27 = vmul.f32 %v3766_v26, %v3750_v51 }
 0x3f6   :  { %v578_v28 = vpop.xlane.xlu2 %577 }
 0x3f7   :  { %v471_v29 = vpack.c.bf16 %v469_v27, %v469_v27  ;;  %3767 = vrcp.f32 %v578_v28 }
 0x3f9   :  { %3319 = vmatmul.msk.bf16.vlgmr.msra.gmra.mxu3 %vm283_vm8, %v471_v29 }
 0x3fa   :  { %v581_v30 = vpop.xlane.xlu0 %580 }
 0x3fb   :  { %3769 = vrcp.f32 %v581_v30 }
 0x3fd   :  { %v3768_v34 = vpop.eup %3767 }
 0x3fe   :  { %v726_v31 = vpop.permute.xlu2 %725  ;;  %v584_v37 = vmul.f32 %v3768_v34, %v4261_v60 }
 0x3ff   :  { %v731_v33 = vsel %vm360_vm10, %v726_v31, 0  ;;  %v3711_v31 = vld [vmem:[%s4029_s14] ss:$0 sm:$0xff] }
 0x400   :  { %740 = vmatpush.bf16.msra.mxu3 %v731_v33  ;;  %v586_v42 = vpack.c.bf16 %v584_v37, %v584_v37 }
 0x401   :  { %v3770_v35 = vpop.eup %3769 }
 0x402   :  { %v585_v36 = vmul.f32 %v3770_v35, %v3754_v1  ;;  %v694_v43 = vpop.xlane.xlu0 %693 }
 0x403   :  { %3771 = vrcp.f32 %v694_v43  ;;  %v3573_v43 = vld [vmem:[%s4054_s12] sm:$0xff] }
 0x404   :  { %v587_v40 = vpack.c.bf16 %v585_v36, %v585_v36 }
 0x405   :  { %v589_v38 = vpop.permute.xlu1 %588 }
 0x406   :  { %v594_v39 = vsel %vm360_vm10, %v589_v38, 0 }
 0x407   :  { %603 = vmatpush.bf16.msra.mxu2 %v594_v39 }
 0x409   :  { %3323 = vmatmul.msk.bf16.vlgmr.msrb.gmra.mxu3 %vm283_vm8, %v587_v40  ;;  %v3772_v44 = vpop.eup %3771 }
 0x40a   :  { %3322 = vmatmul.msk.bf16.vlgmr.msra.gmra.mxu2 %vm283_vm8, %v586_v42  ;;  %v700_v45 = vmul.f32 %v3772_v44, %v4266_v4  ;;  %v3574_v42 = vld [vmem:[%s4054_s12 + $0x8] sm:$0xff]  ;;  %v157_v44 = vld [vmem:[%s3989_s9] sm:$0xff] }
 0x40c   :  { %v702_v48 = vpack.c.bf16 %v700_v45, %v700_v45  ;;  %v158_v45 = vld [vmem:[%s3989_s9 + $0x8] sm:$0xff] }
 0x415   :  { %v705_v46 = vpop.permute.xlu0 %704 }
 0x416   :  { %v710_v47 = vsel %vm360_vm10, %v705_v46, 0  ;;  %v4317_v46 = vpack.c.bf16 %v158_v45, %v157_v44 }
 0x417   :  { %719 = vmatpush.bf16.msrb.mxu2 %v710_v47 }
 0x41a   :  { %3326 = vmatmul.msk.bf16.vlgmr.msrb.gmra.mxu2 %vm283_vm8, %v702_v48  ;;  %v159_v48 = vld [vmem:[%s3989_s9 + $0x10] sm:$0xff] }
 0x41b   :  { %946 = vmatpush.bf16.msra.mxu2 %v3574_v42 }
 0x41f   :  { %947 = vmatpush.bf16.msra.mxu2 %v3573_v43 }
 0x42a   :  { %3354 = vmatmul.msk.bf16.vlgmr.msra.gmra.mxu2 %vm165_vm0, %v4317_v46 }
 0x430   :  { %v697_v51 = vpop.xlane.xlu1 %696 }
 0x431   :  { %3773 = vrcp.f32 %v697_v51 }
 0x433   :  { %v373_v52 = vpop.f32.mrf.mxu3 }
 0x437   :  { %v3774_v53 = vpop.eup %3773 }
 0x438   :  { %v701_v55 = vmul.f32 %v3774_v53, %v3760_v62  ;;  %v3570_v62 = vld [vmem:[%s4024_s8 + $0x8] sm:$0xff] }
 0x439   :  { %808 = vmatpush.bf16.msra.mxu0 %v3570_v62 }
 0x43a   :  { %v703_v56 = vpack.c.bf16 %v701_v55, %v701_v55 }
 0x43b   :  { %v375_v58 = vpop.f32.mrf.mxu3 }
 0x43c   :  { %3327 = vmatmul.msk.bf16.vlgmr.msra.gmra.mxu3 %vm283_vm8, %v703_v56 }
 0x43d   :  { %809 = vmatpush.bf16.msra.mxu0 %v3569_v16 }
 0x44b   :  { %v489_v60 = vpop.f32.mrf.mxu2 }
 0x453   :  { %v394_v61 = vpop.f32.mrf.mxu3  ;;  %v491_v63 = vpop.f32.mrf.mxu2 }
 0x45b   :  { %v396_v0 = vpop.f32.mrf.mxu3 }
 0x45c   :  { %v3572_v0 = vld [vmem:[%s4044_s30 + $0x8] sm:$0xff] }
 0x45d   :  { %904 = vmatpush.bf16.msra.mxu1 %v3572_v0 }
 0x47c   :  { %v510_v1 = vpop.f32.mrf.mxu3 }
 0x47d   :  { %v3648_v2 = vpack.i.bf16 %v510_v1, %v489_v60 }
 0x47f   :  { %3649 = vrot.lane.b32.xlu0 %v3648_v2, %s4867_s22 }
 0x484   :  { %v512_v3 = vpop.f32.mrf.mxu3 }
 0x48c   :  { %v626_v4 = vpop.f32.mrf.mxu3 }
 0x48d   :  { %v605_v5 = vpop.f32.mrf.mxu2 }
 0x48e   :  { %v3653_v6 = vpack.i.bf16 %v626_v4, %v605_v5  ;;  %v3571_v4 = vld [vmem:[%s4044_s30] sm:$0xff] }
 0x48f   :  { %905 = vmatpush.bf16.msra.mxu1 %v3571_v4 }
 0x490   :  { %3654 = vrot.lane.b32.xlu2 %v3653_v6, %s4865_s23 }
 0x494   :  { %v628_v7 = vpop.f32.mrf.mxu3 }
 0x495   :  { %v607_v8 = vpop.f32.mrf.mxu2  ;;  %v3714_v7 = vld [vmem:[%s4059_s20] ss:$0 sm:$0xff] }
 0x49d   :  { %v721_v11 = vpop.f32.mrf.mxu2 }
 0x4a5   :  { %v723_v12 = vpop.f32.mrf.mxu2 }
 0x4ad   :  { %v949_v5 = vpop.f32.mrf.mxu2 }
 0x4b5   :  { %v951_v16 = vpop.f32.mrf.mxu2 }
 0x4bf   :  { %v742_v13 = vpop.f32.mrf.mxu3 }
 0x4c0   :  { %v3658_v14 = vpack.i.bf16 %v742_v13, %v721_v11  ;;  %v950_v11 = vadd.f32 %v3714_v7, %v949_v5 }
 0x4c2   :  { %3659 = vrot.lane.b32.xlu0 %v3658_v14, %s4863_s26  ;;  %v961_v62 = vpack.c.bf16 %v950_v11, %v950_v11 }
 0x4c7   :  { %v744_v15 = vpop.f32.mrf.mxu3 }
 0x4ea   :  { %v3655_v9 = vpop.permute.xlu2 %3654 }
 0x4eb   :  { %v3657_v21 = vunpack.i.h.bf16 %v3655_v9  ;;  %v3656_v22 = vunpack.i.l.bf16 %v3655_v9  ;;  %v967_v9 = vunpack.c.l.b16 %v961_v62 }
 0x4f1   :  { %v3650_v17 = vpop.permute.xlu0 %3649 }
 0x4f2   :  { %v3652_v57 = vunpack.i.h.bf16 %v3650_v17  ;;  %v3651_v18 = vunpack.i.l.bf16 %v3650_v17 }
 0x4f4   :  { %v771_v19 = vsel %vm283_vm8, %v394_v61, %v3652_v57  ;;  %v770_v20 = vsel %vm283_vm8, %v373_v52, %v3651_v18  ;;  %v952_v57 = vadd.f32 %v3714_v7, %v951_v16 }
 0x4f5   :  { %v773_v26 = vsel %vm772_vm11, %v770_v20, %v3656_v22  ;;  %v774_v27 = vsel %vm772_vm11, %v771_v19, %v3657_v21 }
 0x4f6   :  { %v962_v19 = vpack.c.bf16 %v952_v57, %v952_v57 }
 0x534   :  { %v3660_v23 = vpop.permute.xlu0 %3659 }
 0x535   :  { %v3662_v24 = vunpack.i.h.bf16 %v3660_v23  ;;  %v3661_v25 = vunpack.i.l.bf16 %v3660_v23  ;;  %v968_v23 = vunpack.c.l.b16 %v962_v19 }
 0x537   :  { %v776_v28 = vsel %vm775_vm12, %v773_v26, %v3661_v25  ;;  %v777_v29 = vsel %vm775_vm12, %v774_v27, %v3662_v24  ;;  %v4336_v25 = vpack.c.b16 %v968_v23, %v967_v9 }
 0x538   :  { %v778_v30 = vpack.c.bf16 %v777_v29, %v776_v28 }
 0x539   :  { %v974_v29 = vsel %vm283_vm8, %v4336_v25, 0 }
 0x53a   :  { %3336 = vmatmul.msk.bf16.vlgmr.msra.gmra.mxu0 %vm165_vm0, %v778_v30  ;;  %983 = vmatpush.bf16.xpose.msrb.mxu3 %v974_v29 }
 0x5b7   :  { %v811_v33 = vpop.f32.mrf.mxu0 }
 0x5b8   :  { %v812_v34 = vadd.f32 %v3711_v31, %v811_v33  ;;  %v3712_v33 = vld [vmem:[%s4034_s19] ss:$0 sm:$0xff] }
 0x5ba   :  { %v816_v35 = vadd.f32 %v812_v34, %v4147_v49 }
 0x5bc   :  { %v820_v36 = vsel %vm165_vm0, %v816_v35, 0.0 }
 0x5bd   :  { %821 = vadd.xlane.f32.xlu2 %v820_v36 }
 0x5bf   :  { %v813_v37 = vpop.f32.mrf.mxu0 }
 0x5c0   :  { %v814_v38 = vadd.f32 %v3711_v31, %v813_v37 }
 0x5c2   :  { %v817_v39 = vadd.f32 %v814_v38, %v4149_v50  ;;  %v160_v50 = vld [vmem:[%s3989_s9 + $0x18] sm:$0xff]  ;;  %v3713_v38 = vld [vmem:[%s4039_s24] ss:$0 sm:$0xff]  ;;  %s4891_s9 = sld [smem:[#allocation6_spill]] }
 0x5c3   :  { %v4324_v53 = vpack.c.bf16 %v160_v50, %v159_v48 }
 0x5c4   :  { %v823_v40 = vsel %vm165_vm0, %v817_v39, 0.0 }
 0x5c5   :  { %824 = vadd.xlane.f32.xlu0 %v823_v40  ;;  %3355 = vmatmul.msk.bf16.gmra.mxu2 %vm165_vm0, %v4324_v53 }
 0x5d5   :  { %1084 = vrot.lane.b32.xlu2 %v4336_v25, %s3964_s10 }
 0x630   :  { %v822_v49 = vpop.xlane.xlu2 %821 }
 0x631   :  { %v826_v47 = vmul.f32 %v822_v49, %v4135_v10 }
 0x633   :  { %v828_v51 = vsub.f32 %v816_v35, %v826_v47 }
 0x635   :  { %v830_v52 = vmul.f32 %v828_v51, %v828_v51 }
 0x637   :  { %v832_v55 = vsel %vm165_vm0, %v830_v52, 0.0 }
 0x638   :  { %v825_v56 = vpop.xlane.xlu0 %824  ;;  %833 = vadd.xlane.f32.xlu1 %v832_v55 }
 0x639   :  { %v827_v58 = vmul.f32 %v825_v56, %v4135_v10  ;;  %v1085_v56 = vpop.permute.xlu2 %1084 }
 0x63b   :  { %v829_v60 = vsub.f32 %v817_v39, %v827_v58  ;;  %v1090_v58 = vsel %vm283_vm8, %v1085_v56, 0 }
 0x63d   :  { %v831_v61 = vmul.f32 %v829_v60, %v829_v60 }
 0x63f   :  { %v835_v63 = vsel %vm165_vm0, %v831_v61, 0.0 }
 0x640   :  { %836 = vadd.xlane.f32.xlu1 %v835_v63 }
 0x648   :  { %v954_v26 = vpop.f32.mrf.mxu2 }
 0x649   :  { %v955_v31 = vadd.f32 %v3714_v7, %v954_v26 }
 0x64b   :  { %v963_v37 = vpack.c.bf16 %v955_v31, %v955_v31 }
 0x64d   :  { %v991_v45 = vunpack.c.l.b16 %v963_v37 }
 0x650   :  { %v956_v42 = vpop.f32.mrf.mxu2 }
 0x651   :  { %v957_v43 = vadd.f32 %v3714_v7, %v956_v42 }
 0x653   :  { %v964_v49 = vpack.c.bf16 %v957_v43, %v957_v43 }
 0x655   :  { %v992_v50 = vunpack.c.l.b16 %v964_v49 }
 0x657   :  { %v4352_v52 = vpack.c.b16 %v992_v50, %v991_v45 }
 0x659   :  { %1041 = vrot.lane.b32.xlu1 %v4336_v25, %s3960_s5  ;;  %1110 = vrot.lane.b32.xlu0 %v4352_v52, %s3964_s10  ;;  %v998_v55 = vsel %vm283_vm8, %v4352_v52, 0 }
 0x65a   :  { %1007 = vmatpush.bf16.xpose.msrb.mxu0 %v998_v55 }
 0x661   :  { %1199 = vrot.lane.b32.xlu0 %v4336_v25, %s3962_s25 }
 0x662   :  { %1099 = vmatpush.bf16.xpose.msra.mxu0 %v1090_v58 }
 0x6ab   :  { %v834_v1 = vpop.xlane.xlu1 %833 }
 0x6ac   :  { %v838_v2 = vmul.f32 %v834_v1, %v4135_v10 }
 0x6ae   :  { %v840_v3 = vadd.f32 1e-12, %v838_v2 }
 0x6b0   :  { %3775 = vrsqrt.f32 %v840_v3  ;;  %vm848_vm14 = vweird.f32 %v840_v3 }
 0x6b3   :  { %v837_v6 = vpop.xlane.xlu1 %836 }
 0x6b4   :  { %v839_v8 = vmul.f32 %v837_v6, %v4135_v10 }
 0x6b6   :  { %v3776_v12 = vpop.eup %3775  ;;  %v841_v13 = vadd.f32 1e-12, %v839_v8 }
 0x6b7   :  { %v843_v14 = vmul.f32 %v3776_v12, %v840_v3  ;;  %vm849_vm13 = vweird.f32 %v3776_v12 }
 0x6b8   :  { %3777 = vrsqrt.f32 %v841_v13  ;;  %vm850_vm15 = vmor %vm848_vm14, %vm849_vm13  ;;  %vm858_vm2 = vweird.f32 %v841_v13  ;;  %vm273_vm14 = vcmask 523264  }
 0x6b9   :  { %v844_v15 = vmul.f32 %v3776_v12, %v843_v14 }
 0x6bb   :  { %v845_v17 = vmul.f32 0.5, %v844_v15  ;;  %v143_v15 = vld [vmem:[%s4892_s28] sm:$0x3]  ;;  %s4895_s28 = sld [smem:[#allocation11_spill]] }
 0x6bc   :  { %v145_v62 = vrot.slane %v143_v15, 1  ;;  %v147_v16 = vsub.f32 1.0, %v143_v15 }
 0x6bd   :  { %v846_v18 = vsub.f32 1.5, %v845_v17 }
 0x6be   :  { %v3778_v20 = vpop.eup %3777  ;;  %v148_v17 = vsub.f32 1.0, %v145_v62  ;;  %v149_v57 = vmul.f32 -1e+09, %v147_v16 }
 0x6bf   :  { %v847_v21 = vmul.f32 %v3776_v12, %v846_v18  ;;  %v853_v22 = vmul.f32 %v3778_v20, %v841_v13  ;;  %vm859_vm1 = vweird.f32 %v3778_v20 }
 0x6c0   :  { %vm860_vm3 = vmor %vm858_vm2, %vm859_vm1  ;;  %v150_v18 = vmul.f32 -1e+09, %v148_v17  ;;  %v4374_v9 = vperm.slane %v149_v57, 0 }
 0x6c1   :  { %v854_v24 = vmul.f32 %v3778_v20, %v853_v22  ;;  %v851_v27 = vsel %vm850_vm15, %v3776_v12, %v847_v21 }
 0x6c2   :  { %v862_v34 = vmul.f32 %v851_v27, %v828_v51  ;;  %v4376_v21 = vperm.slane %v150_v18, 0 }
 0x6c3   :  { %v855_v28 = vmul.f32 0.5, %v854_v24 }
 0x6c4   :  { %v867_v39 = vmul.f32 %v3712_v33, %v862_v34 }
 0x6c5   :  { %v856_v30 = vsub.f32 1.5, %v855_v28 }
 0x6c6   :  { %v4346_v47 = vadd.f32 %v3713_v38, %v867_v39 }
 0x6c7   :  { %v857_v35 = vmul.f32 %v3778_v20, %v856_v30 }
 0x6c9   :  { %v861_v36 = vsel %vm860_vm3, %v3778_v20, %v857_v35 }
 0x6ca   :  { %v863_v40 = vmul.f32 %v861_v36, %v829_v60  ;;  %v3715_v60 = vld [vmem:[%s4891_s9] ss:$0 sm:$0xff] }
 0x6cb   :  { %v1111_v61 = vpop.permute.xlu0 %1110  ;;  %v1042_v2 = vpop.permute.xlu1 %1041 }
 0x6cc   :  { %v868_v44 = vmul.f32 %v3712_v33, %v863_v40  ;;  %v1116_v0 = vsel %vm283_vm8, %v1111_v61, 0  ;;  %1054 = vmatpush.bf16.msrb.mxu1 %v1042_v2 }
 0x6ce   :  { %v4348_v48 = vadd.f32 %v3713_v38, %v868_v44 }
 0x6d0   :  { %v874_v51 = vpack.c.bf16 %v4348_v48, %v4346_v47 }
 0x6d2   :  { %3345 = vmatmul.msk.bf16.vlgmr.msra.gmra.mxu1 %vm165_vm0, %v874_v51 }
 0x6d3   :  { %1125 = vmatpush.bf16.xpose.msra.mxu1 %v1116_v0  ;;  %v1200_v5 = vpop.permute.xlu0 %1199 }
 0x6d4   :  { %v1205_v8 = vsel %vm283_vm8, %v1200_v5, 0 }
 0x74f   :  { %v907_v63 = vpop.f32.mrf.mxu1 }
 0x750   :  { %v908_v1 = vadd.f32 %v3715_v60, %v907_v63 }
 0x752   :  { %v959_v3 = vpack.c.bf16 %v908_v1, %v908_v1 }
 0x754   :  { %3356 = vmatmul.msk.bf16.vlgmr.msrb.gmra.mxu3 %vm283_vm8, %v959_v3  ;;  %v1080_v13 = vunpack.c.l.b16 %v959_v3 }
 0x756   :  { %v1081_v14 = vpack.c.b16 %v1080_v13, %v1080_v13 }
 0x757   :  { %v909_v4 = vpop.f32.mrf.mxu1 }
 0x758   :  { %v910_v6 = vadd.f32 %v3715_v60, %v909_v4 }
 0x75a   :  { %v960_v7 = vpack.c.bf16 %v910_v6, %v910_v6 }
 0x75c   :  { %v1106_v11 = vunpack.c.l.b16 %v960_v7  ;;  %3357 = vmatmul.msk.bf16.vlgmr.msrb.gmra.mxu0 %vm283_vm8, %v960_v7 }
 0x75d   :  { %1214 = vmatpush.bf16.xpose.msrb.mxu0 %v1205_v8 }
 0x75e   :  { %v1107_v12 = vpack.c.b16 %v1106_v11, %v1106_v11 }
 0x760   :  { %1220 = vrot.lane.b32.xlu0 %v1107_v12, %s3962_s25  ;;  %1108 = vrot.lane.b32.xlu2 %v1107_v12, %s3964_s10 }
 0x768   :  { %1309 = vrot.lane.b32.xlu0 %v1081_v14, %s3965_s11  ;;  %1197 = vrot.lane.b32.xlu2 %v1081_v14, %s3962_s25 }
 0x770   :  { %1334 = vrot.lane.b32.xlu2 %v4352_v52, %s3965_s11 }
 0x7ba   :  { %v1109_v38 = vpop.permute.xlu2 %1108 }
 0x7c2   :  { %v1198_v39 = vpop.permute.xlu2 %1197 }
 0x7ca   :  { %v1335_v42 = vpop.permute.xlu2 %1334 }
 0x7cb   :  { %v1340_v0 = vsel %vm283_vm8, %v1335_v42, 0 }
 0x7d2   :  { %v1221_v1 = vpop.permute.xlu0 %1220 }
 0x7d7   :  { %v985_v19 = vpop.f32.mrf.mxu3 }
 0x7d8   :  { %v1013_v20 = vmul.f32 0.35355338, %v985_v19 }
 0x7d9   :  { %v1009_v22 = vpop.f32.mrf.mxu0 }
 0x7da   :  { %v1014_v23 = vmul.f32 0.35355338, %v1009_v22  ;;  %v1015_v24 = vadd.f32 %v1013_v20, %v4374_v9  ;;  %v1310_v11 = vpop.permute.xlu0 %1309 }
 0x7dc   :  { %v1017_v26 = vsel %vm772_vm11, %v1015_v24, -inf  ;;  %v1016_v27 = vadd.f32 %v1014_v23, %v4376_v21 }
 0x7dd   :  { %1018 = vmax.xlane.f32.xlu1 %v1017_v26 }
 0x7de   :  { %v1020_v28 = vsel %vm772_vm11, %v1016_v27, -inf }
 0x7df   :  { %1021 = vmax.xlane.f32.xlu2 %v1020_v28  ;;  %v987_v29 = vpop.f32.mrf.mxu3 }
 0x7e1   :  { %v1011_v30 = vpop.f32.mrf.mxu0 }
 0x7f6   :  { %1082 = vrot.lane.b32.xlu1 %v1081_v14, %s3964_s10 }
 0x850   :  { %v1019_v31 = vpop.xlane.xlu1 %1018 }
 0x851   :  { %v1023_v33 = vsub.f32 %v1015_v24, %v1019_v31 }
 0x852   :  { %v1022_v49 = vpop.xlane.xlu2 %1021 }
 0x853   :  { %v1025_v34 = vmul.f32 1.442695, %v1023_v33  ;;  %v1024_v50 = vsub.f32 %v1016_v27, %v1022_v49 }
 0x855   :  { %3779 = vpow2.f32 %v1025_v34  ;;  %v1027_v51 = vmul.f32 1.442695, %v1024_v50 }
 0x85b   :  { %v3780_v35 = vpop.eup %3779 }
 0x85c   :  { %v1029_v36 = vsel %vm772_vm11, %v3780_v35, 0.0 }
 0x85d   :  { %1030 = vadd.xlane.f32.xlu1 %v1029_v36 }
 0x868   :  { %v1083_v37 = vpop.permute.xlu1 %1082 }
 0x869   :  { %3360 = vmatmul.msk.bf16.vlgmr.msra.gmra.mxu0 %vm283_vm8, %v1083_v37 }
 0x876   :  { %1222 = vrot.lane.b32.xlu1 %v4352_v52, %s3962_s25 }
 0x879   :  { %3364 = vmatmul.msk.bf16.vlgmr.msrb.gmra.mxu0 %vm283_vm8, %v1198_v39 }
 0x87e   :  { %1311 = vrot.lane.b32.xlu1 %v4336_v25, %s3965_s11 }
 0x886   :  { %1332 = vrot.lane.b32.xlu1 %v1107_v12, %s3965_s11 }
 0x8d0   :  { %v1031_v40 = vpop.xlane.xlu1 %1030 }
 0x8d1   :  { %3781 = vrcp.f32 %v1031_v40 }
 0x8d2   :  { %3783 = vpow2.f32 %v1027_v51 }
 0x8d7   :  { %v3782_v43 = vpop.eup %3781 }
 0x8d8   :  { %v1037_v44 = vmul.f32 %v3782_v43, %v3780_v35  ;;  %v4397_v3 = vpop.eup %3783 }
 0x8d9   :  { %v1032_v6 = vsel %vm772_vm11, %v4397_v3, 0.0 }
 0x8da   :  { %v1039_v45 = vpack.c.bf16 %v1037_v44, %v1037_v44 }
 0x8dc   :  { %3358 = vmatmul.msk.bf16.vlgmr.msrb.gmra.mxu1 %vm772_vm11, %v1039_v45 }
 0x8e6   :  { %v1101_v55 = vpop.f32.mrf.mxu0 }
 0x8e7   :  { %v1131_v56 = vmul.f32 0.35355338, %v1101_v55 }
 0x8e8   :  { %v1223_v58 = vpop.permute.xlu1 %1222 }
 0x8e9   :  { %v1228_v60 = vsel %vm283_vm8, %v1223_v58, 0  ;;  %v1133_v61 = vadd.f32 %v1131_v56, %v4374_v9 }
 0x8ea   :  { %1237 = vmatpush.bf16.xpose.msrb.mxu1 %v1228_v60 }
 0x8eb   :  { %v1135_v63 = vsel %vm772_vm11, %v1133_v61, -inf }
 0x8ec   :  { %1136 = vmax.xlane.f32.xlu0 %v1135_v63  ;;  %3361 = vmatmul.msk.bf16.vlgmr.msra.gmra.mxu1 %vm283_vm8, %v1109_v38 }
 0x8ee   :  { %v1103_v2 = vpop.f32.mrf.mxu0 }
 0x8f0   :  { %v1312_v4 = vpop.permute.xlu1 %1311 }
 0x8f1   :  { %v1317_v5 = vsel %vm283_vm8, %v1312_v4, 0 }
 0x8f2   :  { %1349 = vmatpush.bf16.xpose.msra.mxu1 %v1340_v0  ;;  %1326 = vmatpush.bf16.xpose.msra.mxu0 %v1317_v5 }
 0x8f4   :  { %1033 = vadd.xlane.f32.xlu0 %v1032_v6 }
 0x8f6   :  { %v1216_v7 = vpop.f32.mrf.mxu0 }
 0x8f7   :  { %v1243_v8 = vmul.f32 0.35355338, %v1216_v7 }
 0x8f8   :  { %v1333_v15 = vpop.permute.xlu1 %1332 }
 0x8f9   :  { %3368 = vmatmul.msk.bf16.vlgmr.msra.gmra.mxu0 %vm283_vm8, %v1310_v11  ;;  %v1245_v12 = vadd.f32 %v1243_v8, %v4374_v9 }
 0x8fb   :  { %v1247_v13 = vsel %vm772_vm11, %v1245_v12, -inf }
 0x8fc   :  { %3365 = vmatmul.msk.bf16.vlgmr.msrb.gmra.mxu1 %vm283_vm8, %v1221_v1  ;;  %1248 = vmax.xlane.f32.xlu2 %v1247_v13 }
 0x8fe   :  { %v1218_v14 = vpop.f32.mrf.mxu0 }
 0x90c   :  { %3369 = vmatmul.msk.bf16.vlgmr.msra.gmra.mxu1 %vm283_vm8, %v1333_v15 }
 0x959   :  { %v4407_v62 = vpop.f32.mrf.mxu1 }
 0x95f   :  { %v1137_v16 = vpop.xlane.xlu0 %1136 }
 0x960   :  { %v1141_v17 = vsub.f32 %v1133_v61, %v1137_v16 }
 0x961   :  { %v1058_v57 = vpop.f32.mrf.mxu1 }
 0x962   :  { %v1143_v18 = vmul.f32 1.442695, %v1141_v17 }
 0x964   :  { %3785 = vpow2.f32 %v1143_v18 }
 0x967   :  { %v1034_v0 = vpop.xlane.xlu0 %1033 }
 0x969   :  { %v1127_v19 = vpop.f32.mrf.mxu1 }
 0x96a   :  { %v3786_v20 = vpop.eup %3785  ;;  %v1132_v30 = vmul.f32 0.35355338, %v1127_v19 }
 0x96b   :  { %v1147_v22 = vsel %vm772_vm11, %v3786_v20, 0.0 }
 0x96c   :  { %1148 = vadd.xlane.f32.xlu2 %v1147_v22  ;;  %v1134_v36 = vadd.f32 %v1132_v30, %v4376_v21 }
 0x96e   :  { %v1138_v38 = vsel %vm772_vm11, %v1134_v36, -inf }
 0x96f   :  { %v1249_v44 = vpop.xlane.xlu2 %1248 }
 0x970   :  { %v1253_v49 = vsub.f32 %v1245_v12, %v1249_v44 }
 0x971   :  { %v1129_v23 = vpop.f32.mrf.mxu1 }
 0x972   :  { %v1255_v50 = vmul.f32 1.442695, %v1253_v49 }
 0x974   :  { %3787 = vpow2.f32 %v1255_v50 }
 0x976   :  { %v1328_v24 = vpop.f32.mrf.mxu0 }
 0x977   :  { %v1355_v26 = vmul.f32 0.35355338, %v1328_v24 }
 0x979   :  { %v1239_v27 = vpop.f32.mrf.mxu1  ;;  %v1357_v28 = vadd.f32 %v1355_v26, %v4374_v9 }
 0x97a   :  { %v1244_v29 = vmul.f32 0.35355338, %v1239_v27  ;;  %v3788_v51 = vpop.eup %3787 }
 0x97b   :  { %v1359_v31 = vsel %vm772_vm11, %v1357_v28, -inf  ;;  %v1259_v55 = vsel %vm772_vm11, %v3788_v51, 0.0 }
 0x97c   :  { %1360 = vmax.xlane.f32.xlu1 %v1359_v31  ;;  %v1246_v33 = vadd.f32 %v1244_v29, %v4376_v21 }
 0x97e   :  { %v1330_v34 = vpop.f32.mrf.mxu0  ;;  %v1250_v35 = vsel %vm772_vm11, %v1246_v33, -inf }
 0x97f   :  { %1251 = vmax.xlane.f32.xlu0 %v1250_v35 }
 0x981   :  { %v1241_v37 = vpop.f32.mrf.mxu1 }
 0x984   :  { %1159 = vrot.lane.b32.xlu2 %v4336_v25, %s3959_s0  ;;  %1139 = vmax.xlane.f32.xlu1 %v1138_v38 }
 0x989   :  { %v1351_v39 = vpop.f32.mrf.mxu1 }
 0x98a   :  { %v1356_v42 = vmul.f32 0.35355338, %v1351_v39 }
 0x98c   :  { %1271 = vrot.lane.b32.xlu2 %v4336_v25, %s3961_s21  ;;  %v1358_v43 = vadd.f32 %v1356_v42, %v4376_v21 }
 0x98e   :  { %v1362_v45 = vsel %vm772_vm11, %v1358_v43, -inf }
 0x991   :  { %v1353_v40 = vpop.f32.mrf.mxu1 }
 0x993   :  { %1178 = vrot.lane.b32.xlu0 %v4352_v52, %s3959_s0 }
 0x99d   :  { %1060 = vrot.lane.b32.xlu1 %v4352_v52, %s3960_s5 }
 0x9b5   :  { %1363 = vmax.xlane.f32.xlu2 %v1362_v45 }
 0x9c7   :  { %1260 = vadd.xlane.f32.xlu1 %v1259_v55 }
 0x9cd   :  { %1290 = vrot.lane.b32.xlu2 %v4352_v52, %s3961_s21 }
 0x9df   :  { %v1149_v56 = vpop.xlane.xlu2 %1148 }
 0x9e0   :  { %3789 = vrcp.f32 %v1149_v56 }
 0x9e6   :  { %v3790_v58 = vpop.eup %3789 }
 0x9e7   :  { %v1155_v60 = vmul.f32 %v3790_v58, %v3786_v20  ;;  %v1160_v61 = vpop.permute.xlu2 %1159 }
 0x9e8   :  { %1172 = vmatpush.bf16.msrb.mxu2 %v1160_v61 }
 0x9e9   :  { %v1157_v63 = vpack.c.bf16 %v1155_v60, %v1155_v60 }
 0x9eb   :  { %3362 = vmatmul.msk.bf16.vlgmr.msrb.gmra.mxu2 %vm772_vm11, %v1157_v63 }
 0x9ef   :  { %v1361_v1 = vpop.xlane.xlu1 %1360  ;;  %v1272_v2 = vpop.permute.xlu2 %1271 }
 0x9f0   :  { %v1365_v4 = vsub.f32 %v1357_v28, %v1361_v1  ;;  %1284 = vmatpush.bf16.msra.mxu2 %v1272_v2 }
 0x9f2   :  { %v1367_v5 = vmul.f32 1.442695, %v1365_v4  ;;  %v1252_v6 = vpop.xlane.xlu0 %1251 }
 0x9f3   :  { %v1254_v12 = vsub.f32 %v1246_v33, %v1252_v6 }
 0x9f4   :  { %3791 = vpow2.f32 %v1367_v5 }
 0x9f5   :  { %v1257_v15 = vmul.f32 1.442695, %v1254_v12 }
 0x9f7   :  { %v1140_v7 = vpop.xlane.xlu1 %1139 }
 0x9f8   :  { %v1142_v8 = vsub.f32 %v1134_v36, %v1140_v7 }
 0x9fa   :  { %v3792_v11 = vpop.eup %3791  ;;  %v1145_v13 = vmul.f32 1.442695, %v1142_v8 }
 0x9fb   :  { %v1371_v14 = vsel %vm772_vm11, %v3792_v11, 0.0 }
 0x9fc   :  { %3793 = vpow2.f32 %v1145_v13  ;;  %1372 = vadd.xlane.f32.xlu2 %v1371_v14 }
 0x9fd   :  { %3795 = vpow2.f32 %v1257_v15 }
 0x9fe   :  { %3797 = vrcp.f32 %v1034_v0 }
 0xa02   :  { %v3794_v16 = vpop.eup %3793 }
 0xa03   :  { %v1150_v17 = vsel %vm772_vm11, %v3794_v16, 0.0  ;;  %v3796_v57 = vpop.eup %3795 }
 0xa04   :  { %1151 = vadd.xlane.f32.xlu0 %v1150_v17  ;;  %v3798_v18 = vpop.eup %3797  ;;  %v1262_v19 = vsel %vm772_vm11, %v3796_v57, 0.0 }
 0xa05   :  { %v1038_v20 = vmul.f32 %v3798_v18, %v4397_v3  ;;  %v1179_v23 = vpop.permute.xlu0 %1178  ;;  %v3575_v18 = vld [vmem:[%s4893_s1] sm:$0xff] }
 0xa07   :  { %v1040_v24 = vpack.c.bf16 %v1038_v20, %v1038_v20 }
 0xa0c   :  { %1263 = vadd.xlane.f32.xlu0 %v1262_v19 }
 0xa0f   :  { %v1061_v22 = vpop.permute.xlu1 %1060 }
 0xa10   :  { %1073 = vmatpush.bf16.msra.mxu3 %v1061_v22 }
 0xa13   :  { %3359 = vmatmul.msk.bf16.vlgmr.msra.gmra.mxu3 %vm772_vm11, %v1040_v24 }
 0xa14   :  { %1191 = vmatpush.bf16.msrb.mxu3 %v1179_v23 }
 0xa20   :  { %1383 = vrot.lane.b32.xlu0 %v4336_v25, %s4877_s7 }
 0xa28   :  { %v1364_v26 = vpop.xlane.xlu2 %1363 }
 0xa29   :  { %v1366_v27 = vsub.f32 %v1358_v43, %v1364_v26 }
 0xa2b   :  { %v1369_v28 = vmul.f32 1.442695, %v1366_v27 }
 0xa2d   :  { %3799 = vpow2.f32 %v1369_v28 }
 0xa30   :  { %v1291_v29 = vpop.permute.xlu2 %1290 }
 0xa31   :  { %1303 = vmatpush.bf16.msra.mxu3 %v1291_v29 }
 0xa33   :  { %v3800_v30 = vpop.eup %3799 }
 0xa34   :  { %v1374_v31 = vsel %vm772_vm11, %v3800_v30, 0.0 }
 0xa35   :  { %1375 = vadd.xlane.f32.xlu1 %v1374_v31 }
 0xa3a   :  { %v1261_v3 = vpop.xlane.xlu1 %1260 }
 0xa3b   :  { %3801 = vrcp.f32 %v1261_v3 }
 0xa41   :  { %v3802_v33 = vpop.eup %3801 }
 0xa42   :  { %v1267_v34 = vmul.f32 %v3802_v33, %v3788_v51 }
 0xa44   :  { %v1269_v35 = vpack.c.bf16 %v1267_v34, %v1267_v34 }
 0xa46   :  { %3366 = vmatmul.msk.bf16.vlgmr.msra.gmra.mxu2 %vm772_vm11, %v1269_v35 }
 0xa4e   :  { %1402 = vrot.lane.b32.xlu1 %v4352_v52, %s4877_s7 }
 0xa6e   :  { %v1174_v25 = vpop.f32.mrf.mxu2 }
 0xa6f   :  { %v1373_v43 = vpop.xlane.xlu2 %1372 }
 0xa76   :  { %v1176_v36 = vpop.f32.mrf.mxu2 }
 0xa77   :  { %v1152_v37 = vpop.xlane.xlu0 %1151  ;;  %v3716_v36 = vld [vmem:[%s4894_s2] ss:$0 sm:$0xff] }
 0xa78   :  { %3803 = vrcp.f32 %v1152_v37 }
 0xa7e   :  { %v3804_v38 = vpop.eup %3803 }
 0xa7f   :  { %v1156_v39 = vmul.f32 %v3804_v38, %v3794_v16  ;;  %v1264_v42 = vpop.xlane.xlu0 %1263 }
 0xa80   :  { %3805 = vrcp.f32 %v1264_v42 }
 0xa81   :  { %v1158_v40 = vpack.c.bf16 %v1156_v39, %v1156_v39  ;;  %3807 = vrcp.f32 %v1373_v43 }
 0xa83   :  { %3363 = vmatmul.msk.bf16.vlgmr.msrb.gmra.mxu3 %vm772_vm11, %v1158_v40 }
 0xa86   :  { %v3806_v44 = vpop.eup %3805 }
 0xa87   :  { %v3808_v45 = vpop.eup %3807  ;;  %v1268_v49 = vmul.f32 %v3806_v44, %v3796_v57  ;;  %v3576_v57 = vld [vmem:[%s4893_s1 + $0x8] sm:$0xff] }
 0xa88   :  { %v1379_v50 = vmul.f32 %v3808_v45, %v3792_v11  ;;  %1481 = vmatpush.bf16.msrb.mxu0 %v3576_v57 }
 0xa89   :  { %v1270_v51 = vpack.c.bf16 %v1268_v49, %v1268_v49 }
 0xa8a   :  { %v1381_v52 = vpack.c.bf16 %v1379_v50, %v1379_v50 }
 0xa8c   :  { %1482 = vmatpush.bf16.msrb.mxu0 %v3575_v18 }
 0xa92   :  { %v1384_v55 = vpop.permute.xlu0 %1383 }
 0xa93   :  { %3367 = vmatmul.msk.bf16.vlgmr.msra.gmra.mxu3 %vm772_vm11, %v1270_v51  ;;  %1396 = vmatpush.bf16.msrb.mxu2 %v1384_v55 }
 0xa96   :  { %v1075_v56 = vpop.f32.mrf.mxu3  ;;  %3370 = vmatmul.msk.bf16.vlgmr.msrb.gmra.mxu2 %vm772_vm11, %v1381_v52 }
 0xa9e   :  { %v1077_v58 = vpop.f32.mrf.mxu3 }
 0xaa8   :  { %v1376_v60 = vpop.xlane.xlu1 %1375 }
 0xaa9   :  { %3809 = vrcp.f32 %v1376_v60 }
 0xaaf   :  { %v3810_v61 = vpop.eup %3809 }
 0xab0   :  { %v1380_v63 = vmul.f32 %v3810_v61, %v3800_v30 }
 0xab2   :  { %v1382_v1 = vpack.c.bf16 %v1380_v63, %v1380_v63 }
 0xac0   :  { %v1403_v0 = vpop.permute.xlu1 %1402 }
 0xac1   :  { %1415 = vmatpush.bf16.msrb.mxu3 %v1403_v0 }
 0xac4   :  { %3371 = vmatmul.msk.bf16.vlgmr.msrb.gmra.mxu3 %vm772_vm11, %v1382_v1  ;;  %v3577_v1 = vld [vmem:[%s4895_s28] sm:$0xff] }
 0xac9   :  { %v1286_v2 = vpop.f32.mrf.mxu2 }
 0xad1   :  { %v1288_v4 = vpop.f32.mrf.mxu2 }
 0xb06   :  { %v1193_v5 = vpop.f32.mrf.mxu3 }
 0xb07   :  { %v3663_v6 = vpack.i.bf16 %v1193_v5, %v1174_v25 }
 0xb09   :  { %3664 = vrot.lane.b32.xlu2 %v3663_v6, %s4867_s22  ;;  %s4898_s22 = sld [smem:[#allocation13_spill]] }
 0xb0e   :  { %v1195_v7 = vpop.f32.mrf.mxu3 }
 0xb16   :  { %v1305_v8 = vpop.f32.mrf.mxu3 }
 0xb17   :  { %v3668_v11 = vpack.i.bf16 %v1305_v8, %v1286_v2 }
 0xb19   :  { %3669 = vrot.lane.b32.xlu0 %v3668_v11, %s4865_s23  ;;  %v1398_v12 = vpop.f32.mrf.mxu2  ;;  %s4897_s23 = sld [smem:[#allocation10_spill]] }
 0xb1e   :  { %v1307_v13 = vpop.f32.mrf.mxu3 }
 0xb21   :  { %v1400_v14 = vpop.f32.mrf.mxu2 }
 0xb47   :  { %v1417_v15 = vpop.f32.mrf.mxu3 }
 0xb48   :  { %v3673_v16 = vpack.i.bf16 %v1417_v15, %v1398_v12 }
 0xb4a   :  { %3674 = vrot.lane.b32.xlu1 %v3673_v16, %s4863_s26  ;;  %s4896_s26 = sld [smem:[#allocation9_spill]] }
 0xb4f   :  { %v1419_v17 = vpop.f32.mrf.mxu3 }
 0xb63   :  { %v3665_v19 = vpop.permute.xlu2 %3664 }
 0xb64   :  { %v3667_v22 = vunpack.i.h.bf16 %v3665_v19  ;;  %v3666_v23 = vunpack.i.l.bf16 %v3665_v19  ;;  %v3717_v19 = vld [vmem:[%s4896_s26] ss:$0 sm:$0xff] }
 0xb66   :  { %v1446_v28 = vsel %vm283_vm8, %v1075_v56, %v3667_v22  ;;  %v1445_v29 = vsel %vm283_vm8, %v4407_v62, %v3666_v23 }
 0xb8b   :  { %v3670_v20 = vpop.permute.xlu0 %3669 }
 0xb8c   :  { %v3672_v24 = vunpack.i.h.bf16 %v3670_v20  ;;  %v3671_v26 = vunpack.i.l.bf16 %v3670_v20 }
 0xb8e   :  { %v1447_v3 = vsel %vm772_vm11, %v1445_v29, %v3671_v26  ;;  %v1448_v33 = vsel %vm772_vm11, %v1446_v28, %v3672_v24  ;;  %v3718_v24 = vld [vmem:[%s4897_s23] ss:$0 sm:$0xff] }
 0xbbc   :  { %v3675_v27 = vpop.permute.xlu1 %3674 }
 0xbbd   :  { %v3677_v30 = vunpack.i.h.bf16 %v3675_v27  ;;  %v3676_v31 = vunpack.i.l.bf16 %v3675_v27 }
 0xbbf   :  { %v1449_v34 = vsel %vm775_vm12, %v1447_v3, %v3676_v31  ;;  %v1450_v35 = vsel %vm775_vm12, %v1448_v33, %v3677_v30  ;;  %v3582_v3 = vld [vmem:[%s4898_s22 + $0x18] sm:$0xff]  ;;  %v3581_v33 = vld [vmem:[%s4898_s22 + $0x10] sm:$0xff] }
 0xbc0   :  { %v1451_v25 = vpack.c.bf16 %v1450_v35, %v1449_v34  ;;  %1647 = vmatpush.bf16.msra.mxu2 %v3582_v3  ;;  %v3580_v34 = vld [vmem:[%s4898_s22 + $0x8] sm:$0xff]  ;;  %v3719_v35 = vld [vmem:[%s4899_s18] ss:$0 sm:$0xff] }
 0xbc2   :  { %3380 = vmatmul.msk.bf16.vlgmr.msrb.gmra.mxu0 %vm165_vm0, %v1451_v25 }
 0xbc4   :  { %1648 = vmatpush.bf16.msra.mxu2 %v3581_v33 }
 0xbc8   :  { %1649 = vmatpush.bf16.msra.mxu2 %v3580_v34 }
 0xc3f   :  { %v1484_v37 = vpop.f32.mrf.mxu0 }
 0xc40   :  { %v1485_v38 = vadd.f32 %v3716_v36, %v1484_v37 }
 0xc42   :  { %v1489_v39 = vadd.f32 %v1485_v38, %v4346_v47 }
 0xc44   :  { %v1493_v62 = vsel %vm165_vm0, %v1489_v39, 0.0 }
 0xc45   :  { %1494 = vadd.xlane.f32.xlu0 %v1493_v62 }
 0xc47   :  { %v1486_v40 = vpop.f32.mrf.mxu0 }
 0xc48   :  { %v1487_v42 = vadd.f32 %v3716_v36, %v1486_v40  ;;  %v3579_v36 = vld [vmem:[%s4898_s22] sm:$0xff] }
 0xc49   :  { %1650 = vmatpush.bf16.msra.mxu2 %v3579_v36 }
 0xc4a   :  { %v1490_v43 = vadd.f32 %v1487_v42, %v4348_v48  ;;  %v3578_v48 = vld [vmem:[%s4895_s28 + $0x8] sm:$0xff] }
 0xc4b   :  { %1577 = vmatpush.bf16.msrb.mxu1 %v3578_v48 }
 0xc4c   :  { %v1496_v44 = vsel %vm165_vm0, %v1490_v43, 0.0 }
 0xc4d   :  { %1497 = vadd.xlane.f32.xlu1 %v1496_v44 }
 0xc4f   :  { %1578 = vmatpush.bf16.msrb.mxu1 %v3577_v1  ;;  %v3720_v1 = vld [vmem:[%s4900_s16] ss:$0 sm:$0xff] }
 0xcb8   :  { %v1495_v45 = vpop.xlane.xlu0 %1494 }
 0xcb9   :  { %v1499_v49 = vmul.f32 %v1495_v45, %v4135_v10 }
 0xcbb   :  { %v1501_v50 = vsub.f32 %v1489_v39, %v1499_v49 }
 0xcbd   :  { %v1503_v51 = vmul.f32 %v1501_v50, %v1501_v50 }
 0xcbf   :  { %v1505_v55 = vsel %vm165_vm0, %v1503_v51, 0.0 }
 0xcc0   :  { %v1498_v47 = vpop.xlane.xlu1 %1497  ;;  %1506 = vadd.xlane.f32.xlu2 %v1505_v55 }
 0xcc1   :  { %v1500_v52 = vmul.f32 %v1498_v47, %v4135_v10 }
 0xcc3   :  { %v1502_v56 = vsub.f32 %v1490_v43, %v1500_v52 }
 0xcc5   :  { %v1504_v58 = vmul.f32 %v1502_v56, %v1502_v56 }
 0xcc7   :  { %v1508_v60 = vsel %vm165_vm0, %v1504_v58, 0.0 }
 0xcc8   :  { %1509 = vadd.xlane.f32.xlu0 %v1508_v60 }
 0xd33   :  { %v1507_v61 = vpop.xlane.xlu2 %1506 }
 0xd34   :  { %v1511_v63 = vmul.f32 %v1507_v61, %v4135_v10 }
 0xd36   :  { %v1513_v0 = vadd.f32 1e-12, %v1511_v63 }
 0xd38   :  { %3811 = vrsqrt.f32 %v1513_v0  ;;  %vm1521_vm5 = vweird.f32 %v1513_v0 }
 0xd3b   :  { %v1510_v2 = vpop.xlane.xlu0 %1509 }
 0xd3c   :  { %v1512_v4 = vmul.f32 %v1510_v2, %v4135_v10 }
 0xd3e   :  { %v3812_v5 = vpop.eup %3811  ;;  %v1514_v6 = vadd.f32 1e-12, %v1512_v4 }
 0xd3f   :  { %v1516_v7 = vmul.f32 %v3812_v5, %v1513_v0  ;;  %vm1522_vm4 = vweird.f32 %v3812_v5 }
 0xd40   :  { %3813 = vrsqrt.f32 %v1514_v6  ;;  %vm1523_vm6 = vmor %vm1521_vm5, %vm1522_vm4  ;;  %vm1531_vm9 = vweird.f32 %v1514_v6 }
 0xd41   :  { %v1517_v8 = vmul.f32 %v3812_v5, %v1516_v7 }
 0xd43   :  { %v1518_v11 = vmul.f32 0.5, %v1517_v8 }
 0xd45   :  { %v1519_v12 = vsub.f32 1.5, %v1518_v11 }
 0xd46   :  { %v3814_v13 = vpop.eup %3813 }
 0xd47   :  { %v1520_v14 = vmul.f32 %v3812_v5, %v1519_v12  ;;  %v1526_v15 = vmul.f32 %v3814_v13, %v1514_v6  ;;  %vm1532_vm7 = vweird.f32 %v3814_v13 }
 0xd48   :  { %vm1533_vm13 = vmor %vm1531_vm9, %vm1532_vm7 }
 0xd49   :  { %v1527_v16 = vmul.f32 %v3814_v13, %v1526_v15  ;;  %v1524_v17 = vsel %vm1523_vm6, %v3812_v5, %v1520_v14 }
 0xd4a   :  { %v1535_v20 = vmul.f32 %v1524_v17, %v1501_v50 }
 0xd4b   :  { %v1528_v57 = vmul.f32 0.5, %v1527_v16 }
 0xd4c   :  { %v1540_v26 = vmul.f32 %v3717_v19, %v1535_v20 }
 0xd4d   :  { %v1529_v18 = vsub.f32 1.5, %v1528_v57 }
 0xd4e   :  { %v1545_v29 = vadd.f32 %v3718_v24, %v1540_v26 }
 0xd4f   :  { %v1530_v22 = vmul.f32 %v3814_v13, %v1529_v18 }
 0xd51   :  { %v1534_v23 = vsel %vm1533_vm13, %v3814_v13, %v1530_v22 }
 0xd52   :  { %v1536_v27 = vmul.f32 %v1534_v23, %v1502_v56  ;;  %v3584_v23 = vld [vmem:[%s4014_s29 + $0x18] sm:$0xff] }
 0xd53   :  { %1747 = vmatpush.bf16.msra.mxu3 %v3584_v23 }
 0xd54   :  { %v1541_v28 = vmul.f32 %v3717_v19, %v1536_v27 }
 0xd56   :  { %v1546_v30 = vadd.f32 %v3718_v24, %v1541_v28  ;;  %v3583_v28 = vld [vmem:[%s4014_s29 + $0x10] sm:$0xff]  ;;  %s4903_s29 = smov 64  }
 0xd57   :  { %1748 = vmatpush.bf16.msra.mxu3 %v3583_v28 }
 0xd58   :  { %v1547_v31 = vpack.c.bf16 %v1546_v30, %v1545_v29 }
 0xd5a   :  { %3389 = vmatmul.msk.bf16.vlgmr.msrb.gmra.mxu1 %vm165_vm0, %v1547_v31 }
 0xdd7   :  { %v1580_v25 = vpop.f32.mrf.mxu1 }
 0xdd8   :  { %v1581_v37 = vadd.f32 %v3719_v35, %v1580_v25 }
 0xdda   :  { %v1585_v38 = vmul.f32 %v1581_v37, %v1581_v37 }
 0xddc   :  { %v1587_v39 = vmul.f32 %v1585_v38, %v1581_v37 }
 0xdde   :  { %v1589_v62 = vmul.f32 0.044715, %v1587_v39 }
 0xddf   :  { %v1582_v40 = vpop.f32.mrf.mxu1 }
 0xde0   :  { %v1591_v42 = vadd.f32 %v1589_v62, %v1581_v37  ;;  %v1583_v43 = vadd.f32 %v3719_v35, %v1582_v40 }
 0xde2   :  { %v1593_v44 = vmul.f32 0.7978846, %v1591_v42  ;;  %v1586_v45 = vmul.f32 %v1583_v43, %v1583_v43 }
 0xde4   :  { %v1588_v49 = vmul.f32 %v1586_v45, %v1583_v43  ;;  %3815 = vtanh.f32 %v1593_v44 }
 0xde6   :  { %v1590_v50 = vmul.f32 0.044715, %v1588_v49 }
 0xde8   :  { %v1592_v51 = vadd.f32 %v1590_v50, %v1583_v43  ;;  %v3722_v50 = vld [vmem:[%s4902_s13] ss:$0 sm:$0xff] }
 0xdea   :  { %v1594_v55 = vmul.f32 0.7978846, %v1592_v51  ;;  %v3816_v47 = vpop.eup %3815 }
 0xdeb   :  { %v1597_v52 = vadd.f32 1.0, %v3816_v47 }
 0xdec   :  { %3817 = vtanh.f32 %v1594_v55 }
 0xded   :  { %v1599_v58 = vmul.f32 0.5, %v1597_v52 }
 0xdef   :  { %v1601_v61 = vmul.f32 %v1599_v58, %v1581_v37 }
 0xdf2   :  { %v3818_v56 = vpop.eup %3817 }
 0xdf3   :  { %v1598_v60 = vadd.f32 1.0, %v3818_v56 }
 0xdf5   :  { %v1600_v48 = vmul.f32 0.5, %v1598_v60  ;;  %v3723_v60 = vld [vmem:[%s4019_s3 + $0x1] ss:$0 sm:$0xff]  ;;  %s4904_s3 = smov 56  }
 0xdf7   :  { %v1602_v63 = vmul.f32 %v1600_v48, %v1583_v43  ;;  %v3721_v43 = vld [vmem:[%s4901_s15] ss:$0 sm:$0xff] }
 0xdf9   :  { %v1603_v0 = vpack.c.bf16 %v1602_v63, %v1601_v61 }
 0xdfb   :  { %3406 = vmatmul.msk.bf16.vlgmr.msra.gmra.mxu2 %vm273_vm14, %v1603_v0 }
 0xe7e   :  { %v1652_v2 = vpop.f32.mrf.mxu2 }
 0xe7f   :  { %v1653_v4 = vadd.f32 %v3720_v1, %v1652_v2 }
 0xe81   :  { %v1657_v5 = vadd.f32 %v1653_v4, %v1545_v29 }
 0xe83   :  { %v1661_v6 = vsel %vm165_vm0, %v1657_v5, 0.0 }
 0xe84   :  { %1662 = vadd.xlane.f32.xlu1 %v1661_v6 }
 0xe86   :  { %v1654_v7 = vpop.f32.mrf.mxu2 }
 0xe87   :  { %v1655_v8 = vadd.f32 %v3720_v1, %v1654_v7 }
 0xe89   :  { %v1658_v11 = vadd.f32 %v1655_v8, %v1546_v30 }
 0xe8b   :  { %v1664_v12 = vsel %vm165_vm0, %v1658_v11, 0.0 }
 0xe8c   :  { %1665 = vadd.xlane.f32.xlu0 %v1664_v12 }
 0xef7   :  { %v1663_v13 = vpop.xlane.xlu1 %1662 }
 0xef8   :  { %v1667_v14 = vmul.f32 %v1663_v13, %v4135_v10 }
 0xefa   :  { %v1669_v15 = vsub.f32 %v1657_v5, %v1667_v14 }
 0xefc   :  { %v1671_v16 = vmul.f32 %v1669_v15, %v1669_v15 }
 0xefe   :  { %v1673_v17 = vsel %vm165_vm0, %v1671_v16, 0.0 }
 0xeff   :  { %v1666_v57 = vpop.xlane.xlu0 %1665  ;;  %1674 = vadd.xlane.f32.xlu2 %v1673_v17 }
 0xf00   :  { %v1668_v18 = vmul.f32 %v1666_v57, %v4135_v10 }
 0xf02   :  { %v1670_v19 = vsub.f32 %v1658_v11, %v1668_v18 }
 0xf04   :  { %v1672_v20 = vmul.f32 %v1670_v19, %v1670_v19 }
 0xf06   :  { %v1676_v22 = vsel %vm165_vm0, %v1672_v20, 0.0 }
 0xf07   :  { %1677 = vadd.xlane.f32.xlu1 %v1676_v22 }
 0xf72   :  { %v1675_v24 = vpop.xlane.xlu2 %1674 }
 0xf73   :  { %v1679_v26 = vmul.f32 %v1675_v24, %v4135_v10 }
 0xf75   :  { %v1681_v27 = vadd.f32 1e-12, %v1679_v26 }
 0xf77   :  { %3819 = vrsqrt.f32 %v1681_v27  ;;  %vm1689_vm1 = vweird.f32 %v1681_v27 }
 0xf7a   :  { %v1678_v29 = vpop.xlane.xlu1 %1677 }
 0xf7b   :  { %v1680_v30 = vmul.f32 %v1678_v29, %v4135_v10 }
 0xf7d   :  { %v3820_v31 = vpop.eup %3819  ;;  %v1682_v3 = vadd.f32 1e-12, %v1680_v30 }
 0xf7e   :  { %v1684_v33 = vmul.f32 %v3820_v31, %v1681_v27  ;;  %vm1690_vm15 = vweird.f32 %v3820_v31 }
 0xf7f   :  { %3821 = vrsqrt.f32 %v1682_v3  ;;  %vm1691_vm2 = vmor %vm1689_vm1, %vm1690_vm15  ;;  %vm1699_vm4 = vweird.f32 %v1682_v3 }
 0xf80   :  { %v1685_v34 = vmul.f32 %v3820_v31, %v1684_v33 }
 0xf82   :  { %v1686_v35 = vmul.f32 0.5, %v1685_v34 }
 0xf84   :  { %v1687_v25 = vsub.f32 1.5, %v1686_v35 }
 0xf85   :  { %v3822_v36 = vpop.eup %3821 }
 0xf86   :  { %v1688_v37 = vmul.f32 %v3820_v31, %v1687_v25  ;;  %v1694_v38 = vmul.f32 %v3822_v36, %v1682_v3  ;;  %vm1700_vm3 = vweird.f32 %v3822_v36 }
 0xf87   :  { %vm1701_vm5 = vmor %vm1699_vm4, %vm1700_vm3 }
 0xf88   :  { %v1695_v39 = vmul.f32 %v3822_v36, %v1694_v38  ;;  %v1692_v62 = vsel %vm1691_vm2, %v3820_v31, %v1688_v37 }
 0xf89   :  { %v1703_v44 = vmul.f32 %v1692_v62, %v1669_v15 }
 0xf8a   :  { %v1696_v40 = vmul.f32 0.5, %v1695_v39 }
 0xf8b   :  { %v1708_v51 = vmul.f32 %v3721_v43, %v1703_v44 }
 0xf8c   :  { %v1697_v42 = vsub.f32 1.5, %v1696_v40 }
 0xf8d   :  { %v4493_v52 = vadd.f32 %v3722_v50, %v1708_v51 }
 0xf8e   :  { %v1698_v45 = vmul.f32 %v3822_v36, %v1697_v42 }
 0xf90   :  { %v1702_v49 = vsel %vm1701_vm5, %v3822_v36, %v1698_v45 }
 0xf91   :  { %v1704_v55 = vmul.f32 %v1702_v49, %v1670_v19 }
 0xf93   :  { %v1709_v47 = vmul.f32 %v3721_v43, %v1704_v55 }
 0xf95   :  { %v4495_v56 = vadd.f32 %v3722_v50, %v1709_v47 }
 0xf97   :  { %v1715_v58 = vpack.c.bf16 %v4495_v56, %v4493_v52 }
 0xf99   :  { %3420 = vmatmul.msk.bf16.vlgmr.msra.gmra.mxu3 %vm165_vm0, %v1715_v58 }
0x101c   :  { %v1750_v48 = vpop.f32.mrf.mxu3 }
0x101d   :  { %v4501_v61 = vadd.f32 %v3723_v60, %v1750_v48 }
0x101f   :  { %v1766_v63 = vpack.c.bf16 %v4501_v61, %v4501_v61 }
0x1021   :  { %v1769_v0 = vunpack.c.l.b16 %v1766_v63 }
0x1023   :  { %v4505_v1 = vpack.c.b16 %v1769_v0, %v1769_v0 }
0x1024   :  { %v1752_v2 = vpop.f32.mrf.mxu3 }
0x1025   :  { %v4507_v4 = vadd.f32 %v3723_v60, %v1752_v2  ;;  %1888 = vrot.lane.b32.xlu1 %v4505_v1, %s3959_s0  ;;  %1771 = vrot.lane.b32.xlu0 %v4505_v1, %s3960_s5 }
0x1027   :  { %v1767_v5 = vpack.c.bf16 %v4507_v4, %v4507_v4 }
0x1029   :  { %v1793_v6 = vunpack.c.l.b16 %v1767_v5 }
0x102b   :  { %v4515_v7 = vpack.c.b16 %v1793_v6, %v1793_v6 }
0x102d   :  { %1795 = vrot.lane.b32.xlu2 %v4515_v7, %s3960_s5  ;;  %2004 = vrot.lane.b32.xlu1 %v4505_v1, %s3961_s21 }
0x102e   :  { %1911 = vrot.lane.b32.xlu0 %v4515_v7, %s3959_s0 }
0x1035   :  { %1886 = vrot.lane.b32.xlu2 %v4505_v1, %s3964_s10  ;;  %2025 = vrot.lane.b32.xlu1 %v4515_v7, %s3962_s25 }
0x1036   :  { %1909 = vrot.lane.b32.xlu0 %v4515_v7, %s3964_s10 }
0x103d   :  { %2027 = vrot.lane.b32.xlu2 %v4515_v7, %s3961_s21  ;;  %2118 = vrot.lane.b32.xlu1 %v4505_v1, %s3965_s11 }
0x103e   :  { %2002 = vrot.lane.b32.xlu0 %v4505_v1, %s3962_s25 }
0x1045   :  { %2120 = vrot.lane.b32.xlu2 %v4505_v1, %s4877_s7  ;;  %1844 = vrot.lane.b32.xlu1 %v4505_v1, %s4903_s29 }
0x1046   :  { %2143 = vrot.lane.b32.xlu0 %v4515_v7, %s4877_s7  ;;  %s4905_s7 = smov 48  }
0x104d   :  { %2141 = vrot.lane.b32.xlu2 %v4515_v7, %s3965_s11 }
0x1087   :  { %v1796_v8 = vpop.permute.xlu2 %1795 }
0x1088   :  { %v1801_v11 = vsel %vm283_vm8, %v1796_v8, 0 }
0x1089   :  { %1810 = vmatpush.bf16.xpose.msra.mxu1 %v1801_v11 }
0x108f   :  { %v1887_v12 = vpop.permute.xlu2 %1886 }
0x1090   :  { %3424 = vmatmul.msk.bf16.vlgmr.msra.gmra.mxu1 %vm283_vm8, %v1767_v5 }
0x1097   :  { %v1889_v13 = vpop.permute.xlu1 %1888  ;;  %v1772_v15 = vpop.permute.xlu0 %1771 }
0x1098   :  { %v1894_v14 = vsel %vm283_vm8, %v1889_v13, 0  ;;  %v1777_v16 = vsel %vm283_vm8, %v1772_v15, 0  ;;  %v2028_v17 = vpop.permute.xlu2 %2027 }
0x1099   :  { %1786 = vmatpush.bf16.xpose.msra.mxu0 %v1777_v16  ;;  %v2033_v22 = vsel %vm283_vm8, %v2028_v17, 0 }
0x109f   :  { %v2005_v57 = vpop.permute.xlu1 %2004 }
0x10a0   :  { %v2010_v18 = vsel %vm283_vm8, %v2005_v57, 0  ;;  %v1912_v19 = vpop.permute.xlu0 %1911  ;;  %3423 = vmatmul.msk.bf16.vlgmr.msra.gmra.mxu0 %vm283_vm8, %v1766_v63  ;;  %v2121_v26 = vpop.permute.xlu2 %2120 }
0x10a1   :  { %1903 = vmatpush.bf16.xpose.msrb.mxu0 %v1894_v14  ;;  %v1917_v20 = vsel %vm283_vm8, %v1912_v19, 0  ;;  %v2126_v29 = vsel %vm283_vm8, %v2121_v26, 0 }
0x10a2   :  { %1926 = vmatpush.bf16.xpose.msrb.mxu1 %v1917_v20 }
0x10a7   :  { %v2026_v23 = vpop.permute.xlu1 %2025 }
0x10a8   :  { %v1910_v24 = vpop.permute.xlu0 %1909  ;;  %v2142_v34 = vpop.permute.xlu2 %2141 }
0x10a9   :  { %2019 = vmatpush.bf16.xpose.msra.mxu0 %v2010_v18  ;;  %3428 = vmatmul.msk.bf16.vlgmr.msrb.gmra.mxu1 %vm283_vm8, %v1910_v24 }
0x10aa   :  { %2042 = vmatpush.bf16.xpose.msra.mxu1 %v2033_v22 }
0x10af   :  { %v2119_v27 = vpop.permute.xlu1 %2118 }
0x10b0   :  { %v2003_v28 = vpop.permute.xlu0 %2002  ;;  %3427 = vmatmul.msk.bf16.vlgmr.msrb.gmra.mxu0 %vm283_vm8, %v1887_v12 }
0x10b1   :  { %2135 = vmatpush.bf16.xpose.msrb.mxu0 %v2126_v29 }
0x10b7   :  { %v1845_v30 = vpop.permute.xlu1 %1844 }
0x10b8   :  { %v1850_v31 = vsel %vm360_vm10, %v1845_v30, 0  ;;  %v2144_v3 = vpop.permute.xlu0 %2143 }
0x10b9   :  { %v2149_v33 = vsel %vm283_vm8, %v2144_v3, 0  ;;  %3432 = vmatmul.msk.bf16.vlgmr.msra.gmra.mxu1 %vm283_vm8, %v2026_v23  ;;  %1859 = vmatpush.bf16.msrb.mxu2 %v1850_v31 }
0x10ba   :  { %2158 = vmatpush.bf16.xpose.msrb.mxu1 %v2149_v33 }
0x10c0   :  { %3431 = vmatmul.msk.bf16.vlgmr.msra.gmra.mxu0 %vm283_vm8, %v2003_v28 }
0x10c9   :  { %3436 = vmatmul.msk.bf16.vlgmr.msrb.gmra.mxu1 %vm283_vm8, %v2142_v34 }
0x10d0   :  { %3435 = vmatmul.msk.bf16.vlgmr.msrb.gmra.mxu0 %vm283_vm8, %v2119_v27 }
0x110d   :  { %v1812_v35 = vpop.f32.mrf.mxu1 }
0x110e   :  { %v1817_v25 = vmul.f32 0.35355338, %v1812_v35 }
0x1110   :  { %v1819_v36 = vadd.f32 %v1817_v25, %v4216_v41 }
0x1112   :  { %v1823_v37 = vsel %vm283_vm8, %v1819_v36, -inf }
0x1113   :  { %1824 = vmax.xlane.f32.xlu1 %v1823_v37 }
0x1115   :  { %v1814_v38 = vpop.f32.mrf.mxu1 }
0x111d   :  { %v1788_v39 = vpop.f32.mrf.mxu0 }
0x111e   :  { %v1816_v62 = vmul.f32 0.35355338, %v1788_v39 }
0x1120   :  { %v1818_v40 = vadd.f32 %v1816_v62, %v4212_v32 }
0x1122   :  { %v1820_v42 = vsel %vm283_vm8, %v1818_v40, -inf }
0x1123   :  { %1821 = vmax.xlane.f32.xlu0 %v1820_v42 }
0x1125   :  { %v1790_v43 = vpop.f32.mrf.mxu0 }
0x1126   :  { %v1928_v44 = vpop.f32.mrf.mxu1 }
0x1127   :  { %v1933_v45 = vmul.f32 0.35355338, %v1928_v44 }
0x1129   :  { %v1935_v49 = vadd.f32 %v1933_v45, %v4216_v41 }
0x112b   :  { %v1939_v50 = vsel %vm283_vm8, %v1935_v49, -inf }
0x112c   :  { %1940 = vmax.xlane.f32.xlu0 %v1939_v50 }
0x112d   :  { %v1905_v51 = vpop.f32.mrf.mxu0 }
0x112e   :  { %v1930_v55 = vpop.f32.mrf.mxu1  ;;  %v1932_v47 = vmul.f32 0.35355338, %v1905_v51 }
0x1130   :  { %v1934_v58 = vadd.f32 %v1932_v47, %v4212_v32 }
0x1132   :  { %v1936_v60 = vsel %vm283_vm8, %v1934_v58, -inf }
0x1133   :  { %1937 = vmax.xlane.f32.xlu2 %v1936_v60 }
0x1135   :  { %v1907_v48 = vpop.f32.mrf.mxu0 }
0x1136   :  { %v2044_v63 = vpop.f32.mrf.mxu1 }
0x1137   :  { %v2049_v0 = vmul.f32 0.35355338, %v2044_v63 }
0x1139   :  { %v2051_v2 = vadd.f32 %v2049_v0, %v4216_v41 }
0x113b   :  { %v2055_v5 = vsel %vm283_vm8, %v2051_v2, -inf }
0x113c   :  { %2056 = vmax.xlane.f32.xlu2 %v2055_v5 }
0x113d   :  { %v2021_v6 = vpop.f32.mrf.mxu0 }
0x113e   :  { %v2046_v8 = vpop.f32.mrf.mxu1  ;;  %v2048_v11 = vmul.f32 0.35355338, %v2021_v6 }
0x1140   :  { %1960 = vrot.lane.b32.xlu0 %v4505_v1, %s4904_s3  ;;  %v2050_v12 = vadd.f32 %v2048_v11, %v4212_v32 }
0x1142   :  { %v2052_v13 = vsel %vm283_vm8, %v2050_v12, -inf }
0x1143   :  { %2053 = vmax.xlane.f32.xlu1 %v2052_v13 }
0x1145   :  { %v2023_v14 = vpop.f32.mrf.mxu0 }
0x1146   :  { %v2160_v15 = vpop.f32.mrf.mxu1 }
0x1147   :  { %v2165_v16 = vmul.f32 0.35355338, %v2160_v15 }
0x1149   :  { %v2167_v17 = vadd.f32 %v2165_v16, %v4216_v41 }
0x114b   :  { %v2171_v57 = vsel %vm283_vm8, %v2167_v17, -inf }
0x114c   :  { %2172 = vmax.xlane.f32.xlu1 %v2171_v57 }
0x114d   :  { %v2137_v18 = vpop.f32.mrf.mxu0 }
0x114e   :  { %v2162_v19 = vpop.f32.mrf.mxu1  ;;  %v2164_v22 = vmul.f32 0.35355338, %v2137_v18 }
0x1150   :  { %v4581_v23 = vadd.f32 %v2164_v22, %v4212_v32 }
0x1152   :  { %v2168_v24 = vsel %vm283_vm8, %v4581_v23, -inf }
0x1154   :  { %1865 = vrot.lane.b32.xlu2 %v4515_v7, %s4903_s29  ;;  %s4906_s29 = smov 40  }
0x1155   :  { %v2139_v20 = vpop.f32.mrf.mxu0 }
0x1165   :  { %1981 = vrot.lane.b32.xlu1 %v4515_v7, %s4904_s3  ;;  %s4908_s3 = smov 16  }
0x116a   :  { %2169 = vmax.xlane.f32.xlu0 %v2168_v24 }
0x117e   :  { %2076 = vrot.lane.b32.xlu0 %v4505_v1, %s4905_s7 }
0x1186   :  { %v1825_v41 = vpop.xlane.xlu1 %1824 }
0x1187   :  { %v1827_v26 = vsub.f32 %v1819_v36, %v1825_v41 }
0x1189   :  { %v1830_v29 = vmul.f32 1.442695, %v1827_v26 }
0x1196   :  { %v1822_v27 = vpop.xlane.xlu0 %1821 }
0x1197   :  { %v1826_v28 = vsub.f32 %v1818_v40, %v1822_v27 }
0x1199   :  { %v1828_v30 = vmul.f32 1.442695, %v1826_v28 }
0x119b   :  { %3823 = vpow2.f32 %v1828_v30 }
0x119c   :  { %3825 = vpow2.f32 %v1830_v29 }
0x119f   :  { %v1941_v33 = vpop.xlane.xlu0 %1940 }
0x11a0   :  { %v1943_v36 = vsub.f32 %v1935_v49, %v1941_v33 }
0x11a1   :  { %v4587_v31 = vpop.eup %3823 }
0x11a2   :  { %v1832_v32 = vsel %vm283_vm8, %v4587_v31, 0.0  ;;  %v4591_v3 = vpop.eup %3825  ;;  %v1946_v38 = vmul.f32 1.442695, %v1943_v36 }
0x11a3   :  { %1833 = vadd.xlane.f32.xlu2 %v1832_v32  ;;  %v1835_v35 = vsel %vm283_vm8, %v4591_v3, 0.0 }
0x11a6   :  { %v1938_v34 = vpop.xlane.xlu2 %1937 }
0x11a7   :  { %v1942_v25 = vsub.f32 %v1934_v58, %v1938_v34 }
0x11a8   :  { %1836 = vadd.xlane.f32.xlu0 %v1835_v35 }
0x11a9   :  { %v1944_v37 = vmul.f32 1.442695, %v1942_v25 }
0x11ab   :  { %3827 = vpow2.f32 %v1944_v37 }
0x11ac   :  { %3829 = vpow2.f32 %v1946_v38 }
0x11af   :  { %v2057_v39 = vpop.xlane.xlu2 %2056 }
0x11b0   :  { %v2059_v62 = vsub.f32 %v2051_v2, %v2057_v39 }
0x11b1   :  { %v4595_v40 = vpop.eup %3827 }
0x11b2   :  { %v2062_v42 = vmul.f32 1.442695, %v2059_v62  ;;  %v1961_v43 = vpop.permute.xlu0 %1960  ;;  %v1948_v45 = vsel %vm283_vm8, %v4595_v40, 0.0  ;;  %v3830_v51 = vpop.eup %3829 }
0x11b3   :  { %v1966_v44 = vsel %vm360_vm10, %v1961_v43, 0  ;;  %1949 = vadd.xlane.f32.xlu0 %v1948_v45  ;;  %v1951_v63 = vsel %vm283_vm8, %v3830_v51, 0.0 }
0x11b4   :  { %3831 = vpow2.f32 %v2062_v42  ;;  %1975 = vmatpush.bf16.msra.mxu2 %v1966_v44 }
0x11b6   :  { %v2054_v49 = vpop.xlane.xlu1 %2053 }
0x11b7   :  { %v1866_v50 = vpop.permute.xlu2 %1865  ;;  %v2058_v47 = vsub.f32 %v2050_v12, %v2054_v49 }
0x11b8   :  { %v1871_v55 = vsel %vm360_vm10, %v1866_v50, 0 }
0x11b9   :  { %1880 = vmatpush.bf16.msrb.mxu3 %v1871_v55  ;;  %v2060_v60 = vmul.f32 1.442695, %v2058_v47 }
0x11ba   :  { %v4601_v58 = vpop.eup %3831 }
0x11bb   :  { %v2067_v48 = vsel %vm283_vm8, %v4601_v58, 0.0  ;;  %3833 = vpow2.f32 %v2060_v60  ;;  %1952 = vadd.xlane.f32.xlu0 %v1951_v63 }
0x11bc   :  { %2068 = vadd.xlane.f32.xlu1 %v2067_v48 }
0x11bf   :  { %v2173_v0 = vpop.xlane.xlu1 %2172 }
0x11c0   :  { %v2175_v2 = vsub.f32 %v2167_v17, %v2173_v0 }
0x11c1   :  { %v3834_v5 = vpop.eup %3833 }
0x11c2   :  { %v2178_v6 = vmul.f32 1.442695, %v2175_v2  ;;  %v2064_v8 = vsel %vm283_vm8, %v3834_v5, 0.0 }
0x11c3   :  { %2065 = vadd.xlane.f32.xlu2 %v2064_v8 }
0x11c4   :  { %3835 = vpow2.f32 %v2178_v6 }
0x11ca   :  { %v4607_v11 = vpop.eup %3835 }
0x11cb   :  { %v2183_v12 = vsel %vm283_vm8, %v4607_v11, 0.0 }
0x11cc   :  { %2184 = vadd.xlane.f32.xlu2 %v2183_v12 }
0x11cf   :  { %2097 = vrot.lane.b32.xlu0 %v4515_v7, %s4905_s7  ;;  %s4907_s7 = smov 8  }
0x11d5   :  { %2192 = vrot.lane.b32.xlu1 %v4505_v1, %s4906_s29 }
0x11d7   :  { %v1982_v13 = vpop.permute.xlu1 %1981 }
0x11d8   :  { %v1987_v14 = vsel %vm360_vm10, %v1982_v13, 0 }
0x11d9   :  { %1996 = vmatpush.bf16.msra.mxu3 %v1987_v14 }
0x11dd   :  { %v2170_v15 = vpop.xlane.xlu0 %2169 }
0x11de   :  { %v2174_v16 = vsub.f32 %v4581_v23, %v2170_v15 }
0x11e0   :  { %v2176_v17 = vmul.f32 1.442695, %v2174_v16 }
0x11e2   :  { %3837 = vpow2.f32 %v2176_v17 }
0x11e4   :  { %2213 = vrot.lane.b32.xlu2 %v4515_v7, %s4906_s29  ;;  %s4909_s29 = smov 24  }
0x11e8   :  { %v3838_v57 = vpop.eup %3837 }
0x11e9   :  { %v2180_v18 = vsel %vm283_vm8, %v3838_v57, 0.0 }
0x11f0   :  { %v2077_v19 = vpop.permute.xlu0 %2076 }
0x11f1   :  { %v2082_v7 = vsel %vm360_vm10, %v2077_v19, 0 }
0x11f9   :  { %2181 = vadd.xlane.f32.xlu0 %v2180_v18 }
0x1216   :  { %v1834_v20 = vpop.xlane.xlu2 %1833 }
0x1217   :  { %3839 = vrcp.f32 %v1834_v20 }
0x121b   :  { %v1837_v1 = vpop.xlane.xlu0 %1836 }
0x121c   :  { %3841 = vrcp.f32 %v1837_v1 }
0x121d   :  { %v3840_v22 = vpop.eup %3839 }
0x121e   :  { %v1840_v24 = vmul.f32 %v3840_v22, %v4587_v31 }
0x1220   :  { %v1842_v41 = vpack.c.bf16 %v1840_v24, %v1840_v24 }
0x1222   :  { %v3842_v26 = vpop.eup %3841  ;;  %3425 = vmatmul.msk.bf16.vlgmr.msrb.gmra.mxu2 %vm283_vm8, %v1842_v41 }
0x1223   :  { %v1841_v23 = vmul.f32 %v3842_v26, %v4591_v3  ;;  %2091 = vmatpush.bf16.msrb.mxu2 %v2082_v7  ;;  %v3586_v26 = vld [vmem:[%s4024_s8 + $0x18] sm:$0xff]  ;;  %v3585_v7 = vld [vmem:[%s4024_s8 + $0x10] sm:$0xff]  ;;  %s4910_s8 = smov 72  }
0x1224   :  { %2296 = vmatpush.bf16.msra.mxu0 %v3586_v26 }
0x1225   :  { %v1843_v27 = vpack.c.bf16 %v1841_v23, %v1841_v23 }
0x1226   :  { %v1950_v28 = vpop.xlane.xlu0 %1949 }
0x1227   :  { %3426 = vmatmul.msk.bf16.vlgmr.msrb.gmra.mxu3 %vm283_vm8, %v1843_v27  ;;  %3843 = vrcp.f32 %v1950_v28 }
0x1228   :  { %2297 = vmatpush.bf16.msra.mxu0 %v3585_v7 }
0x122d   :  { %v3844_v29 = vpop.eup %3843 }
0x122e   :  { %v1956_v30 = vmul.f32 %v3844_v29, %v4595_v40  ;;  %v1953_v32 = vpop.xlane.xlu0 %1952 }
0x122f   :  { %3845 = vrcp.f32 %v1953_v32  ;;  %v2069_v3 = vpop.xlane.xlu1 %2068 }
0x1230   :  { %v1958_v33 = vpack.c.bf16 %v1956_v30, %v1956_v30 }
0x1232   :  { %3429 = vmatmul.msk.bf16.vlgmr.msra.gmra.mxu2 %vm283_vm8, %v1958_v33 }
0x1235   :  { %v3846_v31 = vpop.eup %3845 }
0x1236   :  { %v2066_v34 = vpop.xlane.xlu2 %2065  ;;  %v1957_v35 = vmul.f32 %v3846_v31, %v3830_v51 }
0x1237   :  { %3847 = vrcp.f32 %v2066_v34 }
0x1238   :  { %v1959_v25 = vpack.c.bf16 %v1957_v35, %v1957_v35  ;;  %3849 = vrcp.f32 %v2069_v3 }
0x123a   :  { %3430 = vmatmul.msk.bf16.vlgmr.msra.gmra.mxu3 %vm283_vm8, %v1959_v25 }
0x123d   :  { %v3848_v36 = vpop.eup %3847 }
0x123e   :  { %v2072_v37 = vmul.f32 %v3848_v36, %v3834_v5  ;;  %v3850_v40 = vpop.eup %3849 }
0x123f   :  { %v2185_v38 = vpop.xlane.xlu2 %2184  ;;  %v2073_v43 = vmul.f32 %v3850_v40, %v4601_v58 }
0x1240   :  { %v2074_v39 = vpack.c.bf16 %v2072_v37, %v2072_v37  ;;  %3851 = vrcp.f32 %v2185_v38 }
0x1241   :  { %v2098_v62 = vpop.permute.xlu0 %2097  ;;  %v2075_v51 = vpack.c.bf16 %v2073_v43, %v2073_v43 }
0x1242   :  { %v2103_v42 = vsel %vm360_vm10, %v2098_v62, 0  ;;  %3433 = vmatmul.msk.bf16.vlgmr.msrb.gmra.mxu2 %vm283_vm8, %v2074_v39  ;;  %v3724_v62 = vld [vmem:[%s4029_s14 + $0x1] ss:$0 sm:$0xff] }
0x1243   :  { %2112 = vmatpush.bf16.msrb.mxu3 %v2103_v42 }
0x1246   :  { %v3852_v55 = vpop.eup %3851 }
0x1247   :  { %v2193_v44 = vpop.permute.xlu1 %2192  ;;  %v2214_v45 = vpop.permute.xlu2 %2213  ;;  %v2189_v47 = vmul.f32 %v3852_v55, %v4607_v11  ;;  %v3590_v55 = vld [vmem:[%s4054_s12 + $0x18] sm:$0xff] }
0x1248   :  { %v2198_v50 = vsel %vm360_vm10, %v2193_v44, 0  ;;  %v2219_v49 = vsel %vm360_vm10, %v2214_v45, 0 }
0x1249   :  { %2207 = vmatpush.bf16.msra.mxu2 %v2198_v50  ;;  %2228 = vmatpush.bf16.msra.mxu3 %v2219_v49  ;;  %v2191_v60 = vpack.c.bf16 %v2189_v47, %v2189_v47 }
0x124a   :  { %3434 = vmatmul.msk.bf16.vlgmr.msrb.gmra.mxu3 %vm283_vm8, %v2075_v51 }
0x124d   :  { %2432 = vmatpush.bf16.msrb.mxu2 %v3590_v55 }
0x125a   :  { %3438 = vmatmul.msk.bf16.vlgmr.msra.gmra.mxu3 %vm283_vm8, %v2191_v60 }
0x126c   :  { %v2182_v48 = vpop.xlane.xlu0 %2181 }
0x126d   :  { %3853 = vrcp.f32 %v2182_v48 }
0x1273   :  { %v3854_v58 = vpop.eup %3853 }
0x1274   :  { %v2188_v63 = vmul.f32 %v3854_v58, %v3838_v57 }
0x1276   :  { %v2190_v0 = vpack.c.bf16 %v2188_v63, %v2188_v63 }
0x1278   :  { %3437 = vmatmul.msk.bf16.vlgmr.msra.gmra.mxu2 %vm283_vm8, %v2190_v0 }
0x12a5   :  { %v1861_v2 = vpop.f32.mrf.mxu2 }
0x12aa   :  { %v1882_v5 = vpop.f32.mrf.mxu3 }
0x12ad   :  { %v1863_v6 = vpop.f32.mrf.mxu2 }
0x12ae   :  { %v3589_v6 = vld [vmem:[%s4054_s12 + $0x10] sm:$0xff]  ;;  %s3919_s12 = scalar_lea.hbm %s4124_s27, 16 }
0x12af   :  { %2433 = vmatpush.bf16.msrb.mxu2 %v3589_v6 }
0x12b2   :  { %v1884_v8 = vpop.f32.mrf.mxu3  ;;  %3482 = vmatmul.msk.bf16.vlgmr.msrb.gmra.mxu2 %vm165_vm0, %v4317_v46 }
0x12b3   :  { %v3588_v8 = vld [vmem:[%s4044_s30 + $0x18] sm:$0xff] }
0x12b4   :  { %2396 = vmatpush.bf16.msra.mxu1 %v3588_v8 }
0x12b5   :  { %v1977_v12 = vpop.f32.mrf.mxu2 }
0x12bd   :  { %v1979_v13 = vpop.f32.mrf.mxu2  ;;  %v1998_v14 = vpop.f32.mrf.mxu3 }
0x12be   :  { %v3678_v15 = vpack.i.bf16 %v1998_v14, %v1977_v12 }
0x12c0   :  { %3679 = vrot.lane.b32.xlu0 %v3678_v15, %s4907_s7  ;;  %v3587_v15 = vld [vmem:[%s4044_s30 + $0x10] sm:$0xff] }
0x12c1   :  { %2397 = vmatpush.bf16.msra.mxu1 %v3587_v15 }
0x12c2   :  { %3483 = vmatmul.msk.bf16.gmra.mxu2 %vm165_vm0, %v4324_v53 }
0x12c5   :  { %v2093_v11 = vpop.f32.mrf.mxu2  ;;  %v2000_v16 = vpop.f32.mrf.mxu3 }
0x12cd   :  { %v2095_v17 = vpop.f32.mrf.mxu2  ;;  %v2114_v18 = vpop.f32.mrf.mxu3 }
0x12ce   :  { %v3683_v57 = vpack.i.bf16 %v2114_v18, %v2093_v11 }
0x12d0   :  { %3684 = vrot.lane.b32.xlu2 %v3683_v57, %s4908_s3 }
0x12d5   :  { %v2116_v19 = vpop.f32.mrf.mxu3 }
0x12dd   :  { %v2230_v20 = vpop.f32.mrf.mxu3 }
0x12e5   :  { %v2232_v1 = vpop.f32.mrf.mxu3 }
0x12fb   :  { %v2209_v22 = vpop.f32.mrf.mxu2 }
0x12fc   :  { %v3688_v24 = vpack.i.bf16 %v2230_v20, %v2209_v22 }
0x12fe   :  { %3689 = vrot.lane.b32.xlu1 %v3688_v24, %s4909_s29 }
0x1303   :  { %v2211_v41 = vpop.f32.mrf.mxu2 }
0x132a   :  { %v3685_v29 = vpop.permute.xlu2 %3684 }
0x132b   :  { %v3687_v33 = vunpack.i.h.bf16 %v3685_v29  ;;  %v3686_v31 = vunpack.i.l.bf16 %v3685_v29 }
0x1332   :  { %v3680_v23 = vpop.permute.xlu0 %3679 }
0x1333   :  { %v3682_v27 = vunpack.i.h.bf16 %v3680_v23  ;;  %v3681_v28 = vunpack.i.l.bf16 %v3680_v23  ;;  %v3725_v23 = vld [vmem:[%s4034_s19 + $0x1] ss:$0 sm:$0xff]  ;;  %s3257_s19 = sshll.u32 %s4124_s27, 4  ;;  %s3258_s19 = int_to_ptr.hbm [resolvable:$true] %s3257_s19 }
0x1335   :  { %v2259_v30 = vsel %vm283_vm8, %v1882_v5, %v3682_v27  ;;  %v2258_v32 = vsel %vm283_vm8, %v1861_v2, %v3681_v28 }
0x1336   :  { %v2260_v25 = vsel %vm772_vm11, %v2258_v32, %v3686_v31  ;;  %v2261_v36 = vsel %vm772_vm11, %v2259_v30, %v3687_v33  ;;  %v3726_v30 = vld [vmem:[%s4039_s24 + $0x1] ss:$0 sm:$0xff]  ;;  %s3915_s24 = sshra.s32 %s3258_s19, 4  ;;  %s3916_s24 = int_to_ptr.hbm [resolvable:$true] %s3915_s24 }
0x1337   :  { %s3917_s30 = scalar_lea.hbm %s3916_s24, 16  ;;  %p3920_p1 = scmp.lt.s32.totalorder %s3916_s24, %s4124_s27 }
0x1338   :  { %p3918_p0 = scmp.ne.s32.totalorder %s3916_s24, %s3917_s30  ;;  %p3921_p2 = scmp.lt.s32.totalorder %s3919_s12, %s3917_s30 }
0x133a   :  { %p3922_p3 = por %p3921_p2, %p3920_p1 }
0x133c   :  { %p3923_p4 = pnand %p3922_p3, %p3918_p0 }
0x1370   :  { %v3690_v34 = vpop.permute.xlu1 %3689 }
0x1371   :  { %v3692_v35 = vunpack.i.h.bf16 %v3690_v34  ;;  %v3691_v3 = vunpack.i.l.bf16 %v3690_v34 }
0x1373   :  { %v2262_v37 = vsel %vm775_vm12, %v2260_v25, %v3691_v3  ;;  %v2263_v38 = vsel %vm775_vm12, %v2261_v36, %v3692_v35  ;;  %v3727_v25 = vld [vmem:[%s4059_s20 + $0x1] ss:$0 sm:$0xff]  ;;  %v2435_v36 = vpop.f32.mrf.mxu2 }
0x1374   :  { %v2264_v39 = vpack.c.bf16 %v2263_v38, %v2262_v37  ;;  %v2436_v37 = vadd.f32 %v3727_v25, %v2435_v36 }
0x1376   :  { %3452 = vmatmul.msk.bf16.vlgmr.msra.gmra.mxu0 %vm165_vm0, %v2264_v39  ;;  %v2447_v38 = vpack.c.bf16 %v2436_v37, %v2436_v37 }
0x137b   :  { %v2437_v39 = vpop.f32.mrf.mxu2 }
0x13f3   :  { %v2299_v40 = vpop.f32.mrf.mxu0 }
0x13f4   :  { %v2300_v42 = vadd.f32 %v3724_v62, %v2299_v40  ;;  %v2453_v40 = vunpack.c.l.b16 %v2447_v38 }
0x13f6   :  { %v2304_v43 = vadd.f32 %v2300_v42, %v4493_v52 }
0x13f8   :  { %v2310_v44 = vsel %vm165_vm0, %v2304_v43, 0.0 }
0x13f9   :  { %2311 = vadd.xlane.f32.xlu2 %v2310_v44 }
0x13fb   :  { %v2301_v45 = vpop.f32.mrf.mxu0 }
0x13fc   :  { %v2302_v50 = vadd.f32 %v3724_v62, %v2301_v45  ;;  %v2438_v62 = vadd.f32 %v3727_v25, %v2437_v39  ;;  %v2440_v45 = vpop.f32.mrf.mxu2 }
0x13fe   :  { %v2305_v49 = vadd.f32 %v2302_v50, %v4495_v56  ;;  %v2448_v42 = vpack.c.bf16 %v2438_v62, %v2438_v62 }
0x1400   :  { %v2313_v51 = vsel %vm165_vm0, %v2305_v49, 0.0 }
0x1401   :  { %2314 = vadd.xlane.f32.xlu1 %v2313_v51 }
0x1404   :  { %v2442_v55 = vpop.f32.mrf.mxu2 }
0x146c   :  { %v2312_v47 = vpop.xlane.xlu2 %2311 }
0x146d   :  { %v2316_v60 = vmul.f32 %v2312_v47, %v4135_v10  ;;  %v2443_v47 = vadd.f32 %v3727_v25, %v2442_v55 }
0x146f   :  { %v2318_v48 = vsub.f32 %v2304_v43, %v2316_v60  ;;  %v2454_v43 = vunpack.c.l.b16 %v2448_v42 }
0x1471   :  { %v2320_v58 = vmul.f32 %v2318_v48, %v2318_v48  ;;  %v4678_v44 = vpack.c.b16 %v2454_v43, %v2453_v40 }
0x1473   :  { %v2322_v52 = vsel %vm165_vm0, %v2320_v58, 0.0  ;;  %v2460_v50 = vsel %vm283_vm8, %v4678_v44, 0 }
0x1474   :  { %v2315_v63 = vpop.xlane.xlu1 %2314  ;;  %2323 = vadd.xlane.f32.xlu0 %v2322_v52  ;;  %2469 = vmatpush.bf16.xpose.msrb.mxu3 %v2460_v50 }
0x1475   :  { %v2317_v0 = vmul.f32 %v2315_v63, %v4135_v10 }
0x1477   :  { %v2319_v56 = vsub.f32 %v2305_v49, %v2317_v0  ;;  %v2441_v49 = vadd.f32 %v3727_v25, %v2440_v45  ;;  %v3728_v0 = vld [vmem:[%s4891_s9 + $0x1] ss:$0 sm:$0xff] }
0x1479   :  { %v2321_v2 = vmul.f32 %v2319_v56, %v2319_v56  ;;  %v2449_v51 = vpack.c.bf16 %v2441_v49, %v2441_v49 }
0x147b   :  { %v2325_v5 = vsel %vm165_vm0, %v2321_v2, 0.0  ;;  %v2477_v60 = vunpack.c.l.b16 %v2449_v51 }
0x147c   :  { %2326 = vadd.xlane.f32.xlu2 %v2325_v5 }
0x1488   :  { %2570 = vrot.lane.b32.xlu0 %v4678_v44, %s3964_s10 }
0x14e7   :  { %v2324_v12 = vpop.xlane.xlu0 %2323 }
0x14e8   :  { %v2328_v13 = vmul.f32 %v2324_v12, %v4135_v10 }
0x14ea   :  { %v2330_v14 = vadd.f32 1e-12, %v2328_v13 }
0x14ec   :  { %3855 = vrsqrt.f32 %v2330_v14  ;;  %vm2338_vm6 = vweird.f32 %v2330_v14 }
0x14ef   :  { %v2327_v11 = vpop.xlane.xlu2 %2326 }
0x14f0   :  { %v2329_v16 = vmul.f32 %v2327_v11, %v4135_v10 }
0x14f2   :  { %v3856_v17 = vpop.eup %3855  ;;  %v2331_v18 = vadd.f32 1e-12, %v2329_v16 }
0x14f3   :  { %v2333_v57 = vmul.f32 %v3856_v17, %v2330_v14  ;;  %vm2339_vm10 = vweird.f32 %v3856_v17 }
0x14f4   :  { %3857 = vrsqrt.f32 %v2331_v18  ;;  %vm2340_vm7 = vmor %vm2338_vm6, %vm2339_vm10  ;;  %vm2348_vm13 = vweird.f32 %v2331_v18 }
0x14f5   :  { %v2334_v46 = vmul.f32 %v3856_v17, %v2333_v57 }
0x14f7   :  { %v2335_v19 = vmul.f32 0.5, %v2334_v46 }
0x14f9   :  { %v2336_v53 = vsub.f32 1.5, %v2335_v19 }
0x14fa   :  { %v3858_v20 = vpop.eup %3857  ;;  %v2571_v16 = vpop.permute.xlu0 %2570 }
0x14fb   :  { %v2337_v1 = vmul.f32 %v3856_v17, %v2336_v53  ;;  %v2343_v22 = vmul.f32 %v3858_v20, %v2331_v18  ;;  %vm2349_vm9 = vweird.f32 %v3858_v20 }
0x14fc   :  { %vm2350_vm15 = vmor %vm2348_vm13, %vm2349_vm9 }
0x14fd   :  { %v2344_v24 = vmul.f32 %v3858_v20, %v2343_v22  ;;  %v2341_v41 = vsel %vm2340_vm7, %v3856_v17, %v2337_v1  ;;  %v2576_v17 = vsel %vm283_vm8, %v2571_v16, 0 }
0x14fe   :  { %v2352_v27 = vmul.f32 %v2341_v41, %v2318_v48  ;;  %v2450_v48 = vpack.c.bf16 %v2443_v47, %v2443_v47 }
0x14ff   :  { %v2345_v26 = vmul.f32 0.5, %v2344_v24 }
0x1500   :  { %v2357_v32 = vmul.f32 %v3725_v23, %v2352_v27  ;;  %v2478_v58 = vunpack.c.l.b16 %v2450_v48 }
0x1501   :  { %v2346_v7 = vsub.f32 1.5, %v2345_v26 }
0x1502   :  { %v4670_v34 = vadd.f32 %v3726_v30, %v2357_v32  ;;  %v4684_v52 = vpack.c.b16 %v2478_v58, %v2477_v60 }
0x1503   :  { %v2347_v28 = vmul.f32 %v3858_v20, %v2346_v7 }
0x1504   :  { %v2484_v63 = vsel %vm283_vm8, %v4684_v52, 0  ;;  %2596 = vrot.lane.b32.xlu2 %v4684_v52, %s3964_s10 }
0x1505   :  { %v2351_v29 = vsel %vm2350_vm15, %v3858_v20, %v2347_v28  ;;  %2493 = vmatpush.bf16.xpose.msrb.mxu0 %v2484_v63 }
0x1506   :  { %v2353_v33 = vmul.f32 %v2351_v29, %v2319_v56 }
0x1508   :  { %v2358_v31 = vmul.f32 %v3725_v23, %v2353_v33 }
0x150a   :  { %v4672_v35 = vadd.f32 %v3726_v30, %v2358_v31 }
0x150c   :  { %v2364_v3 = vpack.c.bf16 %v4672_v35, %v4670_v34 }
0x150d   :  { %2585 = vmatpush.bf16.xpose.msra.mxu0 %v2576_v17 }
0x150e   :  { %3468 = vmatmul.msk.bf16.vlgmr.msra.gmra.mxu1 %vm165_vm0, %v2364_v3 }
0x155e   :  { %v2597_v33 = vpop.permute.xlu2 %2596 }
0x155f   :  { %v2602_v31 = vsel %vm283_vm8, %v2597_v33, 0 }
0x158b   :  { %v2399_v56 = vpop.f32.mrf.mxu1 }
0x158c   :  { %v2400_v2 = vadd.f32 %v3728_v0, %v2399_v56 }
0x158e   :  { %v2445_v5 = vpack.c.bf16 %v2400_v2, %v2400_v2 }
0x1590   :  { %v2566_v6 = vunpack.c.l.b16 %v2445_v5  ;;  %3484 = vmatmul.msk.bf16.vlgmr.msrb.gmra.mxu3 %vm283_vm8, %v2445_v5 }
0x1592   :  { %v2567_v8 = vpack.c.b16 %v2566_v6, %v2566_v6 }
0x1593   :  { %v2401_v12 = vpop.f32.mrf.mxu1 }
0x1594   :  { %v2402_v13 = vadd.f32 %v3728_v0, %v2401_v12  ;;  %2568 = vrot.lane.b32.xlu0 %v2567_v8, %s3964_s10 }
0x1596   :  { %v2446_v14 = vpack.c.bf16 %v2402_v13, %v2402_v13 }
0x1598   :  { %3485 = vmatmul.msk.bf16.vlgmr.msrb.gmra.mxu0 %vm283_vm8, %v2446_v14  ;;  %v2592_v15 = vunpack.c.l.b16 %v2446_v14 }
0x159a   :  { %v2593_v11 = vpack.c.b16 %v2592_v15, %v2592_v15 }
0x159c   :  { %2708 = vrot.lane.b32.xlu0 %v4684_v52, %s3962_s25 }
0x15a4   :  { %2797 = vrot.lane.b32.xlu0 %v4678_v44, %s3965_s11 }
0x15ac   :  { %2818 = vrot.lane.b32.xlu0 %v2593_v11, %s3965_s11 }
0x1606   :  { %v2569_v18 = vpop.permute.xlu0 %2568 }
0x1607   :  { %3488 = vmatmul.msk.bf16.vlgmr.msra.gmra.mxu0 %vm283_vm8, %v2569_v18 }
0x160e   :  { %v2709_v49 = vpop.permute.xlu0 %2708 }
0x160f   :  { %v2714_v56 = vsel %vm283_vm8, %v2709_v49, 0 }
0x1613   :  { %v2471_v57 = vpop.f32.mrf.mxu3 }
0x1614   :  { %v2499_v46 = vmul.f32 0.35355338, %v2471_v57 }
0x1615   :  { %v2495_v19 = vpop.f32.mrf.mxu0 }
0x1616   :  { %v2501_v53 = vadd.f32 %v2499_v46, %v4374_v9  ;;  %v2500_v24 = vmul.f32 0.35355338, %v2495_v19  ;;  %v2798_v47 = vpop.permute.xlu0 %2797 }
0x1617   :  { %v2803_v63 = vsel %vm283_vm8, %v2798_v47, 0 }
0x1618   :  { %v2503_v20 = vsel %vm772_vm11, %v2501_v53, -inf  ;;  %v2502_v41 = vadd.f32 %v2500_v24, %v4376_v21 }
0x1619   :  { %2504 = vmax.xlane.f32.xlu1 %v2503_v20 }
0x161a   :  { %v2506_v26 = vsel %vm772_vm11, %v2502_v41, -inf }
0x161b   :  { %v2473_v1 = vpop.f32.mrf.mxu3 }
0x161d   :  { %v2497_v22 = vpop.f32.mrf.mxu0 }
0x1632   :  { %2527 = vrot.lane.b32.xlu1 %v4678_v44, %s3960_s5 }
0x163a   :  { %2594 = vrot.lane.b32.xlu1 %v2593_v11, %s3964_s10 }
0x1642   :  { %2683 = vrot.lane.b32.xlu1 %v2567_v8, %s3962_s25 }
0x164a   :  { %2820 = vrot.lane.b32.xlu1 %v4684_v52, %s3965_s11 }
0x1674   :  { %2507 = vmax.xlane.f32.xlu1 %v2506_v26 }
0x1684   :  { %v2587_v7 = vpop.f32.mrf.mxu0 }
0x1685   :  { %v2617_v38 = vmul.f32 0.35355338, %v2587_v7 }
0x1687   :  { %v2619_v39 = vadd.f32 %v2617_v38, %v4374_v9 }
0x1689   :  { %v2621_v42 = vsel %vm772_vm11, %v2619_v39, -inf }
0x168c   :  { %v2589_v23 = vpop.f32.mrf.mxu0  ;;  %v2505_v27 = vpop.xlane.xlu1 %2504 }
0x168d   :  { %v2509_v28 = vsub.f32 %v2501_v53, %v2505_v27 }
0x168f   :  { %v2511_v29 = vmul.f32 1.442695, %v2509_v28 }
0x1691   :  { %3859 = vpow2.f32 %v2511_v29 }
0x1697   :  { %v3860_v30 = vpop.eup %3859 }
0x1698   :  { %v2515_v32 = vsel %vm772_vm11, %v3860_v30, 0.0 }
0x1699   :  { %2516 = vadd.xlane.f32.xlu2 %v2515_v32 }
0x16a4   :  { %v2528_v3 = vpop.permute.xlu1 %2527 }
0x16a5   :  { %2540 = vmatpush.bf16.msrb.mxu1 %v2528_v3 }
0x16a9   :  { %2611 = vmatpush.bf16.xpose.msra.mxu1 %v2602_v31 }
0x16ac   :  { %v2595_v25 = vpop.permute.xlu1 %2594 }
0x16b1   :  { %2685 = vrot.lane.b32.xlu2 %v4678_v44, %s3962_s25 }
0x16b4   :  { %v2684_v36 = vpop.permute.xlu1 %2683 }
0x16b9   :  { %2706 = vrot.lane.b32.xlu2 %v2593_v11, %s3962_s25 }
0x16bc   :  { %v2821_v37 = vpop.permute.xlu1 %2820 }
0x16bd   :  { %v2826_v5 = vsel %vm283_vm8, %v2821_v37, 0 }
0x16c1   :  { %2795 = vrot.lane.b32.xlu2 %v2567_v8, %s3965_s11  ;;  %v2819_v8 = vpop.permute.xlu0 %2818 }
0x16e7   :  { %v2508_v62 = vpop.xlane.xlu1 %2507 }
0x16e8   :  { %v2510_v40 = vsub.f32 %v2502_v41, %v2508_v62 }
0x16ea   :  { %v2513_v43 = vmul.f32 1.442695, %v2510_v40  ;;  %2622 = vmax.xlane.f32.xlu2 %v2621_v42 }
0x16ec   :  { %3861 = vpow2.f32 %v2513_v43 }
0x16f2   :  { %v4719_v45 = vpop.eup %3861 }
0x16f3   :  { %v2518_v50 = vsel %vm772_vm11, %v4719_v45, 0.0 }
0x16f4   :  { %2519 = vadd.xlane.f32.xlu2 %v2518_v50 }
0x170c   :  { %v2517_v51 = vpop.xlane.xlu2 %2516 }
0x170d   :  { %3863 = vrcp.f32 %v2517_v51 }
0x1713   :  { %v3864_v55 = vpop.eup %3863 }
0x1714   :  { %v2523_v60 = vmul.f32 %v3864_v55, %v3860_v30  ;;  %v2686_v48 = vpop.permute.xlu2 %2685 }
0x1715   :  { %v2691_v58 = vsel %vm283_vm8, %v2686_v48, 0 }
0x1716   :  { %v2525_v0 = vpack.c.bf16 %v2523_v60, %v2523_v60  ;;  %2700 = vmatpush.bf16.xpose.msrb.mxu0 %v2691_v58 }
0x1718   :  { %3486 = vmatmul.msk.bf16.vlgmr.msrb.gmra.mxu1 %vm772_vm11, %v2525_v0 }
0x1719   :  { %2723 = vmatpush.bf16.xpose.msrb.mxu1 %v2714_v56 }
0x171c   :  { %v2707_v2 = vpop.permute.xlu2 %2706 }
0x171d   :  { %3492 = vmatmul.msk.bf16.vlgmr.msrb.gmra.mxu0 %vm283_vm8, %v2684_v36 }
0x171e   :  { %2812 = vmatpush.bf16.xpose.msra.mxu0 %v2803_v63 }
0x1724   :  { %v2796_v6 = vpop.permute.xlu2 %2795 }
0x1728   :  { %3489 = vmatmul.msk.bf16.vlgmr.msra.gmra.mxu1 %vm283_vm8, %v2595_v25 }
0x1729   :  { %2835 = vmatpush.bf16.xpose.msra.mxu1 %v2826_v5 }
0x172d   :  { %3496 = vmatmul.msk.bf16.vlgmr.msra.gmra.mxu0 %vm283_vm8, %v2796_v6 }
0x1738   :  { %3493 = vmatmul.msk.bf16.vlgmr.msrb.gmra.mxu1 %vm283_vm8, %v2707_v2 }
0x1748   :  { %3497 = vmatmul.msk.bf16.vlgmr.msra.gmra.mxu1 %vm283_vm8, %v2819_v8 }
0x175d   :  { %v2623_v12 = vpop.xlane.xlu2 %2622 }
0x175e   :  { %v2627_v14 = vsub.f32 %v2619_v39, %v2623_v12 }
0x1760   :  { %v2629_v15 = vmul.f32 1.442695, %v2627_v14 }
0x1762   :  { %3865 = vpow2.f32 %v2629_v15 }
0x1767   :  { %v2520_v43 = vpop.xlane.xlu2 %2519 }
0x1768   :  { %v4737_v19 = vpop.eup %3865 }
0x1769   :  { %v2633_v20 = vsel %vm772_vm11, %v4737_v19, 0.0 }
0x1795   :  { %v4733_v13 = vpop.f32.mrf.mxu1 }
0x179a   :  { %v2702_v11 = vpop.f32.mrf.mxu0 }
0x179b   :  { %v2729_v16 = vmul.f32 0.35355338, %v2702_v11 }
0x179d   :  { %v2731_v17 = vadd.f32 %v2729_v16, %v4374_v9  ;;  %v2544_v18 = vpop.f32.mrf.mxu1 }
0x179f   :  { %v2733_v57 = vsel %vm772_vm11, %v2731_v17, -inf }
0x17a0   :  { %2734 = vmax.xlane.f32.xlu1 %v2733_v57 }
0x17a2   :  { %v2704_v46 = vpop.f32.mrf.mxu0 }
0x17a5   :  { %v2613_v53 = vpop.f32.mrf.mxu1 }
0x17a6   :  { %v2618_v26 = vmul.f32 0.35355338, %v2613_v53 }
0x17a8   :  { %2634 = vadd.xlane.f32.xlu1 %v2633_v20  ;;  %v2620_v27 = vadd.f32 %v2618_v26, %v4376_v21 }
0x17aa   :  { %v2814_v1 = vpop.f32.mrf.mxu0  ;;  %v2624_v30 = vsel %vm772_vm11, %v2620_v27, -inf }
0x17ab   :  { %v2841_v22 = vmul.f32 0.35355338, %v2814_v1 }
0x17ad   :  { %v4742_v24 = vadd.f32 %v2841_v22, %v4374_v9  ;;  %v2615_v41 = vpop.f32.mrf.mxu1 }
0x17af   :  { %v2845_v7 = vsel %vm772_vm11, %v4742_v24, -inf }
0x17b0   :  { %2846 = vmax.xlane.f32.xlu0 %v2845_v7 }
0x17b2   :  { %v2816_v23 = vpop.f32.mrf.mxu0 }
0x17b5   :  { %v2725_v28 = vpop.f32.mrf.mxu1 }
0x17b6   :  { %v2730_v29 = vmul.f32 0.35355338, %v2725_v28 }
0x17b8   :  { %v2732_v32 = vadd.f32 %v2730_v29, %v4376_v21  ;;  %2625 = vmax.xlane.f32.xlu0 %v2624_v30 }
0x17ba   :  { %v2736_v33 = vsel %vm772_vm11, %v2732_v32, -inf }
0x17bb   :  { %2737 = vmax.xlane.f32.xlu2 %v2736_v33 }
0x17bd   :  { %v2727_v9 = vpop.f32.mrf.mxu1 }
0x17c5   :  { %v2837_v31 = vpop.f32.mrf.mxu1 }
0x17c6   :  { %v2842_v3 = vmul.f32 0.35355338, %v2837_v31 }
0x17c8   :  { %v2844_v25 = vadd.f32 %v2842_v3, %v4376_v21 }
0x17ca   :  { %v2848_v36 = vsel %vm772_vm11, %v2844_v25, -inf }
0x17cb   :  { %2849 = vmax.xlane.f32.xlu1 %v2848_v36 }
0x17cc   :  { %2546 = vrot.lane.b32.xlu0 %v4684_v52, %s3960_s5 }
0x17cd   :  { %v2839_v37 = vpop.f32.mrf.mxu1 }
0x17d3   :  { %2664 = vrot.lane.b32.xlu2 %v4684_v52, %s3959_s0 }
0x17db   :  { %2757 = vrot.lane.b32.xlu2 %v4678_v44, %s3961_s21 }
0x17e4   :  { %2645 = vrot.lane.b32.xlu1 %v4678_v44, %s3959_s0 }
0x1813   :  { %v2735_v38 = vpop.xlane.xlu1 %2734 }
0x1814   :  { %v2739_v39 = vsub.f32 %v2731_v17, %v2735_v38 }
0x1816   :  { %v2741_v62 = vmul.f32 1.442695, %v2739_v39 }
0x1818   :  { %3867 = vpow2.f32 %v2741_v62 }
0x181b   :  { %v2635_v58 = vpop.xlane.xlu1 %2634 }
0x181e   :  { %v3868_v21 = vpop.eup %3867 }
0x181f   :  { %v2745_v40 = vsel %vm772_vm11, %v3868_v21, 0.0 }
0x1820   :  { %2746 = vadd.xlane.f32.xlu0 %v2745_v40 }
0x1823   :  { %v2847_v42 = vpop.xlane.xlu0 %2846 }
0x1824   :  { %v2851_v20 = vsub.f32 %v4742_v24, %v2847_v42 }
0x1826   :  { %v2853_v1 = vmul.f32 1.442695, %v2851_v20 }
0x182b   :  { %v2626_v50 = vpop.xlane.xlu0 %2625 }
0x182c   :  { %v2628_v49 = vsub.f32 %v2620_v27, %v2626_v50 }
0x182e   :  { %v2631_v51 = vmul.f32 1.442695, %v2628_v49  ;;  %v2738_v55 = vpop.xlane.xlu2 %2737 }
0x182f   :  { %v2740_v47 = vsub.f32 %v2732_v32, %v2738_v55 }
0x1830   :  { %3869 = vpow2.f32 %v2631_v51 }
0x1831   :  { %v2743_v60 = vmul.f32 1.442695, %v2740_v47  ;;  %3871 = vrcp.f32 %v2520_v43 }
0x1833   :  { %3873 = vpow2.f32 %v2743_v60 }
0x1836   :  { %v3870_v48 = vpop.eup %3869  ;;  %v2665_v12 = vpop.permute.xlu2 %2664 }
0x1837   :  { %v2636_v63 = vsel %vm772_vm11, %v3870_v48, 0.0  ;;  %v3872_v0 = vpop.eup %3871 }
0x1838   :  { %2637 = vadd.xlane.f32.xlu2 %v2636_v63  ;;  %v2524_v5 = vmul.f32 %v3872_v0, %v4719_v45 }
0x1839   :  { %v3874_v56 = vpop.eup %3873 }
0x183a   :  { %v2748_v2 = vsel %vm772_vm11, %v3874_v56, 0.0  ;;  %v2526_v15 = vpack.c.bf16 %v2524_v5, %v2524_v5 }
0x183b   :  { %2749 = vadd.xlane.f32.xlu1 %v2748_v2 }
0x183e   :  { %v2547_v6 = vpop.permute.xlu0 %2546  ;;  %v2850_v8 = vpop.xlane.xlu1 %2849 }
0x183f   :  { %v2852_v14 = vsub.f32 %v2844_v25, %v2850_v8  ;;  %2559 = vmatpush.bf16.msra.mxu3 %v2547_v6  ;;  %v2758_v46 = vpop.permute.xlu2 %2757  ;;  %v3592_v8 = vld [vmem:[%s4893_s1 + $0x18] sm:$0xff] }
0x1840   :  { %2969 = vmatpush.bf16.msrb.mxu0 %v3592_v8 }
0x1841   :  { %v2855_v11 = vmul.f32 1.442695, %v2852_v14 }
0x1842   :  { %3487 = vmatmul.msk.bf16.vlgmr.msra.gmra.mxu3 %vm772_vm11, %v2526_v15 }
0x1843   :  { %2677 = vmatpush.bf16.msrb.mxu3 %v2665_v12  ;;  %3875 = vpow2.f32 %v2855_v11  ;;  %v3591_v12 = vld [vmem:[%s4893_s1 + $0x10] sm:$0xff] }
0x1844   :  { %3877 = vrcp.f32 %v2635_v58  ;;  %2970 = vmatpush.bf16.msrb.mxu0 %v3591_v12 }
0x1845   :  { %3879 = vpow2.f32 %v2853_v1 }
0x1849   :  { %v3876_v16 = vpop.eup %3875 }
0x184a   :  { %v2860_v17 = vsel %vm772_vm11, %v3876_v16, 0.0  ;;  %v3878_v45 = vpop.eup %3877 }
0x184b   :  { %2861 = vadd.xlane.f32.xlu0 %v2860_v17  ;;  %v2641_v18 = vmul.f32 %v3878_v45, %v4737_v19  ;;  %v3880_v22 = vpop.eup %3879 }
0x184c   :  { %v2857_v19 = vsel %vm772_vm11, %v3880_v22, 0.0 }
0x184d   :  { %v2643_v53 = vpack.c.bf16 %v2641_v18, %v2641_v18 }
0x1850   :  { %2776 = vrot.lane.b32.xlu2 %v4684_v52, %s3961_s21 }
0x1854   :  { %2888 = vrot.lane.b32.xlu1 %v4684_v52, %s4910_s8 }
0x1856   :  { %v2646_v57 = vpop.permute.xlu1 %2645 }
0x1857   :  { %2658 = vmatpush.bf16.msra.mxu2 %v2646_v57 }
0x185a   :  { %3490 = vmatmul.msk.bf16.vlgmr.msra.gmra.mxu2 %vm772_vm11, %v2643_v53 }
0x185b   :  { %2770 = vmatpush.bf16.msrb.mxu2 %v2758_v46 }
0x185f   :  { %2869 = vrot.lane.b32.xlu0 %v4678_v44, %s4910_s8 }
0x1879   :  { %2858 = vadd.xlane.f32.xlu2 %v2857_v19 }
0x1893   :  { %v2747_v41 = vpop.xlane.xlu0 %2746 }
0x1894   :  { %3881 = vrcp.f32 %v2747_v41 }
0x189a   :  { %v3882_v52 = vpop.eup %3881 }
0x189b   :  { %v2753_v26 = vmul.f32 %v3882_v52, %v3868_v21 }
0x189d   :  { %v2755_v7 = vpack.c.bf16 %v2753_v26, %v2753_v26  ;;  %v3729_v26 = vld [vmem:[%s4894_s2 + $0x1] ss:$0 sm:$0xff] }
0x189f   :  { %3494 = vmatmul.msk.bf16.vlgmr.msrb.gmra.mxu2 %vm772_vm11, %v2755_v7 }
0x18ab   :  { %v2638_v23 = vpop.xlane.xlu2 %2637 }
0x18ac   :  { %3883 = vrcp.f32 %v2638_v23 }
0x18ae   :  { %v2750_v29 = vpop.xlane.xlu1 %2749 }
0x18af   :  { %3885 = vrcp.f32 %v2750_v29 }
0x18b2   :  { %v3884_v27 = vpop.eup %3883 }
0x18b3   :  { %v2642_v28 = vmul.f32 %v3884_v27, %v3870_v48  ;;  %v2777_v44 = vpop.permute.xlu2 %2776 }
0x18b4   :  { %2789 = vmatpush.bf16.msra.mxu3 %v2777_v44 }
0x18b5   :  { %v2644_v24 = vpack.c.bf16 %v2642_v28, %v2642_v28  ;;  %v3886_v30 = vpop.eup %3885 }
0x18b6   :  { %v2754_v32 = vmul.f32 %v3886_v30, %v3874_v56 }
0x18b7   :  { %3491 = vmatmul.msk.bf16.vlgmr.msrb.gmra.mxu3 %vm772_vm11, %v2644_v24 }
0x18b8   :  { %v2756_v33 = vpack.c.bf16 %v2754_v32, %v2754_v32 }
0x18be   :  { %v2862_v9 = vpop.xlane.xlu0 %2861 }
0x18bf   :  { %3887 = vrcp.f32 %v2862_v9 }
0x18c5   :  { %v2561_v31 = vpop.f32.mrf.mxu3  ;;  %v3888_v36 = vpop.eup %3887 }
0x18c6   :  { %v2889_v3 = vpop.permute.xlu1 %2888  ;;  %v2866_v37 = vmul.f32 %v3888_v36, %v3876_v16 }
0x18c7   :  { %3495 = vmatmul.msk.bf16.vlgmr.msra.gmra.mxu3 %vm772_vm11, %v2756_v33 }
0x18c8   :  { %2901 = vmatpush.bf16.msrb.mxu3 %v2889_v3  ;;  %v2868_v39 = vpack.c.bf16 %v2866_v37, %v2866_v37  ;;  %v3594_v37 = vld [vmem:[%s4895_s28 + $0x18] sm:$0xff] }
0x18c9   :  { %3069 = vmatpush.bf16.msrb.mxu1 %v3594_v37  ;;  %v3733_v37 = vld [vmem:[%s4900_s16 + $0x1] ss:$0 sm:$0xff] }
0x18cd   :  { %v2563_v25 = vpop.f32.mrf.mxu3 }
0x18d1   :  { %v2870_v38 = vpop.permute.xlu0 %2869 }
0x18d2   :  { %2882 = vmatpush.bf16.msra.mxu2 %v2870_v38 }
0x18d7   :  { %3499 = vmatmul.msk.bf16.vlgmr.msrb.gmra.mxu3 %vm772_vm11, %v2868_v39 }
0x18dd   :  { %v2660_v62 = vpop.f32.mrf.mxu2 }
0x18e5   :  { %v2662_v21 = vpop.f32.mrf.mxu2 }
0x18e6   :  { %v3593_v21 = vld [vmem:[%s4895_s28 + $0x10] sm:$0xff] }
0x18e7   :  { %3070 = vmatpush.bf16.msrb.mxu1 %v3593_v21 }
0x18ec   :  { %v2859_v40 = vpop.xlane.xlu2 %2858 }
0x18ed   :  { %3889 = vrcp.f32 %v2859_v40 }
0x18f3   :  { %v3890_v42 = vpop.eup %3889 }
0x18f4   :  { %v2865_v43 = vmul.f32 %v3890_v42, %v3880_v22 }
0x18f6   :  { %v2867_v50 = vpack.c.bf16 %v2865_v43, %v2865_v43 }
0x18f8   :  { %3498 = vmatmul.msk.bf16.vlgmr.msra.gmra.mxu2 %vm772_vm11, %v2867_v50 }
0x1922   :  { %v2772_v49 = vpop.f32.mrf.mxu2 }
0x192a   :  { %v2774_v51 = vpop.f32.mrf.mxu2 }
0x193a   :  { %v2679_v55 = vpop.f32.mrf.mxu3 }
0x193b   :  { %v3693_v47 = vpack.i.bf16 %v2679_v55, %v2660_v62 }
0x193d   :  { %3694 = vrot.lane.b32.xlu0 %v3693_v47, %s4907_s7 }
0x1942   :  { %v2681_v60 = vpop.f32.mrf.mxu3 }
0x194a   :  { %v2791_v48 = vpop.f32.mrf.mxu3 }
0x194b   :  { %v3698_v58 = vpack.i.bf16 %v2791_v48, %v2772_v49 }
0x194d   :  { %3699 = vrot.lane.b32.xlu2 %v3698_v58, %s4908_s3 }
0x1952   :  { %v2793_v63 = vpop.f32.mrf.mxu3 }
0x195a   :  { %v2903_v0 = vpop.f32.mrf.mxu3 }
0x1962   :  { %v2905_v56 = vpop.f32.mrf.mxu3 }
0x197b   :  { %v2884_v2 = vpop.f32.mrf.mxu2 }
0x197c   :  { %v3703_v5 = vpack.i.bf16 %v2903_v0, %v2884_v2 }
0x197e   :  { %3704 = vrot.lane.b32.xlu0 %v3703_v5, %s4909_s29  ;;  %v3730_v5 = vld [vmem:[%s4896_s26 + $0x1] ss:$0 sm:$0xff] }
0x1983   :  { %v2886_v6 = vpop.f32.mrf.mxu2 }
0x19a7   :  { %v3700_v16 = vpop.permute.xlu2 %3699 }
0x19a8   :  { %v3702_v18 = vunpack.i.h.bf16 %v3700_v16  ;;  %v3701_v57 = vunpack.i.l.bf16 %v3700_v16 }
0x19af   :  { %v3695_v14 = vpop.permute.xlu0 %3694 }
0x19b0   :  { %v3697_v15 = vunpack.i.h.bf16 %v3695_v14  ;;  %v3696_v11 = vunpack.i.l.bf16 %v3695_v14  ;;  %v3731_v14 = vld [vmem:[%s4897_s23 + $0x1] ss:$0 sm:$0xff] }
0x19b2   :  { %v2932_v17 = vsel %vm283_vm8, %v2561_v31, %v3697_v15  ;;  %v2931_v45 = vsel %vm283_vm8, %v4733_v13, %v3696_v11 }
0x19b3   :  { %v2933_v1 = vsel %vm772_vm11, %v2931_v45, %v3701_v57  ;;  %v2934_v22 = vsel %vm772_vm11, %v2932_v17, %v3702_v18  ;;  %v3598_v57 = vld [vmem:[%s4898_s22 + $0x38] sm:$0xff] }
0x19b4   :  { %3141 = vmatpush.bf16.msrb.mxu2 %v3598_v57 }
0x19f0   :  { %v3705_v46 = vpop.permute.xlu0 %3704 }
0x19f1   :  { %v3707_v53 = vunpack.i.h.bf16 %v3705_v46  ;;  %v3706_v20 = vunpack.i.l.bf16 %v3705_v46  ;;  %v3597_v46 = vld [vmem:[%s4898_s22 + $0x30] sm:$0xff] }
0x19f2   :  { %3142 = vmatpush.bf16.msrb.mxu2 %v3597_v46 }
0x19f3   :  { %v2935_v19 = vsel %vm775_vm12, %v2933_v1, %v3706_v20  ;;  %v2936_v41 = vsel %vm775_vm12, %v2934_v22, %v3707_v53  ;;  %v3596_v53 = vld [vmem:[%s4898_s22 + $0x28] sm:$0xff]  ;;  %v3732_v20 = vld [vmem:[%s4899_s18 + $0x1] ss:$0 sm:$0xff] }
0x19f4   :  { %v2937_v52 = vpack.c.bf16 %v2936_v41, %v2935_v19  ;;  %v3595_v22 = vld [vmem:[%s4898_s22 + $0x20] sm:$0xff] }
0x19f6   :  { %3513 = vmatmul.msk.bf16.vlgmr.msrb.gmra.mxu0 %vm165_vm0, %v2937_v52  ;;  %3143 = vmatpush.bf16.msrb.mxu2 %v3596_v53 }
0x19fa   :  { %3144 = vmatpush.bf16.msrb.mxu2 %v3595_v22 }
0x1a73   :  { %v2972_v7 = vpop.f32.mrf.mxu0 }
0x1a74   :  { %v2973_v23 = vadd.f32 %v3729_v26, %v2972_v7 }
0x1a76   :  { %v2977_v13 = vadd.f32 %v2973_v23, %v4670_v34 }
0x1a78   :  { %v2983_v27 = vsel %vm165_vm0, %v2977_v13, 0.0 }
0x1a79   :  { %2984 = vadd.xlane.f32.xlu1 %v2983_v27 }
0x1a7b   :  { %v2974_v28 = vpop.f32.mrf.mxu0 }
0x1a7c   :  { %v2975_v44 = vadd.f32 %v3729_v26, %v2974_v28 }
0x1a7e   :  { %v2978_v24 = vadd.f32 %v2975_v44, %v4672_v35 }
0x1a80   :  { %v2986_v29 = vsel %vm165_vm0, %v2978_v24, 0.0 }
0x1a81   :  { %2987 = vadd.xlane.f32.xlu0 %v2986_v29 }
0x1aec   :  { %v2985_v30 = vpop.xlane.xlu1 %2984 }
0x1aed   :  { %v2989_v32 = vmul.f32 %v2985_v30, %v4135_v10 }
0x1aef   :  { %v2991_v33 = vsub.f32 %v2977_v13, %v2989_v32 }
0x1af1   :  { %v2993_v9 = vmul.f32 %v2991_v33, %v2991_v33 }
0x1af3   :  { %v2995_v31 = vsel %vm165_vm0, %v2993_v9, 0.0 }
0x1af4   :  { %v2988_v34 = vpop.xlane.xlu0 %2987  ;;  %2996 = vadd.xlane.f32.xlu2 %v2995_v31 }
0x1af5   :  { %v2990_v3 = vmul.f32 %v2988_v34, %v4135_v10 }
0x1af7   :  { %v2992_v25 = vsub.f32 %v2978_v24, %v2990_v3 }
0x1af9   :  { %v2994_v36 = vmul.f32 %v2992_v25, %v2992_v25 }
0x1afb   :  { %v2998_v35 = vsel %vm165_vm0, %v2994_v36, 0.0 }
0x1afc   :  { %2999 = vadd.xlane.f32.xlu1 %v2998_v35 }
0x1b0c   :  { %267 = vrot.lane.b32.xlu2 %v4155_v54, %s3960_s5 }
0x1b67   :  { %v2997_v38 = vpop.xlane.xlu2 %2996 }
0x1b68   :  { %v3001_v39 = vmul.f32 %v2997_v38, %v4135_v10 }
0x1b6a   :  { %v3003_v62 = vadd.f32 1e-12, %v3001_v39 }
0x1b6c   :  { %3891 = vrsqrt.f32 %v3003_v62  ;;  %vm3011_vm11 = vweird.f32 %v3003_v62 }
0x1b6f   :  { %v268_v40 = vpop.permute.xlu2 %267  ;;  %v3000_v42 = vpop.xlane.xlu1 %2999 }
0x1b70   :  { %274 = vst.msk [vmem:[%s4129_s4] sm:$0xff] %vm273_vm14, %v268_v40  ;;  %v3002_v43 = vmul.f32 %v3000_v42, %v4135_v10 }
0x1b72   :  { %v3892_v50 = vpop.eup %3891  ;;  %v3004_v49 = vadd.f32 1e-12, %v3002_v43 }
0x1b73   :  { %v3006_v51 = vmul.f32 %v3892_v50, %v3003_v62  ;;  %vm3012_vm8 = vweird.f32 %v3892_v50 }
0x1b74   :  { %3893 = vrsqrt.f32 %v3004_v49  ;;  %vm3013_vm12 = vmor %vm3011_vm11, %vm3012_vm8  ;;  %vm3021_vm2 = vweird.f32 %v3004_v49 }
0x1b75   :  { %v3007_v54 = vmul.f32 %v3892_v50, %v3006_v51 }
0x1b77   :  { %v3008_v55 = vmul.f32 0.5, %v3007_v54 }
0x1b79   :  { %v3009_v47 = vsub.f32 1.5, %v3008_v55 }
0x1b7a   :  { %v3894_v60 = vpop.eup %3893 }
0x1b7b   :  { %v3010_v48 = vmul.f32 %v3892_v50, %v3009_v47  ;;  %v3016_v58 = vmul.f32 %v3894_v60, %v3004_v49  ;;  %vm3022_vm1 = vweird.f32 %v3894_v60 }
0x1b7c   :  { %vm3023_vm3 = vmor %vm3021_vm2, %vm3022_vm1 }
0x1b7d   :  { %v3017_v63 = vmul.f32 %v3894_v60, %v3016_v58  ;;  %v3014_v0 = vsel %vm3013_vm12, %v3892_v50, %v3010_v48 }
0x1b7e   :  { %v3025_v6 = vmul.f32 %v3014_v0, %v2991_v33 }
0x1b7f   :  { %v3018_v56 = vmul.f32 0.5, %v3017_v63 }
0x1b80   :  { %v3030_v15 = vmul.f32 %v3730_v5, %v3025_v6 }
0x1b81   :  { %v3019_v2 = vsub.f32 1.5, %v3018_v56  ;;  %v3600_v56 = vld [vmem:[%s4114_s17 + $0x8] sm:$0xff] }
0x1b82   :  { %v3035_v17 = vadd.f32 %v3731_v14, %v3030_v15  ;;  %3241 = vmatpush.bf16.msra.mxu3 %v3600_v56 }
0x1b83   :  { %v3020_v8 = vmul.f32 %v3894_v60, %v3019_v2 }
0x1b85   :  { %v3024_v12 = vsel %vm3023_vm3, %v3894_v60, %v3020_v8  ;;  %v3599_v8 = vld [vmem:[%s4114_s17] sm:$0xff]  ;;  %s3974_s17 = smov [#allocation2]  }
0x1b86   :  { %v3026_v11 = vmul.f32 %v3024_v12, %v2992_v25  ;;  %3242 = vmatpush.bf16.msra.mxu3 %v3599_v8  ;;  %s3255_s14 = sshll.u32 %s3974_s17, 4  ;;  %s3256_s14 = int_to_ptr.vmem [resolvable:$true] %s3255_s14 }
0x1b88   :  { %v3031_v16 = vmul.f32 %v3730_v5, %v3026_v11 }
0x1b8a   :  { %v3036_v45 = vadd.f32 %v3731_v14, %v3031_v16 }
0x1b8c   :  { %v3037_v18 = vpack.c.bf16 %v3036_v45, %v3035_v17 }
0x1b8e   :  { %3529 = vmatmul.msk.bf16.vlgmr.msrb.gmra.mxu1 %vm165_vm0, %v3037_v18 }
0x1c0b   :  { %v3072_v1 = vpop.f32.mrf.mxu1 }
0x1c0c   :  { %v3073_v19 = vadd.f32 %v3732_v20, %v3072_v1  ;;  %v3734_v1 = vld [vmem:[%s4901_s15 + $0x1] ss:$0 sm:$0xff] }
0x1c0e   :  { %v3077_v41 = vmul.f32 %v3073_v19, %v3073_v19 }
0x1c10   :  { %v3079_v52 = vmul.f32 %v3077_v41, %v3073_v19 }
0x1c12   :  { %v3081_v26 = vmul.f32 0.044715, %v3079_v52 }
0x1c13   :  { %v3074_v7 = vpop.f32.mrf.mxu1 }
0x1c14   :  { %v3083_v23 = vadd.f32 %v3081_v26, %v3073_v19  ;;  %v3075_v13 = vadd.f32 %v3732_v20, %v3074_v7  ;;  %v3735_v26 = vld [vmem:[%s4902_s13 + $0x1] ss:$0 sm:$0xff] }
0x1c16   :  { %v3085_v27 = vmul.f32 0.7978846, %v3083_v23  ;;  %v3078_v28 = vmul.f32 %v3075_v13, %v3075_v13 }
0x1c18   :  { %v3080_v44 = vmul.f32 %v3078_v28, %v3075_v13  ;;  %3895 = vtanh.f32 %v3085_v27 }
0x1c1a   :  { %v3082_v24 = vmul.f32 0.044715, %v3080_v44 }
0x1c1c   :  { %v3084_v29 = vadd.f32 %v3082_v24, %v3075_v13 }
0x1c1e   :  { %v3086_v30 = vmul.f32 0.7978846, %v3084_v29  ;;  %v3896_v32 = vpop.eup %3895  ;;  %v3736_v29 = vld [vmem:[%s4119_s6] ss:$0 sm:$0xff] }
0x1c1f   :  { %v3089_v33 = vadd.f32 1.0, %v3896_v32 }
0x1c20   :  { %3897 = vtanh.f32 %v3086_v30 }
0x1c21   :  { %v3091_v31 = vmul.f32 0.5, %v3089_v33 }
0x1c23   :  { %v3093_v25 = vmul.f32 %v3091_v31, %v3073_v19 }
0x1c26   :  { %v3898_v9 = vpop.eup %3897 }
0x1c27   :  { %v3090_v34 = vadd.f32 1.0, %v3898_v9 }
0x1c29   :  { %v3092_v3 = vmul.f32 0.5, %v3090_v34 }
0x1c2b   :  { %v3094_v36 = vmul.f32 %v3092_v3, %v3075_v13 }
0x1c2d   :  { %v3095_v35 = vpack.c.bf16 %v3094_v36, %v3093_v25 }
0x1c2f   :  { %3555 = vmatmul.msk.bf16.vlgmr.msrb.gmra.mxu2 %vm273_vm14, %v3095_v35 }
0x1cb2   :  { %v3146_v38 = vpop.f32.mrf.mxu2 }
0x1cb3   :  { %v3147_v39 = vadd.f32 %v3733_v37, %v3146_v38 }
0x1cb5   :  { %v3151_v62 = vadd.f32 %v3147_v39, %v3035_v17 }
0x1cb7   :  { %v3157_v21 = vsel %vm165_vm0, %v3151_v62, 0.0 }
0x1cb8   :  { %3158 = vadd.xlane.f32.xlu0 %v3157_v21 }
0x1cba   :  { %v3148_v40 = vpop.f32.mrf.mxu2 }
0x1cbb   :  { %v3149_v42 = vadd.f32 %v3733_v37, %v3148_v40 }
0x1cbd   :  { %v3152_v43 = vadd.f32 %v3149_v42, %v3036_v45 }
0x1cbf   :  { %v3160_v50 = vsel %vm165_vm0, %v3152_v43, 0.0 }
0x1cc0   :  { %3161 = vadd.xlane.f32.xlu1 %v3160_v50 }
0x1d2b   :  { %v3159_v49 = vpop.xlane.xlu0 %3158 }
0x1d2c   :  { %v3163_v51 = vmul.f32 %v3159_v49, %v4135_v10 }
0x1d2e   :  { %v3165_v54 = vsub.f32 %v3151_v62, %v3163_v51 }
0x1d30   :  { %v3167_v55 = vmul.f32 %v3165_v54, %v3165_v54 }
0x1d32   :  { %v3169_v47 = vsel %vm165_vm0, %v3167_v55, 0.0 }
0x1d33   :  { %v3162_v60 = vpop.xlane.xlu1 %3161  ;;  %3170 = vadd.xlane.f32.xlu0 %v3169_v47 }
0x1d34   :  { %v3164_v48 = vmul.f32 %v3162_v60, %v4135_v10 }
0x1d36   :  { %v3166_v58 = vsub.f32 %v3152_v43, %v3164_v48 }
0x1d38   :  { %v3168_v63 = vmul.f32 %v3166_v58, %v3166_v58 }
0x1d3a   :  { %v3172_v0 = vsel %vm165_vm0, %v3168_v63, 0.0 }
0x1d3b   :  { %3173 = vadd.xlane.f32.xlu1 %v3172_v0 }
0x1d47   :  { %269 = vrot.lane.b32.xlu0 %v4161_v59, %s3960_s5 }
0x1d4f   :  { %1759 = vrot.lane.b32.xlu0 %v4507_v4, %s3960_s5 }
0x1d54   :  { %1757 = vrot.lane.b32.xlu1 %v4501_v61, %s3960_s5 }
0x1da6   :  { %v3171_v2 = vpop.xlane.xlu0 %3170 }
0x1da7   :  { %v3175_v5 = vmul.f32 %v3171_v2, %v4135_v10 }
0x1da9   :  { %v3177_v6 = vadd.f32 1e-12, %v3175_v5 }
0x1dab   :  { %3899 = vrsqrt.f32 %v3177_v6  ;;  %vm3185_vm5 = vweird.f32 %v3177_v6 }
0x1dae   :  { %v3174_v12 = vpop.xlane.xlu1 %3173 }
0x1daf   :  { %v3176_v14 = vmul.f32 %v3174_v12, %v4135_v10 }
0x1db1   :  { %v3900_v59 = vpop.eup %3899  ;;  %v3178_v15 = vadd.f32 1e-12, %v3176_v14 }
0x1db2   :  { %v3180_v11 = vmul.f32 %v3900_v59, %v3177_v6  ;;  %vm3186_vm4 = vweird.f32 %v3900_v59 }
0x1db3   :  { %3901 = vrsqrt.f32 %v3178_v15  ;;  %vm3187_vm10 = vmor %vm3185_vm5, %vm3186_vm4  ;;  %vm3195_vm7 = vweird.f32 %v3178_v15 }
0x1db4   :  { %v3181_v4 = vmul.f32 %v3900_v59, %v3180_v11 }
0x1db6   :  { %v3182_v61 = vmul.f32 0.5, %v3181_v4 }
0x1db8   :  { %v3183_v16 = vsub.f32 1.5, %v3182_v61 }
0x1db9   :  { %v3902_v17 = vpop.eup %3901  ;;  %v270_v45 = vpop.permute.xlu0 %269 }
0x1dba   :  { %v3184_v18 = vmul.f32 %v3900_v59, %v3183_v16  ;;  %v3190_v57 = vmul.f32 %v3902_v17, %v3178_v15  ;;  %275 = vst.msk [vmem:[%s4129_s4 + $0x8] sm:$0xff] %vm273_vm14, %v270_v45  ;;  %vm3196_vm6 = vweird.f32 %v3902_v17 }
0x1dbb   :  { %vm3197_vm9 = vmor %vm3195_vm7, %vm3196_vm6 }
0x1dbc   :  { %v3191_v46 = vmul.f32 %v3902_v17, %v3190_v57  ;;  %v3188_v10 = vsel %vm3187_vm10, %v3900_v59, %v3184_v18 }
0x1dbd   :  { %v3199_v22 = vmul.f32 %v3188_v10, %v3165_v54 }
0x1dbe   :  { %v3192_v53 = vmul.f32 0.5, %v3191_v46 }
0x1dbf   :  { %v3204_v7 = vmul.f32 %v3734_v1, %v3199_v22 }
0x1dc0   :  { %v3193_v20 = vsub.f32 1.5, %v3192_v53 }
0x1dc1   :  { %v1760_v19 = vpop.permute.xlu0 %1759  ;;  %v3209_v28 = vadd.f32 %v3735_v26, %v3204_v7 }
0x1dc2   :  { %v3194_v41 = vmul.f32 %v3902_v17, %v3193_v20  ;;  %3422 = vst.msk [vmem:[%s4129_s4 + $0x18] sm:$0xff] %vm273_vm14, %v1760_v19 }
0x1dc4   :  { %v3198_v52 = vsel %vm3197_vm9, %v3902_v17, %v3194_v41 }
0x1dc5   :  { %v3200_v23 = vmul.f32 %v3198_v52, %v3166_v58 }
0x1dc6   :  { %v1758_v13 = vpop.permute.xlu1 %1757 }
0x1dc7   :  { %v3205_v27 = vmul.f32 %v3734_v1, %v3200_v23  ;;  %3421 = vst.msk [vmem:[%s4129_s4 + $0x10] sm:$0xff] %vm273_vm14, %v1758_v13 }
0x1dc9   :  { %v3210_v44 = vadd.f32 %v3735_v26, %v3205_v27 }
0x1dcb   :  { %v3211_v24 = vpack.c.bf16 %v3210_v44, %v3209_v28 }
0x1dcd   :  { %3566 = vmatmul.msk.bf16.vlgmr.msra.gmra.mxu3 %vm165_vm0, %v3211_v24 }
0x1e50   :  { %v3244_v30 = vpop.f32.mrf.mxu3 }
0x1e51   :  { %v3245_v32 = vadd.f32 %v3736_v29, %v3244_v30 }
0x1e53   :  { %3249 = vst [vmem:[#allocation2] sm:$0xff] %v3245_v32 }
0x1e58   :  { %v3246_v33 = vpop.f32.mrf.mxu3 }
0x1e59   :  { %v3247_v9 = vadd.f32 %v3736_v29, %v3246_v33 }
0x1e5b   :  { %3250 = vst [vmem:[#allocation2 + $0x8] sm:$0xff] %v3247_v9 }
0x1e5c   :  { %3926 = shalt.err (!%p3923_p4)
}
0x1e5d   :  { %s3975_s6 = smov 128  }
0x1e5e   :  { %3263 = dma.vmem_to_hbm [thread:$0]  %s3256_s14, 256, %s3258_s19, [#allocation3], %s3975_s6, %s3975_s6, %s4907_s7  }
0x1e5f   :  { %3927 = dma.done.wait [#allocation3], 256  }
0x1e60   :  { %3928 = vsyncadd [#allocation3], 4294967040 }
0x1e61   :  { %3272 = vsyncpa [#allocation3], 1 }

</bundles_post_ra>
